<compile_context>
chip_gen: v5e
topology: v5e:2x2
jax: 0.10.0
libtpu: 0.0.40
codegen_flags: <defaults>
</compile_context>

<pallas_src>
import functools
import math

import jax
import jax.numpy as jnp
from jax.experimental import pallas as pl
from jax.experimental.pallas import tpu as pltpu


# ---------------------------------------------------------------------------
# Shared math helpers.
# ---------------------------------------------------------------------------
def _layernorm(x, g, b, eps=1e-5):
    mean = jnp.mean(x, axis=-1, keepdims=True)
    var = jnp.mean((x - mean) ** 2, axis=-1, keepdims=True)
    return (x - mean) * jax.lax.rsqrt(var + eps) * g + b


# ---------------------------------------------------------------------------
# Pallas kernel: one (bt, L, E) slab of tokens per grid step.
# ---------------------------------------------------------------------------
def _encoder_layer_kernel(nhead, bt, seq_len, ffn_chunk, io_3d,
                          x_ref, wqkv_ref, bqkv_ref, wo_ref, w1_ref, b1_ref,
                          w2_ref, vecs_ref, out_ref):
    L = seq_len
    E = wo_ref.shape[0]
    F = w1_ref.shape[1]
    dh = E // nhead
    M = bt * L

    if io_3d:
        # (L, bt, E) -> (bt, L, E) -> (M, E): leading/sublane reorder only, the
        # lane dim (E) is untouched.  Done in VMEM instead of an HBM round trip.
        x = jnp.transpose(x_ref[...], (1, 0, 2)).reshape(M, E)
    else:
        x = x_ref[...]                                   # already (M, E)
    xb = x.astype(jnp.bfloat16)

    # ---- fused QKV projection: ONE (M, E) @ (E, 3E) bf16 matmul ------------
    # (the 1/sqrt(dh) attention scale is folded into the Q columns host-side)
    qkv = jnp.dot(xb, wqkv_ref[...], preferred_element_type=jnp.float32)
    qkv = (qkv + bqkv_ref[...]).astype(jnp.bfloat16).reshape(bt, L, 3 * E)

    # ---- attention: per-head column slices, no head-relayout scratch -------
    # TODO(synk): add a KV-tiled online-softmax path once L >= ~512 (scores are
    # O(L^2) per head and would blow VMEM on v7x).
    ctx_parts = []
    for h in range(nhead):
        c0 = h * dh
        qh = qkv[:, :, c0:c0 + dh]                       # (bt, L, dh) bf16
        kh = qkv[:, :, E + c0:E + c0 + dh]
        vh = qkv[:, :, 2 * E + c0:2 * E + c0 + dh]
        s = jnp.einsum('bld,bsd->bls', qh, kh,
                       preferred_element_type=jnp.float32)
        s = s - jnp.max(s, axis=-1, keepdims=True)
        p = jnp.exp(s)
        p = p * pl.reciprocal(jnp.sum(p, axis=-1, keepdims=True), approx=True)
        ctx_parts.append(
            jnp.einsum('bls,bsd->bld', p.astype(jnp.bfloat16), vh,
                       preferred_element_type=jnp.float32).astype(jnp.bfloat16))
    ctx = jnp.concatenate(ctx_parts, axis=-1).reshape(M, E)     # (M, E) bf16

    # ---- ONE full-width output projection -----------------------------------
    attn = jnp.dot(ctx, wo_ref[...],
                   preferred_element_type=jnp.float32) + vecs_ref[0:1, :]
    x = _layernorm(x + attn, vecs_ref[2:3, :], vecs_ref[3:4, :])

    # ---- feed-forward: linear1 -> relu -> linear2, tiled over F -------------
    xb2 = x.astype(jnp.bfloat16)
    n_fc = F // ffn_chunk
    if n_fc == 1:
        h1 = jnp.maximum(
            jnp.dot(xb2, w1_ref[...], preferred_element_type=jnp.float32)
            + b1_ref[...], 0.0).astype(jnp.bfloat16)
        ff = jnp.dot(h1, w2_ref[...], preferred_element_type=jnp.float32)
    else:
        def body(i, acc):
            c = pl.multiple_of(i * ffn_chunk, ffn_chunk)
            h1 = jnp.maximum(
                jnp.dot(xb2, w1_ref[:, pl.ds(c, ffn_chunk)],
                        preferred_element_type=jnp.float32)
                + b1_ref[:, pl.ds(c, ffn_chunk)], 0.0).astype(jnp.bfloat16)
            return acc + jnp.dot(h1, w2_ref[pl.ds(c, ffn_chunk), :],
                                 preferred_element_type=jnp.float32)
        ff = jax.lax.fori_loop(0, n_fc, body, jnp.zeros((M, E), jnp.float32))
    ff = ff + vecs_ref[1:2, :]

    x = _layernorm(x + ff, vecs_ref[4:5, :], vecs_ref[5:6, :])

    if io_3d:
        out_ref[...] = jnp.transpose(x.reshape(bt, L, E),
                                     (1, 0, 2)).astype(out_ref.dtype)
    else:
        out_ref[...] = x.astype(out_ref.dtype)


_PACKED_ORDER = ("wqkv", "bqkv", "wo", "w1", "b1", "w2", "vecs")


# ---------------------------------------------------------------------------
# Tile-size / VMEM-budget heuristics.
# ---------------------------------------------------------------------------
def _pick_ffn_chunk(F):
    if F <= 1024:
        return F
    for fc in (1024, 512, 256, 128):
        if F % fc == 0:
            return fc
    return F


def _vmem_estimate(bt, L, E, F, nhead, ffn_chunk):
    f32, b16 = 4, 2
    M = bt * L
    io = 2 * 2 * M * E * f32                               # in + out, 2-buffered
    w = (3 * E * E + E * E + 2 * E * F) * b16 + (3 * E + F + 8 * E) * f32
    qkv = M * 3 * E * (f32 + b16)
    attn = 2 * bt * L * L * f32 + M * E * (b16 + f32)
    ffn = M * ffn_chunk * (f32 + b16) + 2 * M * E * f32
    return io + w + qkv + attn + ffn


def _pick_bt(B, L, E, F, nhead, ffn_chunk, budget):
    # Block sublane dim must be a multiple of 8 or span the full batch dim.
    valid = [c for c in range(1, B + 1)
             if B % c == 0 and (c % 8 == 0 or c == B)]
    est = {c: _vmem_estimate(c, L, E, F, nhead, ffn_chunk) for c in valid}
    fitting = [c for c in valid if est[c] <= budget]
    pool = fitting if fitting else [min(valid, key=lambda c: est[c])]

    def key(c):
        M = c * L
        return ((B // c) >= 2,            # >= 2 grid steps (v7x has 2 TCs)
                M % 256 == 0,             # fill the 256-wide MXU (v6e/v7x)
                M if M <= 1024 else 0,    # biggest M up to 1024
                -M)                       # beyond that, prefer smaller
    return max(pool, key=key)


# ---------------------------------------------------------------------------
# Wrapper.
# ---------------------------------------------------------------------------
def _call_pallas(src, params, nhead, bt, ffn_chunk, vmem_limit,
                 io_3d, single_buffer_weights):
    L, B, E = src.shape
    M = bt * L
    grid = (B // bt,)

    if single_buffer_weights:
        # Constant index_map -> a single resident copy of the weights in VMEM.
        param_specs = [pl.BlockSpec(p.shape, lambda i: (0, 0),
                                    pipeline_mode=pl.Buffered(1))
                       for p in params]
    else:
        param_specs = [pl.BlockSpec(p.shape, lambda i: (0, 0)) for p in params]

    kernel = functools.partial(_encoder_layer_kernel, nhead, bt, L,
                               ffn_chunk, io_3d)
    cparams = pltpu.CompilerParams(dimension_semantics=("parallel",),
                                   vmem_limit_bytes=vmem_limit)

    if io_3d:
        # Consume / produce the original seq-first (L, B, E) layout directly:
        # no host-side transpose HBM round trips.
        x_spec = pl.BlockSpec((L, bt, E), lambda i: (0, i, 0))
        out_spec = pl.BlockSpec((L, bt, E), lambda i: (0, i, 0))
        fn = pl.pallas_call(
            kernel,
            out_shape=jax.ShapeDtypeStruct((L, B, E), src.dtype),
            grid_spec=pltpu.PrefetchScalarGridSpec(
                num_scalar_prefetch=0, grid=grid,
                in_specs=[x_spec] + param_specs, out_specs=out_spec),
            compiler_params=cparams)
        return fn(src, *params)

    # Fallback path: flatten to (B*L, E) on the host (one extra HBM round trip
    # per direction), 2-D blocks.
    x2d = jnp.transpose(src, (1, 0, 2)).reshape(B * L, E)
    x_spec = pl.BlockSpec((M, E), lambda i: (i, 0))
    out_spec = pl.BlockSpec((M, E), lambda i: (i, 0))
    fn = pl.pallas_call(
        kernel,
        out_shape=jax.ShapeDtypeStruct((B * L, E), src.dtype),
        grid_spec=pltpu.PrefetchScalarGridSpec(
            num_scalar_prefetch=0, grid=grid,
            in_specs=[x_spec] + param_specs, out_specs=out_spec),
        compiler_params=cparams)
    out = fn(x2d, *params)
    return jnp.transpose(out.reshape(B, L, E), (1, 0, 2))


def transformer_encoder_layer(src, packed, nhead):
    """src: (L, B, E), seq-first like nn.MultiheadAttention. Returns (L, B, E)."""
    L, B, E = src.shape
    assert E % nhead == 0
    F = packed["w1"].shape[1]
    params = [packed[name] for name in _PACKED_ORDER]

    ffn_chunk = _pick_ffn_chunk(F)
    budget = 40 * 2 ** 20                       # conservative across v5e/v6e/v7x
    bt = _pick_bt(B, L, E, F, nhead, ffn_chunk, budget)
    est = _vmem_estimate(bt, L, E, F, nhead, ffn_chunk)
    vmem_limit = int(min(64 * 2 ** 20, max(32 * 2 ** 20, 1.5 * est)))

    # Preferred config first; progressively more conservative fallbacks so the
    # layer always runs even if a Mosaic feature (Buffered(1) weights or the
    # in-kernel leading-axis transpose) is unavailable on this toolchain.
    attempts = ((True, True), (True, False), (False, False))
    last_err = None
    for io_3d, single_buf in attempts:
        try:
            out = _call_pallas(src, params, nhead, bt, ffn_chunk, vmem_limit,
                               io_3d, single_buf)
            return jax.block_until_ready(out)
        except Exception as e:      # fall through to the next configuration
            last_err = e
    raise last_err


# ---------------------------------------------------------------------------
# Pure-JAX references for correctness checks.
# ---------------------------------------------------------------------------
def reference_encoder_layer(src, p, nhead):
    """Same packed bf16 params / same math as the kernel."""
    L, B, E = src.shape
    dh = E // nhead
    x = jnp.transpose(src, (1, 0, 2)).astype(jnp.float32)          # (B, L, E)

    qkv = jnp.einsum('ble,ef->blf', x.astype(jnp.bfloat16), p["wqkv"],
                     preferred_element_type=jnp.float32) + p["bqkv"]
    qkv = qkv.astype(jnp.bfloat16)
    q = qkv[..., :E].reshape(B, L, nhead, dh)
    k = qkv[..., E:2 * E].reshape(B, L, nhead, dh)
    v = qkv[..., 2 * E:].reshape(B, L, nhead, dh)

    s = jnp.einsum('blhd,bshd->bhls', q, k, preferred_element_type=jnp.float32)
    s = s - jnp.max(s, axis=-1, keepdims=True)
    pr = jnp.exp(s)
    pr = pr / jnp.sum(pr, axis=-1, keepdims=True)
    ctx = jnp.einsum('bhls,bshd->blhd', pr.astype(jnp.bfloat16), v,
                     preferred_element_type=jnp.float32)
    ctx = ctx.reshape(B, L, E).astype(jnp.bfloat16)

    attn = jnp.einsum('ble,eo->blo', ctx, p["wo"],
                      preferred_element_type=jnp.float32) + p["vecs"][0]
    x = _layernorm(x + attn, p["vecs"][2], p["vecs"][3])

    h1 = jnp.maximum(
        jnp.einsum('ble,ef->blf', x.astype(jnp.bfloat16), p["w1"],
                   preferred_element_type=jnp.float32) + p["b1"], 0.0)
    ff = jnp.einsum('blf,fe->ble', h1.astype(jnp.bfloat16), p["w2"],
                    preferred_element_type=jnp.float32) + p["vecs"][1]
    x = _layernorm(x + ff, p["vecs"][4], p["vecs"][5])
    return jnp.transpose(x, (1, 0, 2))


def reference_torch_f32(src, raw, nhead):
    """Straight f32 re-implementation of the PyTorch module (eval mode)."""
    L, B, E = src.shape
    dh = E // nhead
    x = jnp.transpose(src, (1, 0, 2)).astype(jnp.float32)          # (B, L, E)

    qkv = x @ raw["in_proj_weight"].T + raw["in_proj_bias"]
    q = qkv[..., :E].reshape(B, L, nhead, dh) * (1.0 / math.sqrt(dh))
    k = qkv[..., E:2 * E].reshape(B, L, nhead, dh)
    v = qkv[..., 2 * E:].reshape(B, L, nhead, dh)
    s = jnp.einsum('blhd,bshd->bhls', q, k)
    pr = jax.nn.softmax(s, axis=-1)
    ctx = jnp.einsum('bhls,bshd->blhd', pr, v).reshape(B, L, E)

    attn = ctx @ raw["out_proj_weight"].T + raw["out_proj_bias"]
    x = _layernorm(x + attn, raw["norm1_weight"], raw["norm1_bias"])
    h1 = jax.nn.relu(x @ raw["linear1_weight"].T + raw["linear1_bias"])
    ff = h1 @ raw["linear2_weight"].T + raw["linear2_bias"]
    x = _layernorm(x + ff, raw["norm2_weight"], raw["norm2_bias"])
    return jnp.transpose(x, (1, 0, 2))


# ---------------------------------------------------------------------------
# Parameter init (PyTorch-like raw shapes) + packing for the kernel.
# ---------------------------------------------------------------------------
def init_raw_params(key, d_model, nhead, dim_feedforward):
    E, F = d_model, dim_feedforward
    ks = jax.random.split(key, 8)

    def xavier(k, shape):
        fan_out, fan_in = shape
        limit = math.sqrt(6.0 / (fan_in + fan_out))
        return jax.random.uniform(k, shape, jnp.float32, -limit, limit)

    def small(k, shape):
        return 0.02 * jax.random.normal(k, shape, jnp.float32)

    return {
        "in_proj_weight": xavier(ks[0], (3 * E, E)),
        "in_proj_bias": small(ks[1], (3 * E,)),
        "out_proj_weight": xavier(ks[2], (E, E)),
        "out_proj_bias": small(ks[3], (E,)),
        "linear1_weight": xavier(ks[4], (F, E)),
        "linear1_bias": small(ks[5], (F,)),
        "linear2_weight": xavier(ks[6], (E, F)),
        "linear2_bias": small(ks[7], (E,)),
        "norm1_weight": jnp.ones((E,), jnp.float32),
        "norm1_bias": jnp.zeros((E,), jnp.float32),
        "norm2_weight": jnp.ones((E,), jnp.float32),
        "norm2_bias": jnp.zeros((E,), jnp.float32),
    }


def pack_params(raw, d_model, nhead):
    """Pre-transpose to x@W form, fuse QKV, fold attention scale, pack vectors."""
    E = d_model
    dh = E // nhead
    scale = 1.0 / math.sqrt(dh)

    wqkv = raw["in_proj_weight"].T                       # (E, 3E)
    bqkv = raw["in_proj_bias"][None, :]                  # (1, 3E)
    qscale = jnp.concatenate([jnp.full((E,), scale, jnp.float32),
                              jnp.ones((2 * E,), jnp.float32)])
    wqkv = wqkv * qscale[None, :]
    bqkv = bqkv * qscale[None, :]

    vecs = jnp.zeros((8, E), jnp.float32)
    vecs = vecs.at[0].set(raw["out_proj_bias"])
    vecs = vecs.at[1].set(raw["linear2_bias"])
    vecs = vecs.at[2].set(raw["norm1_weight"])
    vecs = vecs.at[3].set(raw["norm1_bias"])
    vecs = vecs.at[4].set(raw["norm2_weight"])
    vecs = vecs.at[5].set(raw["norm2_bias"])

    return {
        "wqkv": wqkv.astype(jnp.bfloat16),
        "bqkv": bqkv.astype(jnp.float32),
        "wo": raw["out_proj_weight"].T.astype(jnp.bfloat16),
        "w1": raw["linear1_weight"].T.astype(jnp.bfloat16),
        "b1": raw["linear1_bias"][None, :].astype(jnp.float32),
        "w2": raw["linear2_weight"].T.astype(jnp.bfloat16),
        "vecs": vecs,
    }


if __name__ == "__main__":
    d_model, nhead, dim_feedforward = 32, 4, 64
    L, B = 8, 2

    key = jax.random.PRNGKey(0)
    k_src, k_par = jax.random.split(key)
    src = jax.random.normal(k_src, (L, B, d_model), jnp.float32)

    raw = init_raw_params(k_par, d_model, nhead, dim_feedforward)
    packed = pack_params(raw, d_model, nhead)

    out = transformer_encoder_layer(src, packed, nhead)
    out = jax.block_until_ready(out)
    assert out.shape == (L, B, d_model), out.shape

    # Check 1: against a pure-JAX reference sharing the same packed bf16 params
    # (only difference is the EUP approx reciprocal in the kernel softmax).
    ref = jax.block_until_ready(reference_encoder_layer(src, packed, nhead))
    err = float(jnp.max(jnp.abs(out - ref)))
    assert err < 2e-2, f"packed-ref mismatch: {err}"

    # Check 2: against a straight f32 PyTorch-semantics reference (loose
    # tolerance covers bf16 weight/activation rounding in the kernel).
    ref32 = jax.block_until_ready(reference_torch_f32(src, raw, nhead))
    err32 = float(jnp.max(jnp.abs(out - ref32)))
    assert err32 < 1e-1, f"f32-ref mismatch: {err32}"

    print("KERNEL_OK")
</pallas_src>

<mosaic_0001>
module attributes {stable_mosaic.version = 11 : i64} {
  func.func @_encoder_layer_kernel(%arg0: i32, %arg1: memref<8x2x32xf32, #tpu.memory_space<vmem>>, %arg2: memref<32x96xbf16, #tpu.memory_space<vmem>>, %arg3: memref<1x96xf32, #tpu.memory_space<vmem>>, %arg4: memref<32x32xbf16, #tpu.memory_space<vmem>>, %arg5: memref<32x64xbf16, #tpu.memory_space<vmem>>, %arg6: memref<1x64xf32, #tpu.memory_space<vmem>>, %arg7: memref<64x32xbf16, #tpu.memory_space<vmem>>, %arg8: memref<8x32xf32, #tpu.memory_space<vmem>>, %arg9: memref<8x2x32xf32, #tpu.memory_space<vmem>>) attributes {dimension_semantics = [#tpu.dimension_semantics<parallel>], iteration_bounds = array<i64: 1>, scalar_prefetch = 0 : i64, scratch_operands = 0 : i64, tpu.core_type = #tpu.core_type<tc>, window_params = [{transform_indices = @transform_0, window_bounds = array<i64: 8, 2, 32>}, {pipeline_mode = #tpu.pipeline_mode<synchronous>, transform_indices = @transform_1, window_bounds = array<i64: 32, 96>}, {pipeline_mode = #tpu.pipeline_mode<synchronous>, transform_indices = @transform_2, window_bounds = array<i64: 1, 96>}, {pipeline_mode = #tpu.pipeline_mode<synchronous>, transform_indices = @transform_3, window_bounds = array<i64: 32, 32>}, {pipeline_mode = #tpu.pipeline_mode<synchronous>, transform_indices = @transform_4, window_bounds = array<i64: 32, 64>}, {pipeline_mode = #tpu.pipeline_mode<synchronous>, transform_indices = @transform_5, window_bounds = array<i64: 1, 64>}, {pipeline_mode = #tpu.pipeline_mode<synchronous>, transform_indices = @transform_6, window_bounds = array<i64: 64, 32>}, {pipeline_mode = #tpu.pipeline_mode<synchronous>, transform_indices = @transform_7, window_bounds = array<i64: 8, 32>}, {transform_indices = @transform_8, window_bounds = array<i64: 8, 2, 32>}]} {
    %c0 = arith.constant 0 : index
    %c0_0 = arith.constant 0 : index
    %c0_1 = arith.constant 0 : index
    %0 = vector.load %arg1[%c0, %c0_0, %c0_1] : memref<8x2x32xf32, #tpu.memory_space<vmem>>, vector<8x2x32xf32>
    %1 = tpu.transpose %0, [1, 0, 2] : vector<8x2x32xf32> -> vector<2x8x32xf32>
    %2 = vector.shape_cast %1 : vector<2x8x32xf32> to vector<16x32xf32>
    %3 = arith.truncf %2 : vector<16x32xf32> to vector<16x32xbf16>
    %c0_2 = arith.constant 0 : index
    %c0_3 = arith.constant 0 : index
    %4 = vector.load %arg2[%c0_2, %c0_3] : memref<32x96xbf16, #tpu.memory_space<vmem>>, vector<32x96xbf16>
    %cst = arith.constant dense<0.000000e+00> : vector<16x96xf32>
    %5 = tpu.matmul %3, %4, %cst {dimension_numbers = #tpu.dot_dimension_numbers<[1], [0], [0], [1], [0, 0, 1, 1], [], []>} : vector<16x32xbf16>, vector<32x96xbf16>, vector<16x96xf32> -> vector<16x96xf32>
    %c0_4 = arith.constant 0 : index
    %c0_5 = arith.constant 0 : index
    %6 = vector.load %arg3[%c0_4, %c0_5] : memref<1x96xf32, #tpu.memory_space<vmem>>, vector<1x96xf32>
    %7 = vector.broadcast %6 : vector<1x96xf32> to vector<16x96xf32>
    %8 = arith.addf %5, %7 : vector<16x96xf32>
    %9 = arith.truncf %8 : vector<16x96xf32> to vector<16x96xbf16>
    %10 = vector.shape_cast %9 : vector<16x96xbf16> to vector<2x8x96xbf16>
    %11 = vector.extract_strided_slice %10 {offsets = [0, 0, 0], sizes = [2, 8, 8], strides = [1, 1, 1]} : vector<2x8x96xbf16> to vector<2x8x8xbf16>
    %12 = vector.extract_strided_slice %10 {offsets = [0, 0, 32], sizes = [2, 8, 8], strides = [1, 1, 1]} : vector<2x8x96xbf16> to vector<2x8x8xbf16>
    %13 = vector.extract_strided_slice %10 {offsets = [0, 0, 64], sizes = [2, 8, 8], strides = [1, 1, 1]} : vector<2x8x96xbf16> to vector<2x8x8xbf16>
    "tpu.trace_start"() <{level = 10 : i32, message = "bld,bsd->bls"}> : () -> ()
    %cst_6 = arith.constant dense<0.000000e+00> : vector<2x8x8xf32>
    %14 = tpu.matmul %11, %12, %cst_6 {dimension_numbers = #tpu.dot_dimension_numbers<[2], [2], [1], [1], [0, 0, 0, 1, 1, 1], [0], [0]>} : vector<2x8x8xbf16>, vector<2x8x8xbf16>, vector<2x8x8xf32> -> vector<2x8x8xf32>
    "tpu.trace_stop"() : () -> ()
    %cst_7 = arith.constant dense<0xFF800000> : vector<2x8xf32>
    %15 = vector.multi_reduction <maximumf>, %14, %cst_7 [2] : vector<2x8x8xf32> to vector<2x8xf32>
    %16 = vector.shape_cast %15 : vector<2x8xf32> to vector<2x8x1xf32>
    %17 = vector.broadcast %16 : vector<2x8x1xf32> to vector<2x8x8xf32>
    %18 = arith.subf %14, %17 : vector<2x8x8xf32>
    %19 = math.exp %18 : vector<2x8x8xf32>
    %cst_8 = arith.constant dense<0.000000e+00> : vector<2x8xf32>
    %20 = vector.multi_reduction <add>, %19, %cst_8 [2] : vector<2x8x8xf32> to vector<2x8xf32>
    %21 = vector.shape_cast %20 : vector<2x8xf32> to vector<2x8x1xf32>
    %22 = tpu.reciprocal %21 {approx = true} : vector<2x8x1xf32> -> vector<2x8x1xf32>
    %23 = vector.broadcast %22 : vector<2x8x1xf32> to vector<2x8x8xf32>
    %24 = arith.mulf %19, %23 : vector<2x8x8xf32>
    %25 = arith.truncf %24 : vector<2x8x8xf32> to vector<2x8x8xbf16>
    "tpu.trace_start"() <{level = 10 : i32, message = "bls,bsd->bld"}> : () -> ()
    %cst_9 = arith.constant dense<0.000000e+00> : vector<2x8x8xf32>
    %26 = tpu.matmul %25, %13, %cst_9 {dimension_numbers = #tpu.dot_dimension_numbers<[2], [1], [1], [2], [0, 0, 0, 1, 1, 2], [0], [0]>} : vector<2x8x8xbf16>, vector<2x8x8xbf16>, vector<2x8x8xf32> -> vector<2x8x8xf32>
    "tpu.trace_stop"() : () -> ()
    %27 = arith.truncf %26 : vector<2x8x8xf32> to vector<2x8x8xbf16>
    %28 = vector.extract_strided_slice %10 {offsets = [0, 0, 8], sizes = [2, 8, 8], strides = [1, 1, 1]} : vector<2x8x96xbf16> to vector<2x8x8xbf16>
    %29 = vector.extract_strided_slice %10 {offsets = [0, 0, 40], sizes = [2, 8, 8], strides = [1, 1, 1]} : vector<2x8x96xbf16> to vector<2x8x8xbf16>
    %30 = vector.extract_strided_slice %10 {offsets = [0, 0, 72], sizes = [2, 8, 8], strides = [1, 1, 1]} : vector<2x8x96xbf16> to vector<2x8x8xbf16>
    "tpu.trace_start"() <{level = 10 : i32, message = "bld,bsd->bls"}> : () -> ()
    %cst_10 = arith.constant dense<0.000000e+00> : vector<2x8x8xf32>
    %31 = tpu.matmul %28, %29, %cst_10 {dimension_numbers = #tpu.dot_dimension_numbers<[2], [2], [1], [1], [0, 0, 0, 1, 1, 1], [0], [0]>} : vector<2x8x8xbf16>, vector<2x8x8xbf16>, vector<2x8x8xf32> -> vector<2x8x8xf32>
    "tpu.trace_stop"() : () -> ()
    %cst_11 = arith.constant dense<0xFF800000> : vector<2x8xf32>
    %32 = vector.multi_reduction <maximumf>, %31, %cst_11 [2] : vector<2x8x8xf32> to vector<2x8xf32>
    %33 = vector.shape_cast %32 : vector<2x8xf32> to vector<2x8x1xf32>
    %34 = vector.broadcast %33 : vector<2x8x1xf32> to vector<2x8x8xf32>
    %35 = arith.subf %31, %34 : vector<2x8x8xf32>
    %36 = math.exp %35 : vector<2x8x8xf32>
    %cst_12 = arith.constant dense<0.000000e+00> : vector<2x8xf32>
    %37 = vector.multi_reduction <add>, %36, %cst_12 [2] : vector<2x8x8xf32> to vector<2x8xf32>
    %38 = vector.shape_cast %37 : vector<2x8xf32> to vector<2x8x1xf32>
    %39 = tpu.reciprocal %38 {approx = true} : vector<2x8x1xf32> -> vector<2x8x1xf32>
    %40 = vector.broadcast %39 : vector<2x8x1xf32> to vector<2x8x8xf32>
    %41 = arith.mulf %36, %40 : vector<2x8x8xf32>
    %42 = arith.truncf %41 : vector<2x8x8xf32> to vector<2x8x8xbf16>
    "tpu.trace_start"() <{level = 10 : i32, message = "bls,bsd->bld"}> : () -> ()
    %cst_13 = arith.constant dense<0.000000e+00> : vector<2x8x8xf32>
    %43 = tpu.matmul %42, %30, %cst_13 {dimension_numbers = #tpu.dot_dimension_numbers<[2], [1], [1], [2], [0, 0, 0, 1, 1, 2], [0], [0]>} : vector<2x8x8xbf16>, vector<2x8x8xbf16>, vector<2x8x8xf32> -> vector<2x8x8xf32>
    "tpu.trace_stop"() : () -> ()
    %44 = arith.truncf %43 : vector<2x8x8xf32> to vector<2x8x8xbf16>
    %45 = vector.extract_strided_slice %10 {offsets = [0, 0, 16], sizes = [2, 8, 8], strides = [1, 1, 1]} : vector<2x8x96xbf16> to vector<2x8x8xbf16>
    %46 = vector.extract_strided_slice %10 {offsets = [0, 0, 48], sizes = [2, 8, 8], strides = [1, 1, 1]} : vector<2x8x96xbf16> to vector<2x8x8xbf16>
    %47 = vector.extract_strided_slice %10 {offsets = [0, 0, 80], sizes = [2, 8, 8], strides = [1, 1, 1]} : vector<2x8x96xbf16> to vector<2x8x8xbf16>
    "tpu.trace_start"() <{level = 10 : i32, message = "bld,bsd->bls"}> : () -> ()
    %cst_14 = arith.constant dense<0.000000e+00> : vector<2x8x8xf32>
    %48 = tpu.matmul %45, %46, %cst_14 {dimension_numbers = #tpu.dot_dimension_numbers<[2], [2], [1], [1], [0, 0, 0, 1, 1, 1], [0], [0]>} : vector<2x8x8xbf16>, vector<2x8x8xbf16>, vector<2x8x8xf32> -> vector<2x8x8xf32>
    "tpu.trace_stop"() : () -> ()
    %cst_15 = arith.constant dense<0xFF800000> : vector<2x8xf32>
    %49 = vector.multi_reduction <maximumf>, %48, %cst_15 [2] : vector<2x8x8xf32> to vector<2x8xf32>
    %50 = vector.shape_cast %49 : vector<2x8xf32> to vector<2x8x1xf32>
    %51 = vector.broadcast %50 : vector<2x8x1xf32> to vector<2x8x8xf32>
    %52 = arith.subf %48, %51 : vector<2x8x8xf32>
    %53 = math.exp %52 : vector<2x8x8xf32>
    %cst_16 = arith.constant dense<0.000000e+00> : vector<2x8xf32>
    %54 = vector.multi_reduction <add>, %53, %cst_16 [2] : vector<2x8x8xf32> to vector<2x8xf32>
    %55 = vector.shape_cast %54 : vector<2x8xf32> to vector<2x8x1xf32>
    %56 = tpu.reciprocal %55 {approx = true} : vector<2x8x1xf32> -> vector<2x8x1xf32>
    %57 = vector.broadcast %56 : vector<2x8x1xf32> to vector<2x8x8xf32>
    %58 = arith.mulf %53, %57 : vector<2x8x8xf32>
    %59 = arith.truncf %58 : vector<2x8x8xf32> to vector<2x8x8xbf16>
    "tpu.trace_start"() <{level = 10 : i32, message = "bls,bsd->bld"}> : () -> ()
    %cst_17 = arith.constant dense<0.000000e+00> : vector<2x8x8xf32>
    %60 = tpu.matmul %59, %47, %cst_17 {dimension_numbers = #tpu.dot_dimension_numbers<[2], [1], [1], [2], [0, 0, 0, 1, 1, 2], [0], [0]>} : vector<2x8x8xbf16>, vector<2x8x8xbf16>, vector<2x8x8xf32> -> vector<2x8x8xf32>
    "tpu.trace_stop"() : () -> ()
    %61 = arith.truncf %60 : vector<2x8x8xf32> to vector<2x8x8xbf16>
    %62 = vector.extract_strided_slice %10 {offsets = [0, 0, 24], sizes = [2, 8, 8], strides = [1, 1, 1]} : vector<2x8x96xbf16> to vector<2x8x8xbf16>
    %63 = vector.extract_strided_slice %10 {offsets = [0, 0, 56], sizes = [2, 8, 8], strides = [1, 1, 1]} : vector<2x8x96xbf16> to vector<2x8x8xbf16>
    %64 = vector.extract_strided_slice %10 {offsets = [0, 0, 88], sizes = [2, 8, 8], strides = [1, 1, 1]} : vector<2x8x96xbf16> to vector<2x8x8xbf16>
    "tpu.trace_start"() <{level = 10 : i32, message = "bld,bsd->bls"}> : () -> ()
    %cst_18 = arith.constant dense<0.000000e+00> : vector<2x8x8xf32>
    %65 = tpu.matmul %62, %63, %cst_18 {dimension_numbers = #tpu.dot_dimension_numbers<[2], [2], [1], [1], [0, 0, 0, 1, 1, 1], [0], [0]>} : vector<2x8x8xbf16>, vector<2x8x8xbf16>, vector<2x8x8xf32> -> vector<2x8x8xf32>
    "tpu.trace_stop"() : () -> ()
    %cst_19 = arith.constant dense<0xFF800000> : vector<2x8xf32>
    %66 = vector.multi_reduction <maximumf>, %65, %cst_19 [2] : vector<2x8x8xf32> to vector<2x8xf32>
    %67 = vector.shape_cast %66 : vector<2x8xf32> to vector<2x8x1xf32>
    %68 = vector.broadcast %67 : vector<2x8x1xf32> to vector<2x8x8xf32>
    %69 = arith.subf %65, %68 : vector<2x8x8xf32>
    %70 = math.exp %69 : vector<2x8x8xf32>
    %cst_20 = arith.constant dense<0.000000e+00> : vector<2x8xf32>
    %71 = vector.multi_reduction <add>, %70, %cst_20 [2] : vector<2x8x8xf32> to vector<2x8xf32>
    %72 = vector.shape_cast %71 : vector<2x8xf32> to vector<2x8x1xf32>
    %73 = tpu.reciprocal %72 {approx = true} : vector<2x8x1xf32> -> vector<2x8x1xf32>
    %74 = vector.broadcast %73 : vector<2x8x1xf32> to vector<2x8x8xf32>
    %75 = arith.mulf %70, %74 : vector<2x8x8xf32>
    %76 = arith.truncf %75 : vector<2x8x8xf32> to vector<2x8x8xbf16>
    "tpu.trace_start"() <{level = 10 : i32, message = "bls,bsd->bld"}> : () -> ()
    %cst_21 = arith.constant dense<0.000000e+00> : vector<2x8x8xf32>
    %77 = tpu.matmul %76, %64, %cst_21 {dimension_numbers = #tpu.dot_dimension_numbers<[2], [1], [1], [2], [0, 0, 0, 1, 1, 2], [0], [0]>} : vector<2x8x8xbf16>, vector<2x8x8xbf16>, vector<2x8x8xf32> -> vector<2x8x8xf32>
    "tpu.trace_stop"() : () -> ()
    %78 = arith.truncf %77 : vector<2x8x8xf32> to vector<2x8x8xbf16>
    %79 = tpu.concatenate %27, %44, %61, %78 in 2 : vector<2x8x8xbf16>, vector<2x8x8xbf16>, vector<2x8x8xbf16>, vector<2x8x8xbf16> -> vector<2x8x32xbf16>
    %80 = vector.shape_cast %79 : vector<2x8x32xbf16> to vector<16x32xbf16>
    %c0_22 = arith.constant 0 : index
    %c0_23 = arith.constant 0 : index
    %81 = vector.load %arg4[%c0_22, %c0_23] : memref<32x32xbf16, #tpu.memory_space<vmem>>, vector<32x32xbf16>
    %cst_24 = arith.constant dense<0.000000e+00> : vector<16x32xf32>
    %82 = tpu.matmul %80, %81, %cst_24 {dimension_numbers = #tpu.dot_dimension_numbers<[1], [0], [0], [1], [0, 0, 1, 1], [], []>} : vector<16x32xbf16>, vector<32x32xbf16>, vector<16x32xf32> -> vector<16x32xf32>
    %c0_25 = arith.constant 0 : index
    %c0_26 = arith.constant 0 : index
    %83 = vector.load %arg8[%c0_25, %c0_26] : memref<8x32xf32, #tpu.memory_space<vmem>>, vector<1x32xf32>
    %84 = vector.broadcast %83 : vector<1x32xf32> to vector<16x32xf32>
    %85 = arith.addf %82, %84 : vector<16x32xf32>
    %86 = arith.addf %2, %85 : vector<16x32xf32>
    %c2 = arith.constant 2 : index
    %c0_27 = arith.constant 0 : index
    %87 = vector.load %arg8[%c2, %c0_27] : memref<8x32xf32, #tpu.memory_space<vmem>>, vector<1x32xf32>
    %c3 = arith.constant 3 : index
    %c0_28 = arith.constant 0 : index
    %88 = vector.load %arg8[%c3, %c0_28] : memref<8x32xf32, #tpu.memory_space<vmem>>, vector<1x32xf32>
    %cst_29 = arith.constant dense<0.000000e+00> : vector<16xf32>
    %89 = vector.multi_reduction <add>, %86, %cst_29 [1] : vector<16x32xf32> to vector<16xf32>
    %90 = vector.shape_cast %89 : vector<16xf32> to vector<16x1xf32>
    %cst_30 = arith.constant 3.200000e+01 : f32
    %91 = vector.broadcast %cst_30 : f32 to vector<16x1xf32>
    %92 = arith.divf %90, %91 : vector<16x1xf32>
    %93 = vector.broadcast %92 : vector<16x1xf32> to vector<16x32xf32>
    %94 = arith.subf %86, %93 : vector<16x32xf32>
    %95 = arith.mulf %94, %94 : vector<16x32xf32>
    %cst_31 = arith.constant dense<0.000000e+00> : vector<16xf32>
    %96 = vector.multi_reduction <add>, %95, %cst_31 [1] : vector<16x32xf32> to vector<16xf32>
    %97 = vector.shape_cast %96 : vector<16xf32> to vector<16x1xf32>
    %cst_32 = arith.constant 3.200000e+01 : f32
    %98 = vector.broadcast %cst_32 : f32 to vector<16x1xf32>
    %99 = arith.divf %97, %98 : vector<16x1xf32>
    %100 = vector.broadcast %92 : vector<16x1xf32> to vector<16x32xf32>
    %101 = arith.subf %86, %100 : vector<16x32xf32>
    %cst_33 = arith.constant 9.99999974E-6 : f32
    %102 = vector.broadcast %cst_33 : f32 to vector<16x1xf32>
    %103 = arith.addf %99, %102 : vector<16x1xf32>
    %104 = math.rsqrt %103 : vector<16x1xf32>
    %105 = vector.broadcast %104 : vector<16x1xf32> to vector<16x32xf32>
    %106 = arith.mulf %101, %105 : vector<16x32xf32>
    %107 = vector.broadcast %87 : vector<1x32xf32> to vector<16x32xf32>
    %108 = arith.mulf %106, %107 : vector<16x32xf32>
    %109 = vector.broadcast %88 : vector<1x32xf32> to vector<16x32xf32>
    %110 = arith.addf %108, %109 : vector<16x32xf32>
    %111 = arith.truncf %110 : vector<16x32xf32> to vector<16x32xbf16>
    %c0_34 = arith.constant 0 : index
    %c0_35 = arith.constant 0 : index
    %112 = vector.load %arg5[%c0_34, %c0_35] : memref<32x64xbf16, #tpu.memory_space<vmem>>, vector<32x64xbf16>
    %cst_36 = arith.constant dense<0.000000e+00> : vector<16x64xf32>
    %113 = tpu.matmul %111, %112, %cst_36 {dimension_numbers = #tpu.dot_dimension_numbers<[1], [0], [0], [1], [0, 0, 1, 1], [], []>} : vector<16x32xbf16>, vector<32x64xbf16>, vector<16x64xf32> -> vector<16x64xf32>
    %c0_37 = arith.constant 0 : index
    %c0_38 = arith.constant 0 : index
    %114 = vector.load %arg6[%c0_37, %c0_38] : memref<1x64xf32, #tpu.memory_space<vmem>>, vector<1x64xf32>
    %115 = vector.broadcast %114 : vector<1x64xf32> to vector<16x64xf32>
    %116 = arith.addf %113, %115 : vector<16x64xf32>
    %cst_39 = arith.constant 0.000000e+00 : f32
    %117 = vector.broadcast %cst_39 : f32 to vector<16x64xf32>
    %118 = arith.maximumf %116, %117 : vector<16x64xf32>
    %119 = arith.truncf %118 : vector<16x64xf32> to vector<16x64xbf16>
    %c0_40 = arith.constant 0 : index
    %c0_41 = arith.constant 0 : index
    %120 = vector.load %arg7[%c0_40, %c0_41] : memref<64x32xbf16, #tpu.memory_space<vmem>>, vector<64x32xbf16>
    %cst_42 = arith.constant dense<0.000000e+00> : vector<16x32xf32>
    %121 = tpu.matmul %119, %120, %cst_42 {dimension_numbers = #tpu.dot_dimension_numbers<[1], [0], [0], [1], [0, 0, 1, 1], [], []>} : vector<16x64xbf16>, vector<64x32xbf16>, vector<16x32xf32> -> vector<16x32xf32>
    %c1 = arith.constant 1 : index
    %c0_43 = arith.constant 0 : index
    %122 = vector.load %arg8[%c1, %c0_43] : memref<8x32xf32, #tpu.memory_space<vmem>>, vector<1x32xf32>
    %123 = vector.broadcast %122 : vector<1x32xf32> to vector<16x32xf32>
    %124 = arith.addf %121, %123 : vector<16x32xf32>
    %125 = arith.addf %110, %124 : vector<16x32xf32>
    %c4 = arith.constant 4 : index
    %c0_44 = arith.constant 0 : index
    %126 = vector.load %arg8[%c4, %c0_44] : memref<8x32xf32, #tpu.memory_space<vmem>>, vector<1x32xf32>
    %c5 = arith.constant 5 : index
    %c0_45 = arith.constant 0 : index
    %127 = vector.load %arg8[%c5, %c0_45] : memref<8x32xf32, #tpu.memory_space<vmem>>, vector<1x32xf32>
    %cst_46 = arith.constant dense<0.000000e+00> : vector<16xf32>
    %128 = vector.multi_reduction <add>, %125, %cst_46 [1] : vector<16x32xf32> to vector<16xf32>
    %129 = vector.shape_cast %128 : vector<16xf32> to vector<16x1xf32>
    %cst_47 = arith.constant 3.200000e+01 : f32
    %130 = vector.broadcast %cst_47 : f32 to vector<16x1xf32>
    %131 = arith.divf %129, %130 : vector<16x1xf32>
    %132 = vector.broadcast %131 : vector<16x1xf32> to vector<16x32xf32>
    %133 = arith.subf %125, %132 : vector<16x32xf32>
    %134 = arith.mulf %133, %133 : vector<16x32xf32>
    %cst_48 = arith.constant dense<0.000000e+00> : vector<16xf32>
    %135 = vector.multi_reduction <add>, %134, %cst_48 [1] : vector<16x32xf32> to vector<16xf32>
    %136 = vector.shape_cast %135 : vector<16xf32> to vector<16x1xf32>
    %cst_49 = arith.constant 3.200000e+01 : f32
    %137 = vector.broadcast %cst_49 : f32 to vector<16x1xf32>
    %138 = arith.divf %136, %137 : vector<16x1xf32>
    %139 = vector.broadcast %131 : vector<16x1xf32> to vector<16x32xf32>
    %140 = arith.subf %125, %139 : vector<16x32xf32>
    %cst_50 = arith.constant 9.99999974E-6 : f32
    %141 = vector.broadcast %cst_50 : f32 to vector<16x1xf32>
    %142 = arith.addf %138, %141 : vector<16x1xf32>
    %143 = math.rsqrt %142 : vector<16x1xf32>
    %144 = vector.broadcast %143 : vector<16x1xf32> to vector<16x32xf32>
    %145 = arith.mulf %140, %144 : vector<16x32xf32>
    %146 = vector.broadcast %126 : vector<1x32xf32> to vector<16x32xf32>
    %147 = arith.mulf %145, %146 : vector<16x32xf32>
    %148 = vector.broadcast %127 : vector<1x32xf32> to vector<16x32xf32>
    %149 = arith.addf %147, %148 : vector<16x32xf32>
    %150 = vector.shape_cast %149 : vector<16x32xf32> to vector<2x8x32xf32>
    %151 = tpu.transpose %150, [1, 0, 2] : vector<2x8x32xf32> -> vector<8x2x32xf32>
    %c0_51 = arith.constant 0 : index
    %c0_52 = arith.constant 0 : index
    %c0_53 = arith.constant 0 : index
    %152 = vector.load %arg9[%c0_51, %c0_52, %c0_53] : memref<8x2x32xf32, #tpu.memory_space<vmem>>, vector<8x2x32xf32>
    tpu.vector_store %arg9[%c0_51, %c0_52, %c0_53], %151 {strides = array<i32>} : memref<8x2x32xf32, #tpu.memory_space<vmem>>, vector<8x2x32xf32>,
    return
  }
  func.func @transform_0(%arg0: i32) -> (i32, i32, i32) {
    %c0_i32 = arith.constant 0 : i32
    %c0_i32_0 = arith.constant 0 : i32
    %c0_i32_1 = arith.constant 0 : i32
    return %c0_i32, %arg0, %c0_i32_0 : i32, i32, i32
  }
  func.func @transform_1(%arg0: i32) -> (i32, i32) {
    %c0_i32 = arith.constant 0 : i32
    %c0_i32_0 = arith.constant 0 : i32
    %c0_i32_1 = arith.constant 0 : i32
    return %c0_i32, %c0_i32_0 : i32, i32
  }
  func.func @transform_2(%arg0: i32) -> (i32, i32) {
    %c0_i32 = arith.constant 0 : i32
    %c0_i32_0 = arith.constant 0 : i32
    %c0_i32_1 = arith.constant 0 : i32
    return %c0_i32, %c0_i32_0 : i32, i32
  }
  func.func @transform_3(%arg0: i32) -> (i32, i32) {
    %c0_i32 = arith.constant 0 : i32
    %c0_i32_0 = arith.constant 0 : i32
    %c0_i32_1 = arith.constant 0 : i32
    return %c0_i32, %c0_i32_0 : i32, i32
  }
  func.func @transform_4(%arg0: i32) -> (i32, i32) {
    %c0_i32 = arith.constant 0 : i32
    %c0_i32_0 = arith.constant 0 : i32
    %c0_i32_1 = arith.constant 0 : i32
    return %c0_i32, %c0_i32_0 : i32, i32
  }
  func.func @transform_5(%arg0: i32) -> (i32, i32) {
    %c0_i32 = arith.constant 0 : i32
    %c0_i32_0 = arith.constant 0 : i32
    %c0_i32_1 = arith.constant 0 : i32
    return %c0_i32, %c0_i32_0 : i32, i32
  }
  func.func @transform_6(%arg0: i32) -> (i32, i32) {
    %c0_i32 = arith.constant 0 : i32
    %c0_i32_0 = arith.constant 0 : i32
    %c0_i32_1 = arith.constant 0 : i32
    return %c0_i32, %c0_i32_0 : i32, i32
  }
  func.func @transform_7(%arg0: i32) -> (i32, i32) {
    %c0_i32 = arith.constant 0 : i32
    %c0_i32_0 = arith.constant 0 : i32
    %c0_i32_1 = arith.constant 0 : i32
    return %c0_i32, %c0_i32_0 : i32, i32
  }
  func.func @transform_8(%arg0: i32) -> (i32, i32, i32) {
    %c0_i32 = arith.constant 0 : i32
    %c0_i32_0 = arith.constant 0 : i32
    %c0_i32_1 = arith.constant 0 : i32
    return %c0_i32, %arg0, %c0_i32_0 : i32, i32, i32
  }
}

module attributes {stable_mosaic.version = 11 : i64} {
  func.func @_encoder_layer_kernel(%arg0: i32, %arg1: memref<8x2x32xf32, #tpu.memory_space<vmem>>, %arg2: memref<32x96xbf16, #tpu.memory_space<vmem>>, %arg3: memref<1x96xf32, #tpu.memory_space<vmem>>, %arg4: memref<32x32xbf16, #tpu.memory_space<vmem>>, %arg5: memref<32x64xbf16, #tpu.memory_space<vmem>>, %arg6: memref<1x64xf32, #tpu.memory_space<vmem>>, %arg7: memref<64x32xbf16, #tpu.memory_space<vmem>>, %arg8: memref<8x32xf32, #tpu.memory_space<vmem>>, %arg9: memref<8x2x32xf32, #tpu.memory_space<vmem>>) attributes {dimension_semantics = [#tpu.dimension_semantics<parallel>], iteration_bounds = array<i64: 1>, scalar_prefetch = 0 : i64, scratch_operands = 0 : i64, tpu.core_type = #tpu.core_type<tc>, window_params = [{transform_indices = @transform_0, window_bounds = array<i64: 8, 2, 32>}, {pipeline_mode = #tpu.pipeline_mode<synchronous>, transform_indices = @transform_1, window_bounds = array<i64: 32, 96>}, {pipeline_mode = #tpu.pipeline_mode<synchronous>, transform_indices = @transform_2, window_bounds = array<i64: 1, 96>}, {pipeline_mode = #tpu.pipeline_mode<synchronous>, transform_indices = @transform_3, window_bounds = array<i64: 32, 32>}, {pipeline_mode = #tpu.pipeline_mode<synchronous>, transform_indices = @transform_4, window_bounds = array<i64: 32, 64>}, {pipeline_mode = #tpu.pipeline_mode<synchronous>, transform_indices = @transform_5, window_bounds = array<i64: 1, 64>}, {pipeline_mode = #tpu.pipeline_mode<synchronous>, transform_indices = @transform_6, window_bounds = array<i64: 64, 32>}, {pipeline_mode = #tpu.pipeline_mode<synchronous>, transform_indices = @transform_7, window_bounds = array<i64: 8, 32>}, {transform_indices = @transform_8, window_bounds = array<i64: 8, 2, 32>}]} {
    %c0 = arith.constant 0 : index
    %c0_0 = arith.constant 0 : index
    %c0_1 = arith.constant 0 : index
    %0 = vector.load %arg1[%c0, %c0_0, %c0_1] : memref<8x2x32xf32, #tpu.memory_space<vmem>>, vector<8x2x32xf32>
    %1 = tpu.transpose %0, [1, 0, 2] : vector<8x2x32xf32> -> vector<2x8x32xf32>
    %2 = vector.shape_cast %1 : vector<2x8x32xf32> to vector<16x32xf32>
    %3 = arith.truncf %2 : vector<16x32xf32> to vector<16x32xbf16>
    %c0_2 = arith.constant 0 : index
    %c0_3 = arith.constant 0 : index
    %4 = vector.load %arg2[%c0_2, %c0_3] : memref<32x96xbf16, #tpu.memory_space<vmem>>, vector<32x96xbf16>
    %cst = arith.constant dense<0.000000e+00> : vector<16x96xf32>
    %5 = tpu.matmul %3, %4, %cst {dimension_numbers = #tpu.dot_dimension_numbers<[1], [0], [0], [1], [0, 0, 1, 1], [], []>} : vector<16x32xbf16>, vector<32x96xbf16>, vector<16x96xf32> -> vector<16x96xf32>
    %c0_4 = arith.constant 0 : index
    %c0_5 = arith.constant 0 : index
    %6 = vector.load %arg3[%c0_4, %c0_5] : memref<1x96xf32, #tpu.memory_space<vmem>>, vector<1x96xf32>
    %7 = vector.broadcast %6 : vector<1x96xf32> to vector<16x96xf32>
    %8 = arith.addf %5, %7 : vector<16x96xf32>
    %9 = arith.truncf %8 : vector<16x96xf32> to vector<16x96xbf16>
    %10 = vector.shape_cast %9 : vector<16x96xbf16> to vector<2x8x96xbf16>
    %11 = vector.extract_strided_slice %10 {offsets = [0, 0, 0], sizes = [2, 8, 8], strides = [1, 1, 1]} : vector<2x8x96xbf16> to vector<2x8x8xbf16>
    %12 = vector.extract_strided_slice %10 {offsets = [0, 0, 32], sizes = [2, 8, 8], strides = [1, 1, 1]} : vector<2x8x96xbf16> to vector<2x8x8xbf16>
    %13 = vector.extract_strided_slice %10 {offsets = [0, 0, 64], sizes = [2, 8, 8], strides = [1, 1, 1]} : vector<2x8x96xbf16> to vector<2x8x8xbf16>
    "tpu.trace_start"() <{level = 10 : i32, message = "bld,bsd->bls"}> : () -> ()
    %cst_6 = arith.constant dense<0.000000e+00> : vector<2x8x8xf32>
    %14 = tpu.matmul %11, %12, %cst_6 {dimension_numbers = #tpu.dot_dimension_numbers<[2], [2], [1], [1], [0, 0, 0, 1, 1, 1], [0], [0]>} : vector<2x8x8xbf16>, vector<2x8x8xbf16>, vector<2x8x8xf32> -> vector<2x8x8xf32>
    "tpu.trace_stop"() : () -> ()
    %cst_7 = arith.constant dense<0xFF800000> : vector<2x8xf32>
    %15 = vector.multi_reduction <maximumf>, %14, %cst_7 [2] : vector<2x8x8xf32> to vector<2x8xf32>
    %16 = vector.shape_cast %15 : vector<2x8xf32> to vector<2x8x1xf32>
    %17 = vector.broadcast %16 : vector<2x8x1xf32> to vector<2x8x8xf32>
    %18 = arith.subf %14, %17 : vector<2x8x8xf32>
    %19 = math.exp %18 : vector<2x8x8xf32>
    %cst_8 = arith.constant dense<0.000000e+00> : vector<2x8xf32>
    %20 = vector.multi_reduction <add>, %19, %cst_8 [2] : vector<2x8x8xf32> to vector<2x8xf32>
    %21 = vector.shape_cast %20 : vector<2x8xf32> to vector<2x8x1xf32>
    %22 = tpu.reciprocal %21 {approx = true} : vector<2x8x1xf32> -> vector<2x8x1xf32>
    %23 = vector.broadcast %22 : vector<2x8x1xf32> to vector<2x8x8xf32>
    %24 = arith.mulf %19, %23 : vector<2x8x8xf32>
    %25 = arith.truncf %24 : vector<2x8x8xf32> to vector<2x8x8xbf16>
    "tpu.trace_start"() <{level = 10 : i32, message = "bls,bsd->bld"}> : () -> ()
    %cst_9 = arith.constant dense<0.000000e+00> : vector<2x8x8xf32>
    %26 = tpu.matmul %25, %13, %cst_9 {dimension_numbers = #tpu.dot_dimension_numbers<[2], [1], [1], [2], [0, 0, 0, 1, 1, 2], [0], [0]>} : vector<2x8x8xbf16>, vector<2x8x8xbf16>, vector<2x8x8xf32> -> vector<2x8x8xf32>
    "tpu.trace_stop"() : () -> ()
    %27 = arith.truncf %26 : vector<2x8x8xf32> to vector<2x8x8xbf16>
    %28 = vector.extract_strided_slice %10 {offsets = [0, 0, 8], sizes = [2, 8, 8], strides = [1, 1, 1]} : vector<2x8x96xbf16> to vector<2x8x8xbf16>
    %29 = vector.extract_strided_slice %10 {offsets = [0, 0, 40], sizes = [2, 8, 8], strides = [1, 1, 1]} : vector<2x8x96xbf16> to vector<2x8x8xbf16>
    %30 = vector.extract_strided_slice %10 {offsets = [0, 0, 72], sizes = [2, 8, 8], strides = [1, 1, 1]} : vector<2x8x96xbf16> to vector<2x8x8xbf16>
    "tpu.trace_start"() <{level = 10 : i32, message = "bld,bsd->bls"}> : () -> ()
    %cst_10 = arith.constant dense<0.000000e+00> : vector<2x8x8xf32>
    %31 = tpu.matmul %28, %29, %cst_10 {dimension_numbers = #tpu.dot_dimension_numbers<[2], [2], [1], [1], [0, 0, 0, 1, 1, 1], [0], [0]>} : vector<2x8x8xbf16>, vector<2x8x8xbf16>, vector<2x8x8xf32> -> vector<2x8x8xf32>
    "tpu.trace_stop"() : () -> ()
    %cst_11 = arith.constant dense<0xFF800000> : vector<2x8xf32>
    %32 = vector.multi_reduction <maximumf>, %31, %cst_11 [2] : vector<2x8x8xf32> to vector<2x8xf32>
    %33 = vector.shape_cast %32 : vector<2x8xf32> to vector<2x8x1xf32>
    %34 = vector.broadcast %33 : vector<2x8x1xf32> to vector<2x8x8xf32>
    %35 = arith.subf %31, %34 : vector<2x8x8xf32>
    %36 = math.exp %35 : vector<2x8x8xf32>
    %cst_12 = arith.constant dense<0.000000e+00> : vector<2x8xf32>
    %37 = vector.multi_reduction <add>, %36, %cst_12 [2] : vector<2x8x8xf32> to vector<2x8xf32>
    %38 = vector.shape_cast %37 : vector<2x8xf32> to vector<2x8x1xf32>
    %39 = tpu.reciprocal %38 {approx = true} : vector<2x8x1xf32> -> vector<2x8x1xf32>
    %40 = vector.broadcast %39 : vector<2x8x1xf32> to vector<2x8x8xf32>
    %41 = arith.mulf %36, %40 : vector<2x8x8xf32>
    %42 = arith.truncf %41 : vector<2x8x8xf32> to vector<2x8x8xbf16>
    "tpu.trace_start"() <{level = 10 : i32, message = "bls,bsd->bld"}> : () -> ()
    %cst_13 = arith.constant dense<0.000000e+00> : vector<2x8x8xf32>
    %43 = tpu.matmul %42, %30, %cst_13 {dimension_numbers = #tpu.dot_dimension_numbers<[2], [1], [1], [2], [0, 0, 0, 1, 1, 2], [0], [0]>} : vector<2x8x8xbf16>, vector<2x8x8xbf16>, vector<2x8x8xf32> -> vector<2x8x8xf32>
    "tpu.trace_stop"() : () -> ()
    %44 = arith.truncf %43 : vector<2x8x8xf32> to vector<2x8x8xbf16>
    %45 = vector.extract_strided_slice %10 {offsets = [0, 0, 16], sizes = [2, 8, 8], strides = [1, 1, 1]} : vector<2x8x96xbf16> to vector<2x8x8xbf16>
    %46 = vector.extract_strided_slice %10 {offsets = [0, 0, 48], sizes = [2, 8, 8], strides = [1, 1, 1]} : vector<2x8x96xbf16> to vector<2x8x8xbf16>
    %47 = vector.extract_strided_slice %10 {offsets = [0, 0, 80], sizes = [2, 8, 8], strides = [1, 1, 1]} : vector<2x8x96xbf16> to vector<2x8x8xbf16>
    "tpu.trace_start"() <{level = 10 : i32, message = "bld,bsd->bls"}> : () -> ()
    %cst_14 = arith.constant dense<0.000000e+00> : vector<2x8x8xf32>
    %48 = tpu.matmul %45, %46, %cst_14 {dimension_numbers = #tpu.dot_dimension_numbers<[2], [2], [1], [1], [0, 0, 0, 1, 1, 1], [0], [0]>} : vector<2x8x8xbf16>, vector<2x8x8xbf16>, vector<2x8x8xf32> -> vector<2x8x8xf32>
    "tpu.trace_stop"() : () -> ()
    %cst_15 = arith.constant dense<0xFF800000> : vector<2x8xf32>
    %49 = vector.multi_reduction <maximumf>, %48, %cst_15 [2] : vector<2x8x8xf32> to vector<2x8xf32>
    %50 = vector.shape_cast %49 : vector<2x8xf32> to vector<2x8x1xf32>
    %51 = vector.broadcast %50 : vector<2x8x1xf32> to vector<2x8x8xf32>
    %52 = arith.subf %48, %51 : vector<2x8x8xf32>
    %53 = math.exp %52 : vector<2x8x8xf32>
    %cst_16 = arith.constant dense<0.000000e+00> : vector<2x8xf32>
    %54 = vector.multi_reduction <add>, %53, %cst_16 [2] : vector<2x8x8xf32> to vector<2x8xf32>
    %55 = vector.shape_cast %54 : vector<2x8xf32> to vector<2x8x1xf32>
    %56 = tpu.reciprocal %55 {approx = true} : vector<2x8x1xf32> -> vector<2x8x1xf32>
    %57 = vector.broadcast %56 : vector<2x8x1xf32> to vector<2x8x8xf32>
    %58 = arith.mulf %53, %57 : vector<2x8x8xf32>
    %59 = arith.truncf %58 : vector<2x8x8xf32> to vector<2x8x8xbf16>
    "tpu.trace_start"() <{level = 10 : i32, message = "bls,bsd->bld"}> : () -> ()
    %cst_17 = arith.constant dense<0.000000e+00> : vector<2x8x8xf32>
    %60 = tpu.matmul %59, %47, %cst_17 {dimension_numbers = #tpu.dot_dimension_numbers<[2], [1], [1], [2], [0, 0, 0, 1, 1, 2], [0], [0]>} : vector<2x8x8xbf16>, vector<2x8x8xbf16>, vector<2x8x8xf32> -> vector<2x8x8xf32>
    "tpu.trace_stop"() : () -> ()
    %61 = arith.truncf %60 : vector<2x8x8xf32> to vector<2x8x8xbf16>
    %62 = vector.extract_strided_slice %10 {offsets = [0, 0, 24], sizes = [2, 8, 8], strides = [1, 1, 1]} : vector<2x8x96xbf16> to vector<2x8x8xbf16>
    %63 = vector.extract_strided_slice %10 {offsets = [0, 0, 56], sizes = [2, 8, 8], strides = [1, 1, 1]} : vector<2x8x96xbf16> to vector<2x8x8xbf16>
    %64 = vector.extract_strided_slice %10 {offsets = [0, 0, 88], sizes = [2, 8, 8], strides = [1, 1, 1]} : vector<2x8x96xbf16> to vector<2x8x8xbf16>
    "tpu.trace_start"() <{level = 10 : i32, message = "bld,bsd->bls"}> : () -> ()
    %cst_18 = arith.constant dense<0.000000e+00> : vector<2x8x8xf32>
    %65 = tpu.matmul %62, %63, %cst_18 {dimension_numbers = #tpu.dot_dimension_numbers<[2], [2], [1], [1], [0, 0, 0, 1, 1, 1], [0], [0]>} : vector<2x8x8xbf16>, vector<2x8x8xbf16>, vector<2x8x8xf32> -> vector<2x8x8xf32>
    "tpu.trace_stop"() : () -> ()
    %cst_19 = arith.constant dense<0xFF800000> : vector<2x8xf32>
    %66 = vector.multi_reduction <maximumf>, %65, %cst_19 [2] : vector<2x8x8xf32> to vector<2x8xf32>
    %67 = vector.shape_cast %66 : vector<2x8xf32> to vector<2x8x1xf32>
    %68 = vector.broadcast %67 : vector<2x8x1xf32> to vector<2x8x8xf32>
    %69 = arith.subf %65, %68 : vector<2x8x8xf32>
    %70 = math.exp %69 : vector<2x8x8xf32>
    %cst_20 = arith.constant dense<0.000000e+00> : vector<2x8xf32>
    %71 = vector.multi_reduction <add>, %70, %cst_20 [2] : vector<2x8x8xf32> to vector<2x8xf32>
    %72 = vector.shape_cast %71 : vector<2x8xf32> to vector<2x8x1xf32>
    %73 = tpu.reciprocal %72 {approx = true} : vector<2x8x1xf32> -> vector<2x8x1xf32>
    %74 = vector.broadcast %73 : vector<2x8x1xf32> to vector<2x8x8xf32>
    %75 = arith.mulf %70, %74 : vector<2x8x8xf32>
    %76 = arith.truncf %75 : vector<2x8x8xf32> to vector<2x8x8xbf16>
    "tpu.trace_start"() <{level = 10 : i32, message = "bls,bsd->bld"}> : () -> ()
    %cst_21 = arith.constant dense<0.000000e+00> : vector<2x8x8xf32>
    %77 = tpu.matmul %76, %64, %cst_21 {dimension_numbers = #tpu.dot_dimension_numbers<[2], [1], [1], [2], [0, 0, 0, 1, 1, 2], [0], [0]>} : vector<2x8x8xbf16>, vector<2x8x8xbf16>, vector<2x8x8xf32> -> vector<2x8x8xf32>
    "tpu.trace_stop"() : () -> ()
    %78 = arith.truncf %77 : vector<2x8x8xf32> to vector<2x8x8xbf16>
    %79 = tpu.concatenate %27, %44, %61, %78 in 2 : vector<2x8x8xbf16>, vector<2x8x8xbf16>, vector<2x8x8xbf16>, vector<2x8x8xbf16> -> vector<2x8x32xbf16>
    %80 = vector.shape_cast %79 : vector<2x8x32xbf16> to vector<16x32xbf16>
    %c0_22 = arith.constant 0 : index
    %c0_23 = arith.constant 0 : index
    %81 = vector.load %arg4[%c0_22, %c0_23] : memref<32x32xbf16, #tpu.memory_space<vmem>>, vector<32x32xbf16>
    %cst_24 = arith.constant dense<0.000000e+00> : vector<16x32xf32>
    %82 = tpu.matmul %80, %81, %cst_24 {dimension_numbers = #tpu.dot_dimension_numbers<[1], [0], [0], [1], [0, 0, 1, 1], [], []>} : vector<16x32xbf16>, vector<32x32xbf16>, vector<16x32xf32> -> vector<16x32xf32>
    %c0_25 = arith.constant 0 : index
    %c0_26 = arith.constant 0 : index
    %83 = vector.load %arg8[%c0_25, %c0_26] : memref<8x32xf32, #tpu.memory_space<vmem>>, vector<1x32xf32>
    %84 = vector.broadcast %83 : vector<1x32xf32> to vector<16x32xf32>
    %85 = arith.addf %82, %84 : vector<16x32xf32>
    %86 = arith.addf %2, %85 : vector<16x32xf32>
    %c2 = arith.constant 2 : index
    %c0_27 = arith.constant 0 : index
    %87 = vector.load %arg8[%c2, %c0_27] : memref<8x32xf32, #tpu.memory_space<vmem>>, vector<1x32xf32>
    %c3 = arith.constant 3 : index
    %c0_28 = arith.constant 0 : index
    %88 = vector.load %arg8[%c3, %c0_28] : memref<8x32xf32, #tpu.memory_space<vmem>>, vector<1x32xf32>
    %cst_29 = arith.constant dense<0.000000e+00> : vector<16xf32>
    %89 = vector.multi_reduction <add>, %86, %cst_29 [1] : vector<16x32xf32> to vector<16xf32>
    %90 = vector.shape_cast %89 : vector<16xf32> to vector<16x1xf32>
    %cst_30 = arith.constant 3.200000e+01 : f32
    %91 = vector.broadcast %cst_30 : f32 to vector<16x1xf32>
    %92 = arith.divf %90, %91 : vector<16x1xf32>
    %93 = vector.broadcast %92 : vector<16x1xf32> to vector<16x32xf32>
    %94 = arith.subf %86, %93 : vector<16x32xf32>
    %95 = arith.mulf %94, %94 : vector<16x32xf32>
    %cst_31 = arith.constant dense<0.000000e+00> : vector<16xf32>
    %96 = vector.multi_reduction <add>, %95, %cst_31 [1] : vector<16x32xf32> to vector<16xf32>
    %97 = vector.shape_cast %96 : vector<16xf32> to vector<16x1xf32>
    %cst_32 = arith.constant 3.200000e+01 : f32
    %98 = vector.broadcast %cst_32 : f32 to vector<16x1xf32>
    %99 = arith.divf %97, %98 : vector<16x1xf32>
    %100 = vector.broadcast %92 : vector<16x1xf32> to vector<16x32xf32>
    %101 = arith.subf %86, %100 : vector<16x32xf32>
    %cst_33 = arith.constant 9.99999974E-6 : f32
    %102 = vector.broadcast %cst_33 : f32 to vector<16x1xf32>
    %103 = arith.addf %99, %102 : vector<16x1xf32>
    %104 = math.rsqrt %103 : vector<16x1xf32>
    %105 = vector.broadcast %104 : vector<16x1xf32> to vector<16x32xf32>
    %106 = arith.mulf %101, %105 : vector<16x32xf32>
    %107 = vector.broadcast %87 : vector<1x32xf32> to vector<16x32xf32>
    %108 = arith.mulf %106, %107 : vector<16x32xf32>
    %109 = vector.broadcast %88 : vector<1x32xf32> to vector<16x32xf32>
    %110 = arith.addf %108, %109 : vector<16x32xf32>
    %111 = arith.truncf %110 : vector<16x32xf32> to vector<16x32xbf16>
    %c0_34 = arith.constant 0 : index
    %c0_35 = arith.constant 0 : index
    %112 = vector.load %arg5[%c0_34, %c0_35] : memref<32x64xbf16, #tpu.memory_space<vmem>>, vector<32x64xbf16>
    %cst_36 = arith.constant dense<0.000000e+00> : vector<16x64xf32>
    %113 = tpu.matmul %111, %112, %cst_36 {dimension_numbers = #tpu.dot_dimension_numbers<[1], [0], [0], [1], [0, 0, 1, 1], [], []>} : vector<16x32xbf16>, vector<32x64xbf16>, vector<16x64xf32> -> vector<16x64xf32>
    %c0_37 = arith.constant 0 : index
    %c0_38 = arith.constant 0 : index
    %114 = vector.load %arg6[%c0_37, %c0_38] : memref<1x64xf32, #tpu.memory_space<vmem>>, vector<1x64xf32>
    %115 = vector.broadcast %114 : vector<1x64xf32> to vector<16x64xf32>
    %116 = arith.addf %113, %115 : vector<16x64xf32>
    %cst_39 = arith.constant 0.000000e+00 : f32
    %117 = vector.broadcast %cst_39 : f32 to vector<16x64xf32>
    %118 = arith.maximumf %116, %117 : vector<16x64xf32>
    %119 = arith.truncf %118 : vector<16x64xf32> to vector<16x64xbf16>
    %c0_40 = arith.constant 0 : index
    %c0_41 = arith.constant 0 : index
    %120 = vector.load %arg7[%c0_40, %c0_41] : memref<64x32xbf16, #tpu.memory_space<vmem>>, vector<64x32xbf16>
    %cst_42 = arith.constant dense<0.000000e+00> : vector<16x32xf32>
    %121 = tpu.matmul %119, %120, %cst_42 {dimension_numbers = #tpu.dot_dimension_numbers<[1], [0], [0], [1], [0, 0, 1, 1], [], []>} : vector<16x64xbf16>, vector<64x32xbf16>, vector<16x32xf32> -> vector<16x32xf32>
    %c1 = arith.constant 1 : index
    %c0_43 = arith.constant 0 : index
    %122 = vector.load %arg8[%c1, %c0_43] : memref<8x32xf32, #tpu.memory_space<vmem>>, vector<1x32xf32>
    %123 = vector.broadcast %122 : vector<1x32xf32> to vector<16x32xf32>
    %124 = arith.addf %121, %123 : vector<16x32xf32>
    %125 = arith.addf %110, %124 : vector<16x32xf32>
    %c4 = arith.constant 4 : index
    %c0_44 = arith.constant 0 : index
    %126 = vector.load %arg8[%c4, %c0_44] : memref<8x32xf32, #tpu.memory_space<vmem>>, vector<1x32xf32>
    %c5 = arith.constant 5 : index
    %c0_45 = arith.constant 0 : index
    %127 = vector.load %arg8[%c5, %c0_45] : memref<8x32xf32, #tpu.memory_space<vmem>>, vector<1x32xf32>
    %cst_46 = arith.constant dense<0.000000e+00> : vector<16xf32>
    %128 = vector.multi_reduction <add>, %125, %cst_46 [1] : vector<16x32xf32> to vector<16xf32>
    %129 = vector.shape_cast %128 : vector<16xf32> to vector<16x1xf32>
    %cst_47 = arith.constant 3.200000e+01 : f32
    %130 = vector.broadcast %cst_47 : f32 to vector<16x1xf32>
    %131 = arith.divf %129, %130 : vector<16x1xf32>
    %132 = vector.broadcast %131 : vector<16x1xf32> to vector<16x32xf32>
    %133 = arith.subf %125, %132 : vector<16x32xf32>
    %134 = arith.mulf %133, %133 : vector<16x32xf32>
    %cst_48 = arith.constant dense<0.000000e+00> : vector<16xf32>
    %135 = vector.multi_reduction <add>, %134, %cst_48 [1] : vector<16x32xf32> to vector<16xf32>
    %136 = vector.shape_cast %135 : vector<16xf32> to vector<16x1xf32>
    %cst_49 = arith.constant 3.200000e+01 : f32
    %137 = vector.broadcast %cst_49 : f32 to vector<16x1xf32>
    %138 = arith.divf %136, %137 : vector<16x1xf32>
    %139 = vector.broadcast %131 : vector<16x1xf32> to vector<16x32xf32>
    %140 = arith.subf %125, %139 : vector<16x32xf32>
    %cst_50 = arith.constant 9.99999974E-6 : f32
    %141 = vector.broadcast %cst_50 : f32 to vector<16x1xf32>
    %142 = arith.addf %138, %141 : vector<16x1xf32>
    %143 = math.rsqrt %142 : vector<16x1xf32>
    %144 = vector.broadcast %143 : vector<16x1xf32> to vector<16x32xf32>
    %145 = arith.mulf %140, %144 : vector<16x32xf32>
    %146 = vector.broadcast %126 : vector<1x32xf32> to vector<16x32xf32>
    %147 = arith.mulf %145, %146 : vector<16x32xf32>
    %148 = vector.broadcast %127 : vector<1x32xf32> to vector<16x32xf32>
    %149 = arith.addf %147, %148 : vector<16x32xf32>
    %150 = vector.shape_cast %149 : vector<16x32xf32> to vector<2x8x32xf32>
    %151 = tpu.transpose %150, [1, 0, 2] : vector<2x8x32xf32> -> vector<8x2x32xf32>
    %c0_51 = arith.constant 0 : index
    %c0_52 = arith.constant 0 : index
    %c0_53 = arith.constant 0 : index
    %152 = vector.load %arg9[%c0_51, %c0_52, %c0_53] : memref<8x2x32xf32, #tpu.memory_space<vmem>>, vector<8x2x32xf32>
    tpu.vector_store %arg9[%c0_51, %c0_52, %c0_53], %151 {strides = array<i32>} : memref<8x2x32xf32, #tpu.memory_space<vmem>>, vector<8x2x32xf32>,
    return
  }
  func.func @transform_0(%arg0: i32) -> (i32, i32, i32) {
    %c0_i32 = arith.constant 0 : i32
    %c0_i32_0 = arith.constant 0 : i32
    %c0_i32_1 = arith.constant 0 : i32
    return %c0_i32, %arg0, %c0_i32_0 : i32, i32, i32
  }
  func.func @transform_1(%arg0: i32) -> (i32, i32) {
    %c0_i32 = arith.constant 0 : i32
    %c0_i32_0 = arith.constant 0 : i32
    %c0_i32_1 = arith.constant 0 : i32
    return %c0_i32, %c0_i32_0 : i32, i32
  }
  func.func @transform_2(%arg0: i32) -> (i32, i32) {
    %c0_i32 = arith.constant 0 : i32
    %c0_i32_0 = arith.constant 0 : i32
    %c0_i32_1 = arith.constant 0 : i32
    return %c0_i32, %c0_i32_0 : i32, i32
  }
  func.func @transform_3(%arg0: i32) -> (i32, i32) {
    %c0_i32 = arith.constant 0 : i32
    %c0_i32_0 = arith.constant 0 : i32
    %c0_i32_1 = arith.constant 0 : i32
    return %c0_i32, %c0_i32_0 : i32, i32
  }
  func.func @transform_4(%arg0: i32) -> (i32, i32) {
    %c0_i32 = arith.constant 0 : i32
    %c0_i32_0 = arith.constant 0 : i32
    %c0_i32_1 = arith.constant 0 : i32
    return %c0_i32, %c0_i32_0 : i32, i32
  }
  func.func @transform_5(%arg0: i32) -> (i32, i32) {
    %c0_i32 = arith.constant 0 : i32
    %c0_i32_0 = arith.constant 0 : i32
    %c0_i32_1 = arith.constant 0 : i32
    return %c0_i32, %c0_i32_0 : i32, i32
  }
  func.func @transform_6(%arg0: i32) -> (i32, i32) {
    %c0_i32 = arith.constant 0 : i32
    %c0_i32_0 = arith.constant 0 : i32
    %c0_i32_1 = arith.constant 0 : i32
    return %c0_i32, %c0_i32_0 : i32, i32
  }
  func.func @transform_7(%arg0: i32) -> (i32, i32) {
    %c0_i32 = arith.constant 0 : i32
    %c0_i32_0 = arith.constant 0 : i32
    %c0_i32_1 = arith.constant 0 : i32
    return %c0_i32, %c0_i32_0 : i32, i32
  }
  func.func @transform_8(%arg0: i32) -> (i32, i32, i32) {
    %c0_i32 = arith.constant 0 : i32
    %c0_i32_0 = arith.constant 0 : i32
    %c0_i32_1 = arith.constant 0 : i32
    return %c0_i32, %arg0, %c0_i32_0 : i32, i32, i32
  }
}

module attributes {stable_mosaic.version = 11 : i64} {
  func.func @_encoder_layer_kernel(%arg0: i32, %arg1: memref<16x32xf32, #tpu.memory_space<vmem>>, %arg2: memref<32x96xbf16, #tpu.memory_space<vmem>>, %arg3: memref<1x96xf32, #tpu.memory_space<vmem>>, %arg4: memref<32x32xbf16, #tpu.memory_space<vmem>>, %arg5: memref<32x64xbf16, #tpu.memory_space<vmem>>, %arg6: memref<1x64xf32, #tpu.memory_space<vmem>>, %arg7: memref<64x32xbf16, #tpu.memory_space<vmem>>, %arg8: memref<8x32xf32, #tpu.memory_space<vmem>>, %arg9: memref<16x32xf32, #tpu.memory_space<vmem>>) attributes {dimension_semantics = [#tpu.dimension_semantics<parallel>], iteration_bounds = array<i64: 1>, scalar_prefetch = 0 : i64, scratch_operands = 0 : i64, tpu.core_type = #tpu.core_type<tc>, window_params = [{transform_indices = @transform_0, window_bounds = array<i64: 16, 32>}, {pipeline_mode = #tpu.pipeline_mode<synchronous>, transform_indices = @transform_1, window_bounds = array<i64: 32, 96>}, {pipeline_mode = #tpu.pipeline_mode<synchronous>, transform_indices = @transform_2, window_bounds = array<i64: 1, 96>}, {pipeline_mode = #tpu.pipeline_mode<synchronous>, transform_indices = @transform_3, window_bounds = array<i64: 32, 32>}, {pipeline_mode = #tpu.pipeline_mode<synchronous>, transform_indices = @transform_4, window_bounds = array<i64: 32, 64>}, {pipeline_mode = #tpu.pipeline_mode<synchronous>, transform_indices = @transform_5, window_bounds = array<i64: 1, 64>}, {pipeline_mode = #tpu.pipeline_mode<synchronous>, transform_indices = @transform_6, window_bounds = array<i64: 64, 32>}, {pipeline_mode = #tpu.pipeline_mode<synchronous>, transform_indices = @transform_7, window_bounds = array<i64: 8, 32>}, {transform_indices = @transform_8, window_bounds = array<i64: 16, 32>}]} {
    %c0 = arith.constant 0 : index
    %c0_0 = arith.constant 0 : index
    %0 = vector.load %arg1[%c0, %c0_0] : memref<16x32xf32, #tpu.memory_space<vmem>>, vector<16x32xf32>
    %1 = arith.truncf %0 : vector<16x32xf32> to vector<16x32xbf16>
    %c0_1 = arith.constant 0 : index
    %c0_2 = arith.constant 0 : index
    %2 = vector.load %arg2[%c0_1, %c0_2] : memref<32x96xbf16, #tpu.memory_space<vmem>>, vector<32x96xbf16>
    %cst = arith.constant dense<0.000000e+00> : vector<16x96xf32>
    %3 = tpu.matmul %1, %2, %cst {dimension_numbers = #tpu.dot_dimension_numbers<[1], [0], [0], [1], [0, 0, 1, 1], [], []>} : vector<16x32xbf16>, vector<32x96xbf16>, vector<16x96xf32> -> vector<16x96xf32>
    %c0_3 = arith.constant 0 : index
    %c0_4 = arith.constant 0 : index
    %4 = vector.load %arg3[%c0_3, %c0_4] : memref<1x96xf32, #tpu.memory_space<vmem>>, vector<1x96xf32>
    %5 = vector.broadcast %4 : vector<1x96xf32> to vector<16x96xf32>
    %6 = arith.addf %3, %5 : vector<16x96xf32>
    %7 = arith.truncf %6 : vector<16x96xf32> to vector<16x96xbf16>
    %8 = vector.shape_cast %7 : vector<16x96xbf16> to vector<2x8x96xbf16>
    %9 = vector.extract_strided_slice %8 {offsets = [0, 0, 0], sizes = [2, 8, 8], strides = [1, 1, 1]} : vector<2x8x96xbf16> to vector<2x8x8xbf16>
    %10 = vector.extract_strided_slice %8 {offsets = [0, 0, 32], sizes = [2, 8, 8], strides = [1, 1, 1]} : vector<2x8x96xbf16> to vector<2x8x8xbf16>
    %11 = vector.extract_strided_slice %8 {offsets = [0, 0, 64], sizes = [2, 8, 8], strides = [1, 1, 1]} : vector<2x8x96xbf16> to vector<2x8x8xbf16>
    "tpu.trace_start"() <{level = 10 : i32, message = "bld,bsd->bls"}> : () -> ()
    %cst_5 = arith.constant dense<0.000000e+00> : vector<2x8x8xf32>
    %12 = tpu.matmul %9, %10, %cst_5 {dimension_numbers = #tpu.dot_dimension_numbers<[2], [2], [1], [1], [0, 0, 0, 1, 1, 1], [0], [0]>} : vector<2x8x8xbf16>, vector<2x8x8xbf16>, vector<2x8x8xf32> -> vector<2x8x8xf32>
    "tpu.trace_stop"() : () -> ()
    %cst_6 = arith.constant dense<0xFF800000> : vector<2x8xf32>
    %13 = vector.multi_reduction <maximumf>, %12, %cst_6 [2] : vector<2x8x8xf32> to vector<2x8xf32>
    %14 = vector.shape_cast %13 : vector<2x8xf32> to vector<2x8x1xf32>
    %15 = vector.broadcast %14 : vector<2x8x1xf32> to vector<2x8x8xf32>
    %16 = arith.subf %12, %15 : vector<2x8x8xf32>
    %17 = math.exp %16 : vector<2x8x8xf32>
    %cst_7 = arith.constant dense<0.000000e+00> : vector<2x8xf32>
    %18 = vector.multi_reduction <add>, %17, %cst_7 [2] : vector<2x8x8xf32> to vector<2x8xf32>
    %19 = vector.shape_cast %18 : vector<2x8xf32> to vector<2x8x1xf32>
    %20 = tpu.reciprocal %19 {approx = true} : vector<2x8x1xf32> -> vector<2x8x1xf32>
    %21 = vector.broadcast %20 : vector<2x8x1xf32> to vector<2x8x8xf32>
    %22 = arith.mulf %17, %21 : vector<2x8x8xf32>
    %23 = arith.truncf %22 : vector<2x8x8xf32> to vector<2x8x8xbf16>
    "tpu.trace_start"() <{level = 10 : i32, message = "bls,bsd->bld"}> : () -> ()
    %cst_8 = arith.constant dense<0.000000e+00> : vector<2x8x8xf32>
    %24 = tpu.matmul %23, %11, %cst_8 {dimension_numbers = #tpu.dot_dimension_numbers<[2], [1], [1], [2], [0, 0, 0, 1, 1, 2], [0], [0]>} : vector<2x8x8xbf16>, vector<2x8x8xbf16>, vector<2x8x8xf32> -> vector<2x8x8xf32>
    "tpu.trace_stop"() : () -> ()
    %25 = arith.truncf %24 : vector<2x8x8xf32> to vector<2x8x8xbf16>
    %26 = vector.extract_strided_slice %8 {offsets = [0, 0, 8], sizes = [2, 8, 8], strides = [1, 1, 1]} : vector<2x8x96xbf16> to vector<2x8x8xbf16>
    %27 = vector.extract_strided_slice %8 {offsets = [0, 0, 40], sizes = [2, 8, 8], strides = [1, 1, 1]} : vector<2x8x96xbf16> to vector<2x8x8xbf16>
    %28 = vector.extract_strided_slice %8 {offsets = [0, 0, 72], sizes = [2, 8, 8], strides = [1, 1, 1]} : vector<2x8x96xbf16> to vector<2x8x8xbf16>
    "tpu.trace_start"() <{level = 10 : i32, message = "bld,bsd->bls"}> : () -> ()
    %cst_9 = arith.constant dense<0.000000e+00> : vector<2x8x8xf32>
    %29 = tpu.matmul %26, %27, %cst_9 {dimension_numbers = #tpu.dot_dimension_numbers<[2], [2], [1], [1], [0, 0, 0, 1, 1, 1], [0], [0]>} : vector<2x8x8xbf16>, vector<2x8x8xbf16>, vector<2x8x8xf32> -> vector<2x8x8xf32>
    "tpu.trace_stop"() : () -> ()
    %cst_10 = arith.constant dense<0xFF800000> : vector<2x8xf32>
    %30 = vector.multi_reduction <maximumf>, %29, %cst_10 [2] : vector<2x8x8xf32> to vector<2x8xf32>
    %31 = vector.shape_cast %30 : vector<2x8xf32> to vector<2x8x1xf32>
    %32 = vector.broadcast %31 : vector<2x8x1xf32> to vector<2x8x8xf32>
    %33 = arith.subf %29, %32 : vector<2x8x8xf32>
    %34 = math.exp %33 : vector<2x8x8xf32>
    %cst_11 = arith.constant dense<0.000000e+00> : vector<2x8xf32>
    %35 = vector.multi_reduction <add>, %34, %cst_11 [2] : vector<2x8x8xf32> to vector<2x8xf32>
    %36 = vector.shape_cast %35 : vector<2x8xf32> to vector<2x8x1xf32>
    %37 = tpu.reciprocal %36 {approx = true} : vector<2x8x1xf32> -> vector<2x8x1xf32>
    %38 = vector.broadcast %37 : vector<2x8x1xf32> to vector<2x8x8xf32>
    %39 = arith.mulf %34, %38 : vector<2x8x8xf32>
    %40 = arith.truncf %39 : vector<2x8x8xf32> to vector<2x8x8xbf16>
    "tpu.trace_start"() <{level = 10 : i32, message = "bls,bsd->bld"}> : () -> ()
    %cst_12 = arith.constant dense<0.000000e+00> : vector<2x8x8xf32>
    %41 = tpu.matmul %40, %28, %cst_12 {dimension_numbers = #tpu.dot_dimension_numbers<[2], [1], [1], [2], [0, 0, 0, 1, 1, 2], [0], [0]>} : vector<2x8x8xbf16>, vector<2x8x8xbf16>, vector<2x8x8xf32> -> vector<2x8x8xf32>
    "tpu.trace_stop"() : () -> ()
    %42 = arith.truncf %41 : vector<2x8x8xf32> to vector<2x8x8xbf16>
    %43 = vector.extract_strided_slice %8 {offsets = [0, 0, 16], sizes = [2, 8, 8], strides = [1, 1, 1]} : vector<2x8x96xbf16> to vector<2x8x8xbf16>
    %44 = vector.extract_strided_slice %8 {offsets = [0, 0, 48], sizes = [2, 8, 8], strides = [1, 1, 1]} : vector<2x8x96xbf16> to vector<2x8x8xbf16>
    %45 = vector.extract_strided_slice %8 {offsets = [0, 0, 80], sizes = [2, 8, 8], strides = [1, 1, 1]} : vector<2x8x96xbf16> to vector<2x8x8xbf16>
    "tpu.trace_start"() <{level = 10 : i32, message = "bld,bsd->bls"}> : () -> ()
    %cst_13 = arith.constant dense<0.000000e+00> : vector<2x8x8xf32>
    %46 = tpu.matmul %43, %44, %cst_13 {dimension_numbers = #tpu.dot_dimension_numbers<[2], [2], [1], [1], [0, 0, 0, 1, 1, 1], [0], [0]>} : vector<2x8x8xbf16>, vector<2x8x8xbf16>, vector<2x8x8xf32> -> vector<2x8x8xf32>
    "tpu.trace_stop"() : () -> ()
    %cst_14 = arith.constant dense<0xFF800000> : vector<2x8xf32>
    %47 = vector.multi_reduction <maximumf>, %46, %cst_14 [2] : vector<2x8x8xf32> to vector<2x8xf32>
    %48 = vector.shape_cast %47 : vector<2x8xf32> to vector<2x8x1xf32>
    %49 = vector.broadcast %48 : vector<2x8x1xf32> to vector<2x8x8xf32>
    %50 = arith.subf %46, %49 : vector<2x8x8xf32>
    %51 = math.exp %50 : vector<2x8x8xf32>
    %cst_15 = arith.constant dense<0.000000e+00> : vector<2x8xf32>
    %52 = vector.multi_reduction <add>, %51, %cst_15 [2] : vector<2x8x8xf32> to vector<2x8xf32>
    %53 = vector.shape_cast %52 : vector<2x8xf32> to vector<2x8x1xf32>
    %54 = tpu.reciprocal %53 {approx = true} : vector<2x8x1xf32> -> vector<2x8x1xf32>
    %55 = vector.broadcast %54 : vector<2x8x1xf32> to vector<2x8x8xf32>
    %56 = arith.mulf %51, %55 : vector<2x8x8xf32>
    %57 = arith.truncf %56 : vector<2x8x8xf32> to vector<2x8x8xbf16>
    "tpu.trace_start"() <{level = 10 : i32, message = "bls,bsd->bld"}> : () -> ()
    %cst_16 = arith.constant dense<0.000000e+00> : vector<2x8x8xf32>
    %58 = tpu.matmul %57, %45, %cst_16 {dimension_numbers = #tpu.dot_dimension_numbers<[2], [1], [1], [2], [0, 0, 0, 1, 1, 2], [0], [0]>} : vector<2x8x8xbf16>, vector<2x8x8xbf16>, vector<2x8x8xf32> -> vector<2x8x8xf32>
    "tpu.trace_stop"() : () -> ()
    %59 = arith.truncf %58 : vector<2x8x8xf32> to vector<2x8x8xbf16>
    %60 = vector.extract_strided_slice %8 {offsets = [0, 0, 24], sizes = [2, 8, 8], strides = [1, 1, 1]} : vector<2x8x96xbf16> to vector<2x8x8xbf16>
    %61 = vector.extract_strided_slice %8 {offsets = [0, 0, 56], sizes = [2, 8, 8], strides = [1, 1, 1]} : vector<2x8x96xbf16> to vector<2x8x8xbf16>
    %62 = vector.extract_strided_slice %8 {offsets = [0, 0, 88], sizes = [2, 8, 8], strides = [1, 1, 1]} : vector<2x8x96xbf16> to vector<2x8x8xbf16>
    "tpu.trace_start"() <{level = 10 : i32, message = "bld,bsd->bls"}> : () -> ()
    %cst_17 = arith.constant dense<0.000000e+00> : vector<2x8x8xf32>
    %63 = tpu.matmul %60, %61, %cst_17 {dimension_numbers = #tpu.dot_dimension_numbers<[2], [2], [1], [1], [0, 0, 0, 1, 1, 1], [0], [0]>} : vector<2x8x8xbf16>, vector<2x8x8xbf16>, vector<2x8x8xf32> -> vector<2x8x8xf32>
    "tpu.trace_stop"() : () -> ()
    %cst_18 = arith.constant dense<0xFF800000> : vector<2x8xf32>
    %64 = vector.multi_reduction <maximumf>, %63, %cst_18 [2] : vector<2x8x8xf32> to vector<2x8xf32>
    %65 = vector.shape_cast %64 : vector<2x8xf32> to vector<2x8x1xf32>
    %66 = vector.broadcast %65 : vector<2x8x1xf32> to vector<2x8x8xf32>
    %67 = arith.subf %63, %66 : vector<2x8x8xf32>
    %68 = math.exp %67 : vector<2x8x8xf32>
    %cst_19 = arith.constant dense<0.000000e+00> : vector<2x8xf32>
    %69 = vector.multi_reduction <add>, %68, %cst_19 [2] : vector<2x8x8xf32> to vector<2x8xf32>
    %70 = vector.shape_cast %69 : vector<2x8xf32> to vector<2x8x1xf32>
    %71 = tpu.reciprocal %70 {approx = true} : vector<2x8x1xf32> -> vector<2x8x1xf32>
    %72 = vector.broadcast %71 : vector<2x8x1xf32> to vector<2x8x8xf32>
    %73 = arith.mulf %68, %72 : vector<2x8x8xf32>
    %74 = arith.truncf %73 : vector<2x8x8xf32> to vector<2x8x8xbf16>
    "tpu.trace_start"() <{level = 10 : i32, message = "bls,bsd->bld"}> : () -> ()
    %cst_20 = arith.constant dense<0.000000e+00> : vector<2x8x8xf32>
    %75 = tpu.matmul %74, %62, %cst_20 {dimension_numbers = #tpu.dot_dimension_numbers<[2], [1], [1], [2], [0, 0, 0, 1, 1, 2], [0], [0]>} : vector<2x8x8xbf16>, vector<2x8x8xbf16>, vector<2x8x8xf32> -> vector<2x8x8xf32>
    "tpu.trace_stop"() : () -> ()
    %76 = arith.truncf %75 : vector<2x8x8xf32> to vector<2x8x8xbf16>
    %77 = tpu.concatenate %25, %42, %59, %76 in 2 : vector<2x8x8xbf16>, vector<2x8x8xbf16>, vector<2x8x8xbf16>, vector<2x8x8xbf16> -> vector<2x8x32xbf16>
    %78 = vector.shape_cast %77 : vector<2x8x32xbf16> to vector<16x32xbf16>
    %c0_21 = arith.constant 0 : index
    %c0_22 = arith.constant 0 : index
    %79 = vector.load %arg4[%c0_21, %c0_22] : memref<32x32xbf16, #tpu.memory_space<vmem>>, vector<32x32xbf16>
    %cst_23 = arith.constant dense<0.000000e+00> : vector<16x32xf32>
    %80 = tpu.matmul %78, %79, %cst_23 {dimension_numbers = #tpu.dot_dimension_numbers<[1], [0], [0], [1], [0, 0, 1, 1], [], []>} : vector<16x32xbf16>, vector<32x32xbf16>, vector<16x32xf32> -> vector<16x32xf32>
    %c0_24 = arith.constant 0 : index
    %c0_25 = arith.constant 0 : index
    %81 = vector.load %arg8[%c0_24, %c0_25] : memref<8x32xf32, #tpu.memory_space<vmem>>, vector<1x32xf32>
    %82 = vector.broadcast %81 : vector<1x32xf32> to vector<16x32xf32>
    %83 = arith.addf %80, %82 : vector<16x32xf32>
    %84 = arith.addf %0, %83 : vector<16x32xf32>
    %c2 = arith.constant 2 : index
    %c0_26 = arith.constant 0 : index
    %85 = vector.load %arg8[%c2, %c0_26] : memref<8x32xf32, #tpu.memory_space<vmem>>, vector<1x32xf32>
    %c3 = arith.constant 3 : index
    %c0_27 = arith.constant 0 : index
    %86 = vector.load %arg8[%c3, %c0_27] : memref<8x32xf32, #tpu.memory_space<vmem>>, vector<1x32xf32>
    %cst_28 = arith.constant dense<0.000000e+00> : vector<16xf32>
    %87 = vector.multi_reduction <add>, %84, %cst_28 [1] : vector<16x32xf32> to vector<16xf32>
    %88 = vector.shape_cast %87 : vector<16xf32> to vector<16x1xf32>
    %cst_29 = arith.constant 3.200000e+01 : f32
    %89 = vector.broadcast %cst_29 : f32 to vector<16x1xf32>
    %90 = arith.divf %88, %89 : vector<16x1xf32>
    %91 = vector.broadcast %90 : vector<16x1xf32> to vector<16x32xf32>
    %92 = arith.subf %84, %91 : vector<16x32xf32>
    %93 = arith.mulf %92, %92 : vector<16x32xf32>
    %cst_30 = arith.constant dense<0.000000e+00> : vector<16xf32>
    %94 = vector.multi_reduction <add>, %93, %cst_30 [1] : vector<16x32xf32> to vector<16xf32>
    %95 = vector.shape_cast %94 : vector<16xf32> to vector<16x1xf32>
    %cst_31 = arith.constant 3.200000e+01 : f32
    %96 = vector.broadcast %cst_31 : f32 to vector<16x1xf32>
    %97 = arith.divf %95, %96 : vector<16x1xf32>
    %98 = vector.broadcast %90 : vector<16x1xf32> to vector<16x32xf32>
    %99 = arith.subf %84, %98 : vector<16x32xf32>
    %cst_32 = arith.constant 9.99999974E-6 : f32
    %100 = vector.broadcast %cst_32 : f32 to vector<16x1xf32>
    %101 = arith.addf %97, %100 : vector<16x1xf32>
    %102 = math.rsqrt %101 : vector<16x1xf32>
    %103 = vector.broadcast %102 : vector<16x1xf32> to vector<16x32xf32>
    %104 = arith.mulf %99, %103 : vector<16x32xf32>
    %105 = vector.broadcast %85 : vector<1x32xf32> to vector<16x32xf32>
    %106 = arith.mulf %104, %105 : vector<16x32xf32>
    %107 = vector.broadcast %86 : vector<1x32xf32> to vector<16x32xf32>
    %108 = arith.addf %106, %107 : vector<16x32xf32>
    %109 = arith.truncf %108 : vector<16x32xf32> to vector<16x32xbf16>
    %c0_33 = arith.constant 0 : index
    %c0_34 = arith.constant 0 : index
    %110 = vector.load %arg5[%c0_33, %c0_34] : memref<32x64xbf16, #tpu.memory_space<vmem>>, vector<32x64xbf16>
    %cst_35 = arith.constant dense<0.000000e+00> : vector<16x64xf32>
    %111 = tpu.matmul %109, %110, %cst_35 {dimension_numbers = #tpu.dot_dimension_numbers<[1], [0], [0], [1], [0, 0, 1, 1], [], []>} : vector<16x32xbf16>, vector<32x64xbf16>, vector<16x64xf32> -> vector<16x64xf32>
    %c0_36 = arith.constant 0 : index
    %c0_37 = arith.constant 0 : index
    %112 = vector.load %arg6[%c0_36, %c0_37] : memref<1x64xf32, #tpu.memory_space<vmem>>, vector<1x64xf32>
    %113 = vector.broadcast %112 : vector<1x64xf32> to vector<16x64xf32>
    %114 = arith.addf %111, %113 : vector<16x64xf32>
    %cst_38 = arith.constant 0.000000e+00 : f32
    %115 = vector.broadcast %cst_38 : f32 to vector<16x64xf32>
    %116 = arith.maximumf %114, %115 : vector<16x64xf32>
    %117 = arith.truncf %116 : vector<16x64xf32> to vector<16x64xbf16>
    %c0_39 = arith.constant 0 : index
    %c0_40 = arith.constant 0 : index
    %118 = vector.load %arg7[%c0_39, %c0_40] : memref<64x32xbf16, #tpu.memory_space<vmem>>, vector<64x32xbf16>
    %cst_41 = arith.constant dense<0.000000e+00> : vector<16x32xf32>
    %119 = tpu.matmul %117, %118, %cst_41 {dimension_numbers = #tpu.dot_dimension_numbers<[1], [0], [0], [1], [0, 0, 1, 1], [], []>} : vector<16x64xbf16>, vector<64x32xbf16>, vector<16x32xf32> -> vector<16x32xf32>
    %c1 = arith.constant 1 : index
    %c0_42 = arith.constant 0 : index
    %120 = vector.load %arg8[%c1, %c0_42] : memref<8x32xf32, #tpu.memory_space<vmem>>, vector<1x32xf32>
    %121 = vector.broadcast %120 : vector<1x32xf32> to vector<16x32xf32>
    %122 = arith.addf %119, %121 : vector<16x32xf32>
    %123 = arith.addf %108, %122 : vector<16x32xf32>
    %c4 = arith.constant 4 : index
    %c0_43 = arith.constant 0 : index
    %124 = vector.load %arg8[%c4, %c0_43] : memref<8x32xf32, #tpu.memory_space<vmem>>, vector<1x32xf32>
    %c5 = arith.constant 5 : index
    %c0_44 = arith.constant 0 : index
    %125 = vector.load %arg8[%c5, %c0_44] : memref<8x32xf32, #tpu.memory_space<vmem>>, vector<1x32xf32>
    %cst_45 = arith.constant dense<0.000000e+00> : vector<16xf32>
    %126 = vector.multi_reduction <add>, %123, %cst_45 [1] : vector<16x32xf32> to vector<16xf32>
    %127 = vector.shape_cast %126 : vector<16xf32> to vector<16x1xf32>
    %cst_46 = arith.constant 3.200000e+01 : f32
    %128 = vector.broadcast %cst_46 : f32 to vector<16x1xf32>
    %129 = arith.divf %127, %128 : vector<16x1xf32>
    %130 = vector.broadcast %129 : vector<16x1xf32> to vector<16x32xf32>
    %131 = arith.subf %123, %130 : vector<16x32xf32>
    %132 = arith.mulf %131, %131 : vector<16x32xf32>
    %cst_47 = arith.constant dense<0.000000e+00> : vector<16xf32>
    %133 = vector.multi_reduction <add>, %132, %cst_47 [1] : vector<16x32xf32> to vector<16xf32>
    %134 = vector.shape_cast %133 : vector<16xf32> to vector<16x1xf32>
    %cst_48 = arith.constant 3.200000e+01 : f32
    %135 = vector.broadcast %cst_48 : f32 to vector<16x1xf32>
    %136 = arith.divf %134, %135 : vector<16x1xf32>
    %137 = vector.broadcast %129 : vector<16x1xf32> to vector<16x32xf32>
    %138 = arith.subf %123, %137 : vector<16x32xf32>
    %cst_49 = arith.constant 9.99999974E-6 : f32
    %139 = vector.broadcast %cst_49 : f32 to vector<16x1xf32>
    %140 = arith.addf %136, %139 : vector<16x1xf32>
    %141 = math.rsqrt %140 : vector<16x1xf32>
    %142 = vector.broadcast %141 : vector<16x1xf32> to vector<16x32xf32>
    %143 = arith.mulf %138, %142 : vector<16x32xf32>
    %144 = vector.broadcast %124 : vector<1x32xf32> to vector<16x32xf32>
    %145 = arith.mulf %143, %144 : vector<16x32xf32>
    %146 = vector.broadcast %125 : vector<1x32xf32> to vector<16x32xf32>
    %147 = arith.addf %145, %146 : vector<16x32xf32>
    %c0_50 = arith.constant 0 : index
    %c0_51 = arith.constant 0 : index
    %148 = vector.load %arg9[%c0_50, %c0_51] : memref<16x32xf32, #tpu.memory_space<vmem>>, vector<16x32xf32>
    tpu.vector_store %arg9[%c0_50, %c0_51], %147 {strides = array<i32>} : memref<16x32xf32, #tpu.memory_space<vmem>>, vector<16x32xf32>,
    return
  }
  func.func @transform_0(%arg0: i32) -> (i32, i32) {
    %c0_i32 = arith.constant 0 : i32
    %c0_i32_0 = arith.constant 0 : i32
    return %arg0, %c0_i32 : i32, i32
  }
  func.func @transform_1(%arg0: i32) -> (i32, i32) {
    %c0_i32 = arith.constant 0 : i32
    %c0_i32_0 = arith.constant 0 : i32
    %c0_i32_1 = arith.constant 0 : i32
    return %c0_i32, %c0_i32_0 : i32, i32
  }
  func.func @transform_2(%arg0: i32) -> (i32, i32) {
    %c0_i32 = arith.constant 0 : i32
    %c0_i32_0 = arith.constant 0 : i32
    %c0_i32_1 = arith.constant 0 : i32
    return %c0_i32, %c0_i32_0 : i32, i32
  }
  func.func @transform_3(%arg0: i32) -> (i32, i32) {
    %c0_i32 = arith.constant 0 : i32
    %c0_i32_0 = arith.constant 0 : i32
    %c0_i32_1 = arith.constant 0 : i32
    return %c0_i32, %c0_i32_0 : i32, i32
  }
  func.func @transform_4(%arg0: i32) -> (i32, i32) {
    %c0_i32 = arith.constant 0 : i32
    %c0_i32_0 = arith.constant 0 : i32
    %c0_i32_1 = arith.constant 0 : i32
    return %c0_i32, %c0_i32_0 : i32, i32
  }
  func.func @transform_5(%arg0: i32) -> (i32, i32) {
    %c0_i32 = arith.constant 0 : i32
    %c0_i32_0 = arith.constant 0 : i32
    %c0_i32_1 = arith.constant 0 : i32
    return %c0_i32, %c0_i32_0 : i32, i32
  }
  func.func @transform_6(%arg0: i32) -> (i32, i32) {
    %c0_i32 = arith.constant 0 : i32
    %c0_i32_0 = arith.constant 0 : i32
    %c0_i32_1 = arith.constant 0 : i32
    return %c0_i32, %c0_i32_0 : i32, i32
  }
  func.func @transform_7(%arg0: i32) -> (i32, i32) {
    %c0_i32 = arith.constant 0 : i32
    %c0_i32_0 = arith.constant 0 : i32
    %c0_i32_1 = arith.constant 0 : i32
    return %c0_i32, %c0_i32_0 : i32, i32
  }
  func.func @transform_8(%arg0: i32) -> (i32, i32) {
    %c0_i32 = arith.constant 0 : i32
    %c0_i32_0 = arith.constant 0 : i32
    return %arg0, %c0_i32 : i32, i32
  }
}

</mosaic_0001>

<bundles_post_ra>
// kernel: tpu_custom_call.1
= control target key start
LH: loop header
LB: loop body
LE: loop exit
PB: predicated region body
PF: predicated region fallthrough
CT: control target
= control target key end

     0   :  { %13 = vsyncpa [#allocation3], 0  ;;  %s1523_s0 = inlined_call_operand.vmem [shape: f32[8,2,32], index: 0, kind: input, shape index: {}]   ;;  %s1524_s1 = inlined_call_operand.vmem [shape: bf16[32,96], index: 1, kind: input, shape index: {}]   ;;  %s1525_s2 = inlined_call_operand.vmem [shape: f32[1,96], index: 2, kind: input, shape index: {}]   ;;  %s1526_s3 = inlined_call_operand.vmem [shape: bf16[32,32], index: 3, kind: input, shape index: {}]   ;;  %s1527_s4 = inlined_call_operand.hbm [shape: bf16[32,64], index: 4, kind: input, shape index: {}]   ;;  %s1528_s5 = inlined_call_operand.vmem [shape: f32[1,64], index: 5, kind: input, shape index: {}]   ;;  %s1529_s6 = inlined_call_operand.vmem [shape: bf16[64,32], index: 6, kind: input, shape index: {}]   ;;  %s1530_s7 = inlined_call_operand.hbm [shape: f32[8,32], index: 7, kind: input, shape index: {}]   ;;  %s1531_s8 = inlined_call_operand.hbm [shape: f32[8,2,32], index: 8, kind: output, shape index: {}]  }
   0x1   :  { %14 = vsyncpa [#allocation6], 0 }
   0x2   :  { %15 = vsyncpa [#allocation4], 0  ;;  %s28_s29 = sshll.u32 %s1527_s4, 4  ;;  %s1207_s30 = smov [#allocation2]   ;;  %s29_s29 = int_to_ptr.hbm [resolvable:$true] %s28_s29 }
   0x3   :  { %s30_s9 = sshll.u32 %s1207_s30, 4  ;;  %s46_s12 = sshll.u32 %s1530_s7, 4  ;;  %s31_s9 = int_to_ptr.vmem [resolvable:$true] %s30_s9  ;;  %s47_s12 = int_to_ptr.hbm [resolvable:$true] %s46_s12 }
   0x4   :  { %s1208_s13 = smov 64   ;;  %s1209_s14 = smov 4  }
   0x5   :  { %36 = dma.hbm_to_vmem [thread:$0]  %s29_s29, 256, %s31_s9, [#allocation3], %s1208_s13, %s1208_s13, %s1209_s14  }
   0x6   :  { %s1210_s15 = smov [#allocation5]  }
   0x7   :  { %s48_s16 = sshll.u32 %s1210_s15, 4  ;;  %s49_s16 = int_to_ptr.vmem [resolvable:$true] %s48_s16 }
   0x8   :  { %51 = dma.hbm_to_vmem [thread:$0]  %s47_s12, 128, %s49_s16, [#allocation6]  }
   0x9   :  { %1201 = dma.done.wait [#allocation3], 256  }
   0xa   :  { %1202 = vsyncadd [#allocation3], 4294967040 }
   0xb   :  { %1203 = dma.done.wait [#allocation6], 128  }
   0xc   :  { %1204 = vsyncadd [#allocation6], 4294967168  ;;  %v1211_v0 = vmov 1983009808   ;;  %vm70_vm0 = vcmask 1047556   ;;  %v1047_v2 = vld [vmem:[%s1524_s1 + $0x8] sm:$0xff] }
   0xd   :  { %v73_v1 = vunpack.c.l.s4 %v1211_v0  ;;  %v1046_v3 = vld [vmem:[%s1524_s1] sm:$0xff]  ;;  %141 = vmatpush.bf16.msra.mxu0 %v1047_v2  ;;  %v65_v8 = vld [vmem:[%s1523_s0 + $0x8] sm:$0x3]  ;;  %v66_v9 = vld [vmem:[%s1523_s0 + $0xa] sm:$0x3]  ;;  %vm131_vm1 = vcmask 261120  }
   0xe   :  { %v61_v4 = vld [vmem:[%s1523_s0] sm:$0x3]  ;;  %v62_v5 = vld [vmem:[%s1523_s0 + $0x2] sm:$0x3]  ;;  %v63_v6 = vld [vmem:[%s1523_s0 + $0x4] sm:$0x3] }
   0xf   :  { %v64_v7 = vld [vmem:[%s1523_s0 + $0x6] sm:$0x3]  ;;  %v67_v10 = vld [vmem:[%s1523_s0 + $0xc] sm:$0x3]  ;;  %v1310_v11 = vunpack.c.0.s8 %v73_v1  ;;  %v68_v12 = vld [vmem:[%s1523_s0 + $0xe] sm:$0x3] }
  0x10   :  { %v69_v13 = vrot.slane %v63_v6, 4  ;;  %v76_v14 = vrot.slane %v64_v7, 4  ;;  %v82_v15 = vrot.slane %v67_v10, 4  ;;  %v1212_v16 = vmov 1934713408   ;;  %s1213_s14 = smov 120  }
  0x11   :  { %v97_v17 = vunpack.c.l.s4 %v1212_v16  ;;  %v88_v18 = vrot.slane %v68_v12, 4  ;;  %142 = vmatpush.bf16.msra.mxu0 %v1046_v3  ;;  %v1079_v39 = vld [vmem:[%s1525_s2] ss:$0 sm:$0xff]  ;;  %s1214_s15 = smov 88   ;;  %s1215_s16 = smov 96   ;;  %vm156_vm2 = vcmask 64512  }
  0x12   :  { %v71_v19 = vsel %vm70_vm0, %v69_v13, %v61_v4  ;;  %v77_v20 = vsel %vm70_vm0, %v76_v14, %v62_v5  ;;  %v83_v21 = vsel %vm70_vm0, %v82_v15, %v65_v8  ;;  %s1216_s2 = smov 112   ;;  %s1217_s4 = smov 80   ;;  %vm229_vm3 = vcmask 1043456  }
  0x13   :  { %v75_v22 = vperm.slane %v71_v19, %v1310_v11  ;;  %v81_v23 = vperm.slane %v77_v20, %v1310_v11  ;;  %v89_v24 = vsel %vm70_vm0, %v88_v18, %v66_v9  ;;  %v87_v25 = vperm.slane %v83_v21, %v1310_v11  ;;  %s1218_s17 = smov 72   ;;  %s1219_s7 = smov 104  }
  0x14   :  { %v93_v26 = vperm.slane %v89_v24, %v1310_v11  ;;  %v1323_v27 = vunpack.c.0.s8 %v97_v17  ;;  %s1220_s18 = smov 56   ;;  %s1222_s19 = smov 40   ;;  %vm647_vm4 = vcmask 130048   ;;  %vm652_vm5 = vcmask 195584  }
  0x15   :  { %v94_v28 = vrot.slane %v81_v23, 4  ;;  %s1223_s20 = smov 8   ;;  %s1224_s21 = smov 16   ;;  %vm833_vm13 = vcmask 523264  }
  0x16   :  { %v100_v29 = vrot.slane %v93_v26, 4  ;;  %s1225_s22 = smov 24  }
  0x17   :  { %v95_v30 = vsel %vm70_vm0, %v94_v28, %v75_v22 }
  0x18   :  { %v99_v31 = vperm.slane %v95_v30, %v1323_v27  ;;  %v101_v32 = vsel %vm70_vm0, %v100_v29, %v87_v25 }
  0x19   :  { %v105_v33 = vperm.slane %v101_v32, %v1323_v27 }
  0x1a   :  { %v108_v34 = vrot.slane %v99_v31, 4 }
  0x1b   :  { %v106_v35 = vrot.slane %v105_v33, 4 }
  0x1c   :  { %v1330_v36 = vsel %vm70_vm0, %v105_v33, %v108_v34 }
  0x1d   :  { %v1333_v37 = vsel %vm70_vm0, %v106_v35, %v99_v31 }
  0x1e   :  { %v110_v38 = vpack.c.bf16 %v1330_v36, %v1333_v37 }
  0x20   :  { %994 = vmatmul.msk.bf16.vlgmr.msra.gmra.mxu0 %vm131_vm1, %v110_v38 }
  0x9d   :  { %v144_v40 = vpop.f32.mrf.mxu0 }
  0x9e   :  { %v145_v41 = vadd.f32 %v1079_v39, %v144_v40 }
  0xa0   :  { %v149_v42 = vpack.c.bf16 %v145_v41, %v145_v41 }
  0xa2   :  { %v152_v43 = vunpack.c.l.b16 %v149_v42 }
  0xa4   :  { %v1341_v44 = vpack.c.b16 %v152_v43, %v152_v43 }
  0xa5   :  { %v146_v45 = vpop.f32.mrf.mxu0 }
  0xa6   :  { %v147_v46 = vadd.f32 %v1079_v39, %v146_v45  ;;  %269 = vrot.lane.b32.xlu2 %v1341_v44, %s1213_s14  ;;  %271 = vrot.lane.b32.xlu1 %v1341_v44, %s1214_s15 }
  0xa7   :  { %154 = vrot.lane.b32.xlu0 %v1341_v44, %s1215_s16 }
  0xa8   :  { %v150_v47 = vpack.c.bf16 %v147_v46, %v147_v46 }
  0xaa   :  { %v177_v48 = vunpack.c.l.b16 %v150_v47 }
  0xac   :  { %v1346_v49 = vpack.c.b16 %v177_v48, %v177_v48 }
  0xae   :  { %292 = vrot.lane.b32.xlu2 %v1346_v49, %s1213_s14  ;;  %294 = vrot.lane.b32.xlu1 %v1346_v49, %s1214_s15  ;;  %s972_s15 = sshll.u32 %s1531_s8, 4  ;;  %s1228_s8 = smov 32   ;;  %s973_s15 = int_to_ptr.hbm [resolvable:$true] %s972_s15 }
  0xaf   :  { %179 = vrot.lane.b32.xlu0 %v1346_v49, %s1215_s16  ;;  %s1229_s16 = smov 2  }
  0xb6   :  { %383 = vrot.lane.b32.xlu2 %v1341_v44, %s1216_s2  ;;  %408 = vrot.lane.b32.xlu1 %v1346_v49, %s1217_s4 }
  0xb7   :  { %385 = vrot.lane.b32.xlu0 %v1341_v44, %s1217_s4 }
  0xbe   :  { %522 = vrot.lane.b32.xlu2 %v1346_v49, %s1218_s17  ;;  %499 = vrot.lane.b32.xlu1 %v1341_v44, %s1218_s17 }
  0xbf   :  { %406 = vrot.lane.b32.xlu0 %v1346_v49, %s1216_s2 }
  0xc6   :  { %520 = vrot.lane.b32.xlu1 %v1346_v49, %s1219_s7 }
  0xc7   :  { %497 = vrot.lane.b32.xlu0 %v1341_v44, %s1219_s7 }
 0x100   :  { %v270_v50 = vpop.permute.xlu2 %269 }
 0x108   :  { %v293_v55 = vpop.permute.xlu2 %292 }
 0x110   :  { %v384_v60 = vpop.permute.xlu2 %383 }
 0x118   :  { %v272_v51 = vpop.permute.xlu1 %271  ;;  %v523_v1 = vpop.permute.xlu2 %522 }
 0x119   :  { %v155_v52 = vpop.permute.xlu0 %154  ;;  %v277_v53 = vsel %vm156_vm2, %v272_v51, 0  ;;  %v528_v4 = vsel %vm156_vm2, %v523_v1, 0 }
 0x11a   :  { %v161_v54 = vsel %vm156_vm2, %v155_v52, 0  ;;  %286 = vmatpush.bf16.xpose.msrb.mxu0 %v277_v53 }
 0x11b   :  { %170 = vmatpush.bf16.xpose.msra.mxu1 %v161_v54 }
 0x120   :  { %v295_v56 = vpop.permute.xlu1 %294 }
 0x121   :  { %v180_v57 = vpop.permute.xlu0 %179  ;;  %999 = vmatmul.msk.bf16.vlgmr.msrb.gmra.mxu0 %vm156_vm2, %v270_v50  ;;  %v300_v58 = vsel %vm156_vm2, %v295_v56, 0 }
 0x122   :  { %995 = vmatmul.msk.bf16.vlgmr.msra.gmra.mxu1 %vm156_vm2, %v149_v42  ;;  %v185_v59 = vsel %vm156_vm2, %v180_v57, 0 }
 0x123   :  { %194 = vmatpush.bf16.xpose.msra.mxu2 %v185_v59  ;;  %309 = vmatpush.bf16.xpose.msrb.mxu1 %v300_v58 }
 0x128   :  { %v409_v61 = vpop.permute.xlu1 %408 }
 0x129   :  { %v414_v62 = vsel %vm156_vm2, %v409_v61, 0  ;;  %v386_v63 = vpop.permute.xlu0 %385 }
 0x12a   :  { %v391_v0 = vsel %vm156_vm2, %v386_v63, 0  ;;  %996 = vmatmul.msk.bf16.vlgmr.msra.gmra.mxu2 %vm156_vm2, %v150_v47 }
 0x12b   :  { %423 = vmatpush.bf16.xpose.msra.mxu1 %v414_v62  ;;  %400 = vmatpush.bf16.xpose.msra.mxu0 %v391_v0 }
 0x130   :  { %v500_v2 = vpop.permute.xlu1 %499 }
 0x131   :  { %v505_v3 = vsel %vm156_vm2, %v500_v2, 0  ;;  %v407_v5 = vpop.permute.xlu0 %406 }
 0x132   :  { %1000 = vmatmul.msk.bf16.vlgmr.msrb.gmra.mxu1 %vm156_vm2, %v293_v55  ;;  %1003 = vmatmul.msk.bf16.vlgmr.msra.gmra.mxu0 %vm156_vm2, %v384_v60 }
 0x133   :  { %537 = vmatpush.bf16.xpose.msrb.mxu1 %v528_v4  ;;  %514 = vmatpush.bf16.xpose.msrb.mxu0 %v505_v3 }
 0x138   :  { %v521_v7 = vpop.permute.xlu1 %520 }
 0x139   :  { %v498_v6 = vpop.permute.xlu0 %497 }
 0x142   :  { %1004 = vmatmul.msk.bf16.vlgmr.msra.gmra.mxu1 %vm156_vm2, %v407_v5  ;;  %1007 = vmatmul.msk.bf16.vlgmr.msrb.gmra.mxu0 %vm156_vm2, %v498_v6 }
 0x152   :  { %1008 = vmatmul.msk.bf16.vlgmr.msrb.gmra.mxu1 %vm156_vm2, %v521_v7 }
 0x19e   :  { %v288_v8 = vpop.f32.mrf.mxu0 }
 0x19f   :  { %v172_v9 = vpop.f32.mrf.mxu1  ;;  %v315_v10 = vsel %vm156_vm2, %v288_v8, -inf }
 0x1a0   :  { %316 = vmax.xlane.f32.xlu1 %v315_v10  ;;  %v200_v12 = vsel %vm156_vm2, %v172_v9, -inf }
 0x1a1   :  { %201 = vmax.xlane.f32.xlu2 %v200_v12 }
 0x1a6   :  { %v290_v13 = vpop.f32.mrf.mxu0 }
 0x1a7   :  { %v174_v14 = vpop.f32.mrf.mxu1 }
 0x1ad   :  { %v196_v15 = vpop.f32.mrf.mxu2 }
 0x1ae   :  { %v203_v16 = vsel %vm156_vm2, %v196_v15, -inf }
 0x1af   :  { %v311_v17 = vpop.f32.mrf.mxu1  ;;  %204 = vmax.xlane.f32.xlu0 %v203_v16  ;;  %v1378_v18 = vpop.f32.mrf.mxu0 }
 0x1b0   :  { %v318_v19 = vsel %vm156_vm2, %v311_v17, -inf  ;;  %v429_v32 = vsel %vm156_vm2, %v1378_v18, -inf }
 0x1b1   :  { %319 = vmax.xlane.f32.xlu2 %v318_v19 }
 0x1b5   :  { %v198_v20 = vpop.f32.mrf.mxu2 }
 0x1b7   :  { %v313_v21 = vpop.f32.mrf.mxu1  ;;  %v404_v22 = vpop.f32.mrf.mxu0 }
 0x1b9   :  { %246 = vrot.lane.b32.xlu1 %v1346_v49, %s1208_s13 }
 0x1bf   :  { %v1383_v23 = vpop.f32.mrf.mxu1  ;;  %v1385_v24 = vpop.f32.mrf.mxu0 }
 0x1c0   :  { %v432_v31 = vsel %vm156_vm2, %v1383_v23, -inf  ;;  %v543_v33 = vsel %vm156_vm2, %v1385_v24, -inf }
 0x1c1   :  { %360 = vrot.lane.b32.xlu1 %v1346_v49, %s1220_s18 }
 0x1c3   :  { %339 = vrot.lane.b32.xlu0 %v1341_v44, %s1220_s18 }
 0x1c7   :  { %v427_v25 = vpop.f32.mrf.mxu1  ;;  %v518_v26 = vpop.f32.mrf.mxu0 }
 0x1c9   :  { %224 = vrot.lane.b32.xlu2 %v1341_v44, %s1208_s13  ;;  %s1221_s13 = smov 48  }
 0x1cf   :  { %v539_v28 = vpop.f32.mrf.mxu1 }
 0x1d0   :  { %v546_v30 = vsel %vm156_vm2, %v539_v28, -inf }
 0x1d7   :  { %v541_v29 = vpop.f32.mrf.mxu1 }
 0x1eb   :  { %547 = vmax.xlane.f32.xlu1 %v546_v30 }
 0x1ed   :  { %433 = vmax.xlane.f32.xlu0 %v432_v31 }
 0x1f2   :  { %430 = vmax.xlane.f32.xlu2 %v429_v32 }
 0x1f5   :  { %544 = vmax.xlane.f32.xlu0 %v543_v33 }
 0x213   :  { %v317_v34 = vpop.xlane.xlu1 %316 }
 0x214   :  { %v321_v35 = vsub.f32 %v288_v8, %v317_v34  ;;  %v202_v38 = vpop.xlane.xlu2 %201 }
 0x215   :  { %v206_v39 = vsub.f32 %v172_v9, %v202_v38 }
 0x216   :  { %v323_v40 = vmul.f32 1.442695, %v321_v35 }
 0x217   :  { %v208_v41 = vmul.f32 1.442695, %v206_v39 }
 0x218   :  { %1087 = vpow2.f32 %v323_v40 }
 0x219   :  { %1089 = vpow2.f32 %v208_v41 }
 0x21e   :  { %v1398_v42 = vpop.eup %1087 }
 0x21f   :  { %v1400_v43 = vpop.eup %1089  ;;  %v327_v45 = vsel %vm156_vm2, %v1398_v42, 0.0 }
 0x220   :  { %v212_v46 = vsel %vm156_vm2, %v1400_v43, 0.0  ;;  %328 = vadd.xlane.f32.xlu0 %v327_v45 }
 0x221   :  { %213 = vadd.xlane.f32.xlu1 %v212_v46 }
 0x222   :  { %v205_v47 = vpop.xlane.xlu0 %204 }
 0x223   :  { %v207_v48 = vsub.f32 %v196_v15, %v205_v47 }
 0x224   :  { %v320_v50 = vpop.xlane.xlu2 %319 }
 0x225   :  { %v210_v51 = vmul.f32 1.442695, %v207_v48  ;;  %v322_v52 = vsub.f32 %v311_v17, %v320_v50 }
 0x227   :  { %1091 = vpow2.f32 %v210_v51  ;;  %v325_v53 = vmul.f32 1.442695, %v322_v52 }
 0x229   :  { %1093 = vpow2.f32 %v325_v53 }
 0x22b   :  { %v247_v54 = vpop.permute.xlu1 %246 }
 0x22c   :  { %v225_v55 = vpop.permute.xlu2 %224  ;;  %v252_v56 = vsel %vm229_vm3, %v247_v54, 0 }
 0x22d   :  { %v1407_v57 = vpop.eup %1091  ;;  %v231_v58 = vsel %vm229_vm3, %v225_v55, 0 }
 0x22e   :  { %240 = vmatpush.bf16.msra.mxu3 %v231_v58  ;;  %v215_v59 = vsel %vm156_vm2, %v1407_v57, 0.0 }
 0x22f   :  { %v1412_v60 = vpop.eup %1093  ;;  %216 = vadd.xlane.f32.xlu0 %v215_v59 }
 0x230   :  { %v330_v61 = vsel %vm156_vm2, %v1412_v60, 0.0 }
 0x231   :  { %331 = vadd.xlane.f32.xlu2 %v330_v61 }
 0x232   :  { %261 = vmatpush.bf16.msrb.mxu3 %v252_v56 }
 0x233   :  { %v361_v0 = vpop.permute.xlu1 %360 }
 0x234   :  { %v366_v31 = vsel %vm229_vm3, %v361_v0, 0 }
 0x235   :  { %v340_v62 = vpop.permute.xlu0 %339 }
 0x236   :  { %v345_v63 = vsel %vm229_vm3, %v340_v62, 0 }
 0x237   :  { %354 = vmatpush.bf16.msrb.mxu2 %v345_v63 }
 0x23a   :  { %474 = vrot.lane.b32.xlu1 %v1346_v49, %s1221_s13 }
 0x249   :  { %453 = vrot.lane.b32.xlu2 %v1341_v44, %s1221_s13 }
 0x25e   :  { %v548_v1 = vpop.xlane.xlu1 %547 }
 0x25f   :  { %v550_v2 = vsub.f32 %v539_v28, %v548_v1 }
 0x260   :  { %v434_v3 = vpop.xlane.xlu0 %433 }
 0x261   :  { %v436_v4 = vsub.f32 %v1383_v23, %v434_v3  ;;  %v553_v6 = vmul.f32 1.442695, %v550_v2 }
 0x263   :  { %v439_v5 = vmul.f32 1.442695, %v436_v4 }
 0x265   :  { %1095 = vpow2.f32 %v439_v5  ;;  %v431_v7 = vpop.xlane.xlu2 %430 }
 0x266   :  { %v435_v8 = vsub.f32 %v1378_v18, %v431_v7  ;;  %1097 = vpow2.f32 %v553_v6 }
 0x268   :  { %v437_v9 = vmul.f32 1.442695, %v435_v8  ;;  %v545_v10 = vpop.xlane.xlu0 %544 }
 0x269   :  { %v549_v12 = vsub.f32 %v1385_v24, %v545_v10 }
 0x26a   :  { %1099 = vpow2.f32 %v437_v9 }
 0x26b   :  { %v1096_v13 = vpop.eup %1095  ;;  %v551_v14 = vmul.f32 1.442695, %v549_v12 }
 0x26c   :  { %v444_v15 = vsel %vm156_vm2, %v1096_v13, 0.0  ;;  %v1423_v16 = vpop.eup %1097 }
 0x26d   :  { %1101 = vpow2.f32 %v551_v14  ;;  %445 = vadd.xlane.f32.xlu0 %v444_v15  ;;  %v558_v18 = vsel %vm156_vm2, %v1423_v16, 0.0 }
 0x270   :  { %v1100_v17 = vpop.eup %1099 }
 0x271   :  { %v441_v19 = vsel %vm156_vm2, %v1100_v17, 0.0 }
 0x272   :  { %442 = vadd.xlane.f32.xlu1 %v441_v19  ;;  %559 = vadd.xlane.f32.xlu2 %v558_v18 }
 0x273   :  { %v1102_v20 = vpop.eup %1101 }
 0x274   :  { %v555_v21 = vsel %vm156_vm2, %v1102_v20, 0.0 }
 0x275   :  { %556 = vadd.xlane.f32.xlu0 %v555_v21 }
 0x289   :  { %567 = vrot.lane.b32.xlu0 %v1341_v44, %s1222_s19 }
 0x28b   :  { %588 = vrot.lane.b32.xlu1 %v1346_v49, %s1222_s19 }
 0x293   :  { %v329_v22 = vpop.xlane.xlu0 %328 }
 0x294   :  { %v214_v23 = vpop.xlane.xlu1 %213  ;;  %1103 = vrcp.f32 %v329_v22 }
 0x295   :  { %1105 = vrcp.f32 %v214_v23 }
 0x29a   :  { %v1104_v24 = vpop.eup %1103 }
 0x29b   :  { %v1106_v25 = vpop.eup %1105  ;;  %v335_v26 = vmul.f32 %v1104_v24, %v1398_v42 }
 0x29c   :  { %v220_v28 = vmul.f32 %v1106_v25, %v1400_v43 }
 0x29d   :  { %v337_v29 = vpack.c.bf16 %v335_v26, %v335_v26 }
 0x29e   :  { %v222_v30 = vpack.c.bf16 %v220_v28, %v220_v28 }
 0x29f   :  { %1001 = vmatmul.msk.bf16.vlgmr.msrb.gmra.mxu2 %vm156_vm2, %v337_v29 }
 0x2a0   :  { %997 = vmatmul.msk.bf16.vlgmr.msra.gmra.mxu3 %vm156_vm2, %v222_v30 }
 0x2a1   :  { %375 = vmatpush.bf16.msra.mxu3 %v366_v31 }
 0x2a2   :  { %v217_v44 = vpop.xlane.xlu0 %216 }
 0x2a3   :  { %1107 = vrcp.f32 %v217_v44 }
 0x2a4   :  { %v332_v49 = vpop.xlane.xlu2 %331 }
 0x2a5   :  { %1109 = vrcp.f32 %v332_v49 }
 0x2a9   :  { %v1108_v32 = vpop.eup %1107 }
 0x2aa   :  { %v221_v33 = vmul.f32 %v1108_v32, %v1407_v57 }
 0x2ab   :  { %v1110_v41 = vpop.eup %1109 }
 0x2ac   :  { %v454_v34 = vpop.permute.xlu2 %453  ;;  %v475_v38 = vpop.permute.xlu1 %474  ;;  %v223_v39 = vpack.c.bf16 %v221_v33, %v221_v33  ;;  %v336_v42 = vmul.f32 %v1110_v41, %v1412_v60 }
 0x2ad   :  { %v459_v35 = vsel %vm229_vm3, %v454_v34, 0  ;;  %v480_v40 = vsel %vm229_vm3, %v475_v38, 0  ;;  %v1049_v38 = vld [vmem:[%s1526_s3 + $0x8] sm:$0xff] }
 0x2ae   :  { %468 = vmatpush.bf16.msra.mxu2 %v459_v35  ;;  %v338_v43 = vpack.c.bf16 %v336_v42, %v336_v42  ;;  %689 = vmatpush.bf16.msra.mxu0 %v1049_v38 }
 0x2b0   :  { %998 = vmatmul.msk.bf16.vlgmr.msrb.gmra.mxu3 %vm156_vm2, %v223_v39  ;;  %v1048_v39 = vld [vmem:[%s1526_s3] sm:$0xff] }
 0x2b1   :  { %489 = vmatpush.bf16.msrb.mxu3 %v480_v40 }
 0x2b2   :  { %690 = vmatpush.bf16.msra.mxu0 %v1048_v39 }
 0x2c0   :  { %1002 = vmatmul.msk.bf16.vlgmr.msra.gmra.mxu3 %vm156_vm2, %v338_v43 }
 0x2e0   :  { %v446_v45 = vpop.xlane.xlu0 %445 }
 0x2e1   :  { %1111 = vrcp.f32 %v446_v45 }
 0x2e5   :  { %v443_v46 = vpop.xlane.xlu1 %442  ;;  %v560_v53 = vpop.xlane.xlu2 %559 }
 0x2e6   :  { %1113 = vrcp.f32 %v443_v46 }
 0x2e7   :  { %v1112_v47 = vpop.eup %1111  ;;  %1115 = vrcp.f32 %v560_v53 }
 0x2e8   :  { %v450_v48 = vmul.f32 %v1112_v47, %v1096_v13  ;;  %v557_v55 = vpop.xlane.xlu0 %556 }
 0x2e9   :  { %1117 = vrcp.f32 %v557_v55 }
 0x2ea   :  { %v452_v50 = vpack.c.bf16 %v450_v48, %v450_v48 }
 0x2ec   :  { %1006 = vmatmul.msk.bf16.vlgmr.msrb.gmra.mxu3 %vm156_vm2, %v452_v50  ;;  %v1114_v51 = vpop.eup %1113 }
 0x2ed   :  { %v449_v52 = vmul.f32 %v1114_v51, %v1100_v17  ;;  %v1116_v56 = vpop.eup %1115 }
 0x2ee   :  { %v564_v59 = vmul.f32 %v1116_v56, %v1423_v16 }
 0x2ef   :  { %v451_v54 = vpack.c.bf16 %v449_v52, %v449_v52  ;;  %v1118_v57 = vpop.eup %1117 }
 0x2f0   :  { %v563_v60 = vmul.f32 %v1118_v57, %v1102_v20  ;;  %v566_v0 = vpack.c.bf16 %v564_v59, %v564_v59  ;;  %v1080_v59 = vld [vmem:[#allocation5] ss:$0 sm:$0xff] }
 0x2f1   :  { %1005 = vmatmul.msk.bf16.vlgmr.msra.gmra.mxu2 %vm156_vm2, %v451_v54 }
 0x2f2   :  { %v565_v1 = vpack.c.bf16 %v563_v60, %v563_v60 }
 0x2fb   :  { %v568_v58 = vpop.permute.xlu0 %567 }
 0x2fc   :  { %v573_v61 = vsel %vm229_vm3, %v568_v58, 0 }
 0x2fd   :  { %v589_v62 = vpop.permute.xlu1 %588  ;;  %582 = vmatpush.bf16.msrb.mxu2 %v573_v61 }
 0x2fe   :  { %v594_v63 = vsel %vm229_vm3, %v589_v62, 0 }
 0x2ff   :  { %603 = vmatpush.bf16.msra.mxu3 %v594_v63 }
 0x301   :  { %1009 = vmatmul.msk.bf16.vlgmr.msrb.gmra.mxu2 %vm156_vm2, %v565_v1 }
 0x302   :  { %1010 = vmatmul.msk.bf16.vlgmr.msra.gmra.mxu3 %vm156_vm2, %v566_v0 }
 0x322   :  { %v356_v2 = vpop.f32.mrf.mxu2 }
 0x323   :  { %v242_v3 = vpop.f32.mrf.mxu3  ;;  %v381_v4 = vpack.c.bf16 %v356_v2, %v356_v2 }
 0x324   :  { %v267_v43 = vpack.c.bf16 %v242_v3, %v242_v3 }
 0x325   :  { %v613_v5 = vunpack.c.l.b16 %v381_v4  ;;  %v1226_v4 = vmov 32.0  }
 0x326   :  { %1119 = vrcp.f32 %v1226_v4 }
 0x327   :  { %v615_v6 = vpack.c.b16 %v613_v5, %v613_v5 }
 0x329   :  { %617 = vrot.lane.b32.xlu0 %v615_v6, %s1223_s20 }
 0x32a   :  { %v358_v7 = vpop.f32.mrf.mxu2 }
 0x32b   :  { %v244_v8 = vpop.f32.mrf.mxu3 }
 0x32c   :  { %v1120_v5 = vpop.eup %1119 }
 0x32d   :  { %v708_v6 = vmul.f32 32.0, %v1120_v5  ;;  %vm712_vm6 = vweird.f32 %v1120_v5 }
 0x32f   :  { %v709_v7 = vsub.f32 1.0, %v708_v6 }
 0x331   :  { %v710_v8 = vmul.f32 %v1120_v5, %v709_v7 }
 0x333   :  { %v263_v9 = vpop.f32.mrf.mxu3 }
 0x334   :  { %v268_v47 = vpack.c.bf16 %v263_v9, %v263_v9  ;;  %v711_v9 = vadd.f32 %v1120_v5, %v710_v8 }
 0x33b   :  { %v265_v10 = vpop.f32.mrf.mxu3 }
 0x33c   :  { %v1462_v10 = vsel %vm712_vm6, %v1120_v5, %v711_v9 }
 0x343   :  { %v377_v12 = vpop.f32.mrf.mxu3 }
 0x344   :  { %v382_v13 = vpack.c.bf16 %v377_v12, %v377_v12 }
 0x346   :  { %v614_v14 = vunpack.c.l.b16 %v382_v13 }
 0x348   :  { %v616_v15 = vpack.c.b16 %v614_v14, %v614_v14 }
 0x34a   :  { %619 = vrot.lane.b32.xlu1 %v616_v15, %s1223_s20 }
 0x34b   :  { %v379_v16 = vpop.f32.mrf.mxu3 }
 0x36f   :  { %v491_v17 = vpop.f32.mrf.mxu3 }
 0x370   :  { %v496_v19 = vpack.c.bf16 %v491_v17, %v491_v17 }
 0x372   :  { %v624_v18 = vunpack.c.l.b16 %v496_v19 }
 0x374   :  { %v626_v20 = vpack.c.b16 %v624_v18, %v624_v18  ;;  %v470_v21 = vpop.f32.mrf.mxu2 }
 0x375   :  { %v495_v22 = vpack.c.bf16 %v470_v21, %v470_v21 }
 0x376   :  { %629 = vrot.lane.b32.xlu1 %v626_v20, %s1224_s21  ;;  %v1051_v20 = vld [vmem:[#allocation2 + $0x8] sm:$0xff] }
 0x377   :  { %v493_v23 = vpop.f32.mrf.mxu3  ;;  %v623_v24 = vunpack.c.l.b16 %v495_v22  ;;  %788 = vmatpush.bf16.msra.mxu1 %v1051_v20 }
 0x379   :  { %v625_v25 = vpack.c.b16 %v623_v24, %v623_v24  ;;  %v1050_v24 = vld [vmem:[#allocation2] sm:$0xff] }
 0x37b   :  { %627 = vrot.lane.b32.xlu0 %v625_v25, %s1224_s21  ;;  %789 = vmatpush.bf16.msra.mxu1 %v1050_v24 }
 0x37c   :  { %v472_v26 = vpop.f32.mrf.mxu2 }
 0x384   :  { %v584_v28 = vpop.f32.mrf.mxu2 }
 0x385   :  { %v605_v29 = vpop.f32.mrf.mxu3  ;;  %v609_v30 = vpack.c.bf16 %v584_v28, %v584_v28 }
 0x386   :  { %v610_v31 = vpack.c.bf16 %v605_v29, %v605_v29 }
 0x387   :  { %v633_v44 = vunpack.c.l.b16 %v609_v30 }
 0x388   :  { %v634_v49 = vunpack.c.l.b16 %v610_v31 }
 0x389   :  { %v635_v32 = vpack.c.b16 %v633_v44, %v633_v44 }
 0x38a   :  { %v636_v33 = vpack.c.b16 %v634_v49, %v634_v49 }
 0x38b   :  { %637 = vrot.lane.b32.xlu2 %v635_v32, %s1225_s22 }
 0x38c   :  { %639 = vrot.lane.b32.xlu0 %v636_v33, %s1225_s22  ;;  %v586_v34 = vpop.f32.mrf.mxu2 }
 0x38d   :  { %v607_v35 = vpop.f32.mrf.mxu3 }
 0x39b   :  { %v618_v40 = vpop.permute.xlu0 %617 }
 0x39c   :  { %v643_v45 = vsel %vm156_vm2, %v267_v43, %v618_v40 }
 0x3bc   :  { %v620_v41 = vpop.permute.xlu1 %619 }
 0x3bd   :  { %v646_v51 = vsel %vm156_vm2, %v268_v47, %v620_v41  ;;  %v1081_v41 = vld [vmem:[#allocation5 + $0x2] ss:$0 sm:$0xff] }
 0x3e5   :  { %v638_v50 = vpop.permute.xlu2 %637 }
 0x3e8   :  { %v630_v48 = vpop.permute.xlu1 %629 }
 0x3e9   :  { %v651_v53 = vsel %vm647_vm4, %v646_v51, %v630_v48 }
 0x3ed   :  { %v628_v42 = vpop.permute.xlu0 %627 }
 0x3ee   :  { %v649_v46 = vsel %vm647_vm4, %v643_v45, %v628_v42 }
 0x3ef   :  { %v654_v52 = vsel %vm652_vm5, %v649_v46, %v638_v50  ;;  %v1082_v46 = vld [vmem:[#allocation5 + $0x3] ss:$0 sm:$0xff] }
 0x3f0   :  { %v665_v56 = vunpack.c.l.b16 %v654_v52 }
 0x3fe   :  { %v640_v54 = vpop.permute.xlu0 %639 }
 0x3ff   :  { %v656_v55 = vsel %vm652_vm5, %v651_v53, %v640_v54  ;;  %v1055_v54 = vld [vmem:[%s1529_s6 + $0x18] sm:$0xff]  ;;  %vm957_vm5 = vcmask 254976  }
 0x400   :  { %v666_v57 = vunpack.c.l.b16 %v656_v55  ;;  %841 = vmatpush.bf16.msra.mxu2 %v1055_v54  ;;  %v1054_v55 = vld [vmem:[%s1529_s6 + $0x10] sm:$0xff] }
 0x402   :  { %v667_v58 = vpack.c.b16 %v666_v57, %v665_v56  ;;  %v1053_v56 = vld [vmem:[%s1529_s6 + $0x8] sm:$0xff]  ;;  %v1052_v57 = vld [vmem:[%s1529_s6] sm:$0xff] }
 0x404   :  { %1019 = vmatmul.msk.bf16.vlgmr.msra.gmra.mxu0 %vm131_vm1, %v667_v58  ;;  %842 = vmatpush.bf16.msra.mxu2 %v1054_v55 }
 0x408   :  { %843 = vmatpush.bf16.msra.mxu2 %v1053_v56 }
 0x40c   :  { %844 = vmatpush.bf16.msra.mxu2 %v1052_v57 }
 0x481   :  { %v692_v60 = vpop.f32.mrf.mxu0 }
 0x482   :  { %v693_v61 = vadd.f32 %v1080_v59, %v692_v60 }
 0x484   :  { %v697_v62 = vadd.f32 %v693_v61, %v1333_v37 }
 0x486   :  { %v701_v63 = vsel %vm131_vm1, %v697_v62, 0.0 }
 0x487   :  { %702 = vadd.xlane.f32.xlu1 %v701_v63 }
 0x489   :  { %v694_v0 = vpop.f32.mrf.mxu0 }
 0x48a   :  { %v695_v1 = vadd.f32 %v1080_v59, %v694_v0  ;;  %v1083_v59 = vld [vmem:[%s1528_s5] ss:$0 sm:$0xff]  ;;  %s1227_s5 = smov [#allocation7]  }
 0x48b   :  { %s970_s6 = sshll.u32 %s1227_s5, 4  ;;  %s971_s6 = int_to_ptr.vmem [resolvable:$true] %s970_s6 }
 0x48c   :  { %v698_v2 = vadd.f32 %v695_v1, %v1330_v36 }
 0x48e   :  { %v704_v3 = vsel %vm131_vm1, %v698_v2, 0.0 }
 0x48f   :  { %705 = vadd.xlane.f32.xlu0 %v704_v3 }
 0x4fa   :  { %v703_v37 = vpop.xlane.xlu1 %702 }
 0x4fb   :  { %v714_v12 = vmul.f32 %v1462_v10, %v703_v37 }
 0x4fd   :  { %v716_v13 = vsub.f32 %v697_v62, %v714_v12 }
 0x4ff   :  { %v718_v14 = vmul.f32 %v716_v13, %v716_v13 }
 0x501   :  { %v720_v36 = vsel %vm131_vm1, %v718_v14, 0.0 }
 0x502   :  { %v706_v15 = vpop.xlane.xlu0 %705  ;;  %721 = vadd.xlane.f32.xlu2 %v720_v36 }
 0x503   :  { %v715_v16 = vmul.f32 %v1462_v10, %v706_v15 }
 0x505   :  { %v717_v17 = vsub.f32 %v698_v2, %v715_v16  ;;  %v1084_v2 = vld [vmem:[#allocation5 + $0x1] ss:$0 sm:$0xff] }
 0x507   :  { %v719_v19 = vmul.f32 %v717_v17, %v717_v17 }
 0x509   :  { %v723_v18 = vsel %vm131_vm1, %v719_v19, 0.0 }
 0x50a   :  { %724 = vadd.xlane.f32.xlu1 %v723_v18 }
 0x575   :  { %v722_v21 = vpop.xlane.xlu2 %721 }
 0x576   :  { %v726_v22 = vmul.f32 %v722_v21, %v1462_v10 }
 0x578   :  { %v728_v23 = vadd.f32 1e-05, %v726_v22 }
 0x57a   :  { %1121 = vrsqrt.f32 %v728_v23  ;;  %vm736_vm8 = vweird.f32 %v728_v23 }
 0x57d   :  { %v725_v25 = vpop.xlane.xlu1 %724 }
 0x57e   :  { %v727_v26 = vmul.f32 %v725_v25, %v1462_v10 }
 0x580   :  { %v1122_v28 = vpop.eup %1121  ;;  %v729_v29 = vadd.f32 1e-05, %v727_v26 }
 0x581   :  { %v731_v30 = vmul.f32 %v1122_v28, %v728_v23  ;;  %vm737_vm7 = vweird.f32 %v1122_v28 }
 0x582   :  { %1123 = vrsqrt.f32 %v729_v29  ;;  %vm738_vm9 = vmor %vm736_vm8, %vm737_vm7  ;;  %vm746_vm11 = vweird.f32 %v729_v29 }
 0x583   :  { %v732_v31 = vmul.f32 %v1122_v28, %v731_v30 }
 0x585   :  { %v733_v44 = vmul.f32 0.5, %v732_v31 }
 0x587   :  { %v734_v49 = vsub.f32 1.5, %v733_v44 }
 0x588   :  { %v1124_v32 = vpop.eup %1123 }
 0x589   :  { %v735_v33 = vmul.f32 %v1122_v28, %v734_v49  ;;  %v741_v34 = vmul.f32 %v1124_v32, %v729_v29  ;;  %vm747_vm10 = vweird.f32 %v1124_v32 }
 0x58a   :  { %vm748_vm12 = vmor %vm746_vm11, %vm747_vm10 }
 0x58b   :  { %v742_v35 = vmul.f32 %v1124_v32, %v741_v34  ;;  %v739_v38 = vsel %vm738_vm9, %v1122_v28, %v735_v33  ;;  %v1085_v34 = vld [vmem:[#allocation5 + $0x4] ss:$0 sm:$0xff] }
 0x58c   :  { %v750_v42 = vmul.f32 %v739_v38, %v716_v13 }
 0x58d   :  { %v743_v39 = vmul.f32 0.5, %v742_v35 }
 0x58e   :  { %v753_v47 = vmul.f32 %v1081_v41, %v750_v42 }
 0x58f   :  { %v744_v40 = vsub.f32 1.5, %v743_v39  ;;  %v1086_v39 = vld [vmem:[#allocation5 + $0x5] ss:$0 sm:$0xff] }
 0x590   :  { %v756_v51 = vadd.f32 %v1082_v46, %v753_v47 }
 0x591   :  { %v745_v43 = vmul.f32 %v1124_v32, %v744_v40 }
 0x593   :  { %v749_v45 = vsel %vm748_vm12, %v1124_v32, %v745_v43 }
 0x594   :  { %v751_v48 = vmul.f32 %v749_v45, %v717_v17 }
 0x596   :  { %v754_v50 = vmul.f32 %v1081_v41, %v751_v48 }
 0x598   :  { %v757_v52 = vadd.f32 %v1082_v46, %v754_v50 }
 0x59a   :  { %v758_v53 = vpack.c.bf16 %v757_v52, %v756_v51 }
 0x59c   :  { %1028 = vmatmul.msk.bf16.vlgmr.msra.gmra.mxu1 %vm131_vm1, %v758_v53 }
 0x619   :  { %v791_v58 = vpop.f32.mrf.mxu1 }
 0x61a   :  { %v792_v60 = vadd.f32 %v1083_v59, %v791_v58 }
 0x61c   :  { %v796_v63 = vmax.f32 %v792_v60, 0.0 }
 0x621   :  { %v793_v61 = vpop.f32.mrf.mxu1 }
 0x622   :  { %v794_v62 = vadd.f32 %v1083_v59, %v793_v61 }
 0x624   :  { %v797_v0 = vmax.f32 %v794_v62, 0.0 }
 0x626   :  { %v798_v1 = vpack.c.bf16 %v797_v0, %v796_v63 }
 0x628   :  { %1045 = vmatmul.msk.bf16.vlgmr.msra.gmra.mxu2 %vm833_vm13, %v798_v1 }
 0x6ab   :  { %v846_v3 = vpop.f32.mrf.mxu2 }
 0x6ac   :  { %v847_v4 = vadd.f32 %v1084_v2, %v846_v3 }
 0x6ae   :  { %v851_v5 = vadd.f32 %v847_v4, %v756_v51 }
 0x6b0   :  { %v855_v6 = vsel %vm131_vm1, %v851_v5, 0.0 }
 0x6b1   :  { %856 = vadd.xlane.f32.xlu0 %v855_v6 }
 0x6b3   :  { %v848_v7 = vpop.f32.mrf.mxu2 }
 0x6b4   :  { %v849_v8 = vadd.f32 %v1084_v2, %v848_v7 }
 0x6b6   :  { %v852_v9 = vadd.f32 %v849_v8, %v757_v52 }
 0x6b8   :  { %v858_v37 = vsel %vm131_vm1, %v852_v9, 0.0 }
 0x6b9   :  { %859 = vadd.xlane.f32.xlu1 %v858_v37 }
 0x724   :  { %v857_v12 = vpop.xlane.xlu0 %856 }
 0x725   :  { %v861_v13 = vmul.f32 %v857_v12, %v1462_v10 }
 0x727   :  { %v863_v14 = vsub.f32 %v851_v5, %v861_v13 }
 0x729   :  { %v865_v36 = vmul.f32 %v863_v14, %v863_v14 }
 0x72b   :  { %v867_v15 = vsel %vm131_vm1, %v865_v36, 0.0 }
 0x72c   :  { %v860_v16 = vpop.xlane.xlu1 %859  ;;  %868 = vadd.xlane.f32.xlu0 %v867_v15 }
 0x72d   :  { %v862_v17 = vmul.f32 %v860_v16, %v1462_v10 }
 0x72f   :  { %v864_v19 = vsub.f32 %v852_v9, %v862_v17 }
 0x731   :  { %v866_v18 = vmul.f32 %v864_v19, %v864_v19 }
 0x733   :  { %v870_v20 = vsel %vm131_vm1, %v866_v18, 0.0 }
 0x734   :  { %871 = vadd.xlane.f32.xlu1 %v870_v20 }
 0x79f   :  { %v869_v21 = vpop.xlane.xlu0 %868 }
 0x7a0   :  { %v873_v22 = vmul.f32 %v869_v21, %v1462_v10 }
 0x7a2   :  { %v875_v23 = vadd.f32 1e-05, %v873_v22 }
 0x7a4   :  { %1125 = vrsqrt.f32 %v875_v23  ;;  %vm883_vm15 = vweird.f32 %v875_v23 }
 0x7a7   :  { %v872_v24 = vpop.xlane.xlu1 %871 }
 0x7a8   :  { %v874_v25 = vmul.f32 %v872_v24, %v1462_v10 }
 0x7aa   :  { %v1126_v26 = vpop.eup %1125  ;;  %v876_v28 = vadd.f32 1e-05, %v874_v25 }
 0x7ab   :  { %v878_v29 = vmul.f32 %v1126_v26, %v875_v23  ;;  %vm884_vm14 = vweird.f32 %v1126_v26 }
 0x7ac   :  { %1127 = vrsqrt.f32 %v876_v28  ;;  %vm885_vm1 = vmor %vm883_vm15, %vm884_vm14  ;;  %vm893_vm3 = vweird.f32 %v876_v28 }
 0x7ad   :  { %v879_v30 = vmul.f32 %v1126_v26, %v878_v29 }
 0x7af   :  { %v880_v31 = vmul.f32 0.5, %v879_v30 }
 0x7b1   :  { %v881_v44 = vsub.f32 1.5, %v880_v31 }
 0x7b2   :  { %v1128_v49 = vpop.eup %1127 }
 0x7b3   :  { %v882_v32 = vmul.f32 %v1126_v26, %v881_v44  ;;  %v888_v33 = vmul.f32 %v1128_v49, %v876_v28  ;;  %vm894_vm2 = vweird.f32 %v1128_v49 }
 0x7b4   :  { %vm895_vm4 = vmor %vm893_vm3, %vm894_vm2 }
 0x7b5   :  { %v886_v35 = vsel %vm885_vm1, %v1126_v26, %v882_v32  ;;  %v889_v38 = vmul.f32 %v1128_v49, %v888_v33 }
 0x7b6   :  { %v897_v40 = vmul.f32 %v886_v35, %v863_v14 }
 0x7b7   :  { %v890_v41 = vmul.f32 0.5, %v889_v38 }
 0x7b8   :  { %v900_v10 = vmul.f32 %v1085_v34, %v897_v40 }
 0x7b9   :  { %v891_v42 = vsub.f32 1.5, %v890_v41 }
 0x7ba   :  { %v903_v43 = vadd.f32 %v1086_v39, %v900_v10 }
 0x7bb   :  { %v892_v45 = vmul.f32 %v1128_v49, %v891_v42 }
 0x7bc   :  { %v905_v46 = vrot.slane %v903_v43, 4  ;;  %v910_v51 = vperm.slane %v903_v43, %v1310_v11 }
 0x7bd   :  { %v896_v47 = vsel %vm895_vm4, %v1128_v49, %v892_v45 }
 0x7be   :  { %v898_v48 = vmul.f32 %v896_v47, %v864_v19  ;;  %v906_v50 = vsel %vm70_vm0, 0.0, %v905_v46  ;;  %v927_v55 = vrot.slane %v910_v51, 4 }
 0x7bf   :  { %v914_v54 = vperm.slane %v906_v50, %v1310_v11 }
 0x7c0   :  { %v901_v52 = vmul.f32 %v1085_v34, %v898_v48 }
 0x7c1   :  { %v939_v61 = vrot.slane %v914_v54, 4 }
 0x7c2   :  { %v904_v53 = vadd.f32 %v1086_v39, %v901_v52 }
 0x7c4   :  { %v915_v56 = vrot.slane %v904_v53, 4  ;;  %v920_v57 = vperm.slane %v904_v53, %v1310_v11 }
 0x7c6   :  { %v916_v58 = vsel %vm70_vm0, 0.0, %v915_v56  ;;  %v925_v59 = vrot.slane %v920_v57, 4  ;;  %v928_v60 = vsel %vm70_vm0, %v920_v57, %v927_v55 }
 0x7c7   :  { %v924_v62 = vperm.slane %v916_v58, %v1310_v11  ;;  %v936_v63 = vperm.slane %v928_v60, %v1323_v27 }
 0x7c8   :  { %v926_v0 = vsel %vm70_vm0, %v925_v59, %v910_v51 }
 0x7c9   :  { %v932_v1 = vperm.slane %v926_v0, %v1323_v27  ;;  %v937_v2 = vrot.slane %v924_v62, 4  ;;  %v940_v3 = vsel %vm70_vm0, %v924_v62, %v939_v61  ;;  %v951_v4 = vrot.slane %v936_v63, 4  ;;  %960 = vst.msk [vmem:[#allocation7 + $0x4] sm:$0x3] %vm957_vm5, %v936_v63 }
 0x7ca   :  { %v948_v5 = vperm.slane %v940_v3, %v1323_v27 }
 0x7cb   :  { %v938_v6 = vsel %vm70_vm0, %v937_v2, %v914_v54  ;;  %v949_v7 = vrot.slane %v932_v1, 4  ;;  %v952_v8 = vsel %vm70_vm0, 0.0, %v951_v4  ;;  %958 = vst.msk [vmem:[#allocation7] sm:$0x3] %vm957_vm5, %v932_v1 }
 0x7cc   :  { %v944_v11 = vperm.slane %v938_v6, %v1323_v27  ;;  %v955_v9 = vrot.slane %v948_v5, 4  ;;  %961 = vst.msk [vmem:[#allocation7 + $0x6] sm:$0x3] %vm957_vm5, %v952_v8 }
 0x7cd   :  { %v950_v37 = vsel %vm70_vm0, 0.0, %v949_v7  ;;  %964 = vst.msk [vmem:[#allocation7 + $0xc] sm:$0x3] %vm957_vm5, %v948_v5 }
 0x7ce   :  { %v953_v12 = vrot.slane %v944_v11, 4  ;;  %v956_v13 = vsel %vm70_vm0, 0.0, %v955_v9  ;;  %959 = vst.msk [vmem:[#allocation7 + $0x2] sm:$0x3] %vm957_vm5, %v950_v37 }
 0x7cf   :  { %962 = vst.msk [vmem:[#allocation7 + $0x8] sm:$0x3] %vm957_vm5, %v944_v11 }
 0x7d0   :  { %v954_v14 = vsel %vm70_vm0, 0.0, %v953_v12  ;;  %965 = vst.msk [vmem:[#allocation7 + $0xe] sm:$0x3] %vm957_vm5, %v956_v13 }
 0x7d1   :  { %963 = vst.msk [vmem:[#allocation7 + $0xa] sm:$0x3] %vm957_vm5, %v954_v14 }
 0x7d2   :  { %978 = dma.vmem_to_hbm [thread:$0]  %s971_s6, 256, %s973_s15, [#allocation4], %s1228_s8, %s1228_s8, %s1229_s16  }
 0x7d3   :  { %1205 = dma.done.wait [#allocation4], 256  }
 0x7d4   :  { %1206 = vsyncadd [#allocation4], 4294967040 }
 0x7d5   :  { %983 = vsyncpa [#allocation3], 1 }
 0x7d6   :  { %984 = vsyncpa [#allocation6], 1 }
 0x7d7   :  { %985 = vsyncpa [#allocation4], 1 }

// kernel: tpu_custom_call.1
= control target key start
LH: loop header
LB: loop body
LE: loop exit
PB: predicated region body
PF: predicated region fallthrough
CT: control target
= control target key end

     0   :  { %13 = vsyncpa [#allocation3], 0  ;;  %s1523_s0 = inlined_call_operand.vmem [shape: f32[8,2,32], index: 0, kind: input, shape index: {}]   ;;  %s1524_s1 = inlined_call_operand.vmem [shape: bf16[32,96], index: 1, kind: input, shape index: {}]   ;;  %s1525_s2 = inlined_call_operand.vmem [shape: f32[1,96], index: 2, kind: input, shape index: {}]   ;;  %s1526_s3 = inlined_call_operand.vmem [shape: bf16[32,32], index: 3, kind: input, shape index: {}]   ;;  %s1527_s4 = inlined_call_operand.hbm [shape: bf16[32,64], index: 4, kind: input, shape index: {}]   ;;  %s1528_s5 = inlined_call_operand.vmem [shape: f32[1,64], index: 5, kind: input, shape index: {}]   ;;  %s1529_s6 = inlined_call_operand.vmem [shape: bf16[64,32], index: 6, kind: input, shape index: {}]   ;;  %s1530_s7 = inlined_call_operand.hbm [shape: f32[8,32], index: 7, kind: input, shape index: {}]   ;;  %s1531_s8 = inlined_call_operand.hbm [shape: f32[8,2,32], index: 8, kind: output, shape index: {}]  }
   0x1   :  { %14 = vsyncpa [#allocation6], 0 }
   0x2   :  { %15 = vsyncpa [#allocation4], 0  ;;  %s28_s29 = sshll.u32 %s1527_s4, 4  ;;  %s1207_s30 = smov [#allocation2]   ;;  %s29_s29 = int_to_ptr.hbm [resolvable:$true] %s28_s29 }
   0x3   :  { %s30_s9 = sshll.u32 %s1207_s30, 4  ;;  %s46_s12 = sshll.u32 %s1530_s7, 4  ;;  %s31_s9 = int_to_ptr.vmem [resolvable:$true] %s30_s9  ;;  %s47_s12 = int_to_ptr.hbm [resolvable:$true] %s46_s12 }
   0x4   :  { %s1208_s13 = smov 64   ;;  %s1209_s14 = smov 4  }
   0x5   :  { %36 = dma.hbm_to_vmem [thread:$0]  %s29_s29, 256, %s31_s9, [#allocation3], %s1208_s13, %s1208_s13, %s1209_s14  }
   0x6   :  { %s1210_s15 = smov [#allocation5]  }
   0x7   :  { %s48_s16 = sshll.u32 %s1210_s15, 4  ;;  %s49_s16 = int_to_ptr.vmem [resolvable:$true] %s48_s16 }
   0x8   :  { %51 = dma.hbm_to_vmem [thread:$0]  %s47_s12, 128, %s49_s16, [#allocation6]  }
   0x9   :  { %1201 = dma.done.wait [#allocation3], 256  }
   0xa   :  { %1202 = vsyncadd [#allocation3], 4294967040 }
   0xb   :  { %1203 = dma.done.wait [#allocation6], 128  }
   0xc   :  { %1204 = vsyncadd [#allocation6], 4294967168  ;;  %v1211_v0 = vmov 1983009808   ;;  %vm70_vm0 = vcmask 1047556   ;;  %v1047_v2 = vld [vmem:[%s1524_s1 + $0x8] sm:$0xff] }
   0xd   :  { %v73_v1 = vunpack.c.l.s4 %v1211_v0  ;;  %v1046_v3 = vld [vmem:[%s1524_s1] sm:$0xff]  ;;  %141 = vmatpush.bf16.msra.mxu0 %v1047_v2  ;;  %v65_v8 = vld [vmem:[%s1523_s0 + $0x8] sm:$0x3]  ;;  %v66_v9 = vld [vmem:[%s1523_s0 + $0xa] sm:$0x3]  ;;  %vm131_vm1 = vcmask 261120  }
   0xe   :  { %v61_v4 = vld [vmem:[%s1523_s0] sm:$0x3]  ;;  %v62_v5 = vld [vmem:[%s1523_s0 + $0x2] sm:$0x3]  ;;  %v63_v6 = vld [vmem:[%s1523_s0 + $0x4] sm:$0x3] }
   0xf   :  { %v64_v7 = vld [vmem:[%s1523_s0 + $0x6] sm:$0x3]  ;;  %v67_v10 = vld [vmem:[%s1523_s0 + $0xc] sm:$0x3]  ;;  %v1310_v11 = vunpack.c.0.s8 %v73_v1  ;;  %v68_v12 = vld [vmem:[%s1523_s0 + $0xe] sm:$0x3] }
  0x10   :  { %v69_v13 = vrot.slane %v63_v6, 4  ;;  %v76_v14 = vrot.slane %v64_v7, 4  ;;  %v82_v15 = vrot.slane %v67_v10, 4  ;;  %v1212_v16 = vmov 1934713408   ;;  %s1213_s14 = smov 120  }
  0x11   :  { %v97_v17 = vunpack.c.l.s4 %v1212_v16  ;;  %v88_v18 = vrot.slane %v68_v12, 4  ;;  %142 = vmatpush.bf16.msra.mxu0 %v1046_v3  ;;  %v1079_v39 = vld [vmem:[%s1525_s2] ss:$0 sm:$0xff]  ;;  %s1214_s15 = smov 88   ;;  %s1215_s16 = smov 96   ;;  %vm156_vm2 = vcmask 64512  }
  0x12   :  { %v71_v19 = vsel %vm70_vm0, %v69_v13, %v61_v4  ;;  %v77_v20 = vsel %vm70_vm0, %v76_v14, %v62_v5  ;;  %v83_v21 = vsel %vm70_vm0, %v82_v15, %v65_v8  ;;  %s1216_s2 = smov 112   ;;  %s1217_s4 = smov 80   ;;  %vm229_vm3 = vcmask 1043456  }
  0x13   :  { %v75_v22 = vperm.slane %v71_v19, %v1310_v11  ;;  %v81_v23 = vperm.slane %v77_v20, %v1310_v11  ;;  %v89_v24 = vsel %vm70_vm0, %v88_v18, %v66_v9  ;;  %v87_v25 = vperm.slane %v83_v21, %v1310_v11  ;;  %s1218_s17 = smov 72   ;;  %s1219_s7 = smov 104  }
  0x14   :  { %v93_v26 = vperm.slane %v89_v24, %v1310_v11  ;;  %v1323_v27 = vunpack.c.0.s8 %v97_v17  ;;  %s1220_s18 = smov 56   ;;  %s1222_s19 = smov 40   ;;  %vm647_vm4 = vcmask 130048   ;;  %vm652_vm5 = vcmask 195584  }
  0x15   :  { %v94_v28 = vrot.slane %v81_v23, 4  ;;  %s1223_s20 = smov 8   ;;  %s1224_s21 = smov 16   ;;  %vm833_vm13 = vcmask 523264  }
  0x16   :  { %v100_v29 = vrot.slane %v93_v26, 4  ;;  %s1225_s22 = smov 24  }
  0x17   :  { %v95_v30 = vsel %vm70_vm0, %v94_v28, %v75_v22 }
  0x18   :  { %v99_v31 = vperm.slane %v95_v30, %v1323_v27  ;;  %v101_v32 = vsel %vm70_vm0, %v100_v29, %v87_v25 }
  0x19   :  { %v105_v33 = vperm.slane %v101_v32, %v1323_v27 }
  0x1a   :  { %v108_v34 = vrot.slane %v99_v31, 4 }
  0x1b   :  { %v106_v35 = vrot.slane %v105_v33, 4 }
  0x1c   :  { %v1330_v36 = vsel %vm70_vm0, %v105_v33, %v108_v34 }
  0x1d   :  { %v1333_v37 = vsel %vm70_vm0, %v106_v35, %v99_v31 }
  0x1e   :  { %v110_v38 = vpack.c.bf16 %v1330_v36, %v1333_v37 }
  0x20   :  { %994 = vmatmul.msk.bf16.vlgmr.msra.gmra.mxu0 %vm131_vm1, %v110_v38 }
  0x9d   :  { %v144_v40 = vpop.f32.mrf.mxu0 }
  0x9e   :  { %v145_v41 = vadd.f32 %v1079_v39, %v144_v40 }
  0xa0   :  { %v149_v42 = vpack.c.bf16 %v145_v41, %v145_v41 }
  0xa2   :  { %v152_v43 = vunpack.c.l.b16 %v149_v42 }
  0xa4   :  { %v1341_v44 = vpack.c.b16 %v152_v43, %v152_v43 }
  0xa5   :  { %v146_v45 = vpop.f32.mrf.mxu0 }
  0xa6   :  { %v147_v46 = vadd.f32 %v1079_v39, %v146_v45  ;;  %269 = vrot.lane.b32.xlu2 %v1341_v44, %s1213_s14  ;;  %271 = vrot.lane.b32.xlu1 %v1341_v44, %s1214_s15 }
  0xa7   :  { %154 = vrot.lane.b32.xlu0 %v1341_v44, %s1215_s16 }
  0xa8   :  { %v150_v47 = vpack.c.bf16 %v147_v46, %v147_v46 }
  0xaa   :  { %v177_v48 = vunpack.c.l.b16 %v150_v47 }
  0xac   :  { %v1346_v49 = vpack.c.b16 %v177_v48, %v177_v48 }
  0xae   :  { %292 = vrot.lane.b32.xlu2 %v1346_v49, %s1213_s14  ;;  %294 = vrot.lane.b32.xlu1 %v1346_v49, %s1214_s15  ;;  %s972_s15 = sshll.u32 %s1531_s8, 4  ;;  %s1228_s8 = smov 32   ;;  %s973_s15 = int_to_ptr.hbm [resolvable:$true] %s972_s15 }
  0xaf   :  { %179 = vrot.lane.b32.xlu0 %v1346_v49, %s1215_s16  ;;  %s1229_s16 = smov 2  }
  0xb6   :  { %383 = vrot.lane.b32.xlu2 %v1341_v44, %s1216_s2  ;;  %408 = vrot.lane.b32.xlu1 %v1346_v49, %s1217_s4 }
  0xb7   :  { %385 = vrot.lane.b32.xlu0 %v1341_v44, %s1217_s4 }
  0xbe   :  { %522 = vrot.lane.b32.xlu2 %v1346_v49, %s1218_s17  ;;  %499 = vrot.lane.b32.xlu1 %v1341_v44, %s1218_s17 }
  0xbf   :  { %406 = vrot.lane.b32.xlu0 %v1346_v49, %s1216_s2 }
  0xc6   :  { %520 = vrot.lane.b32.xlu1 %v1346_v49, %s1219_s7 }
  0xc7   :  { %497 = vrot.lane.b32.xlu0 %v1341_v44, %s1219_s7 }
 0x100   :  { %v270_v50 = vpop.permute.xlu2 %269 }
 0x108   :  { %v293_v55 = vpop.permute.xlu2 %292 }
 0x110   :  { %v384_v60 = vpop.permute.xlu2 %383 }
 0x118   :  { %v272_v51 = vpop.permute.xlu1 %271  ;;  %v523_v1 = vpop.permute.xlu2 %522 }
 0x119   :  { %v155_v52 = vpop.permute.xlu0 %154  ;;  %v277_v53 = vsel %vm156_vm2, %v272_v51, 0  ;;  %v528_v4 = vsel %vm156_vm2, %v523_v1, 0 }
 0x11a   :  { %v161_v54 = vsel %vm156_vm2, %v155_v52, 0  ;;  %286 = vmatpush.bf16.xpose.msrb.mxu0 %v277_v53 }
 0x11b   :  { %170 = vmatpush.bf16.xpose.msra.mxu1 %v161_v54 }
 0x120   :  { %v295_v56 = vpop.permute.xlu1 %294 }
 0x121   :  { %v180_v57 = vpop.permute.xlu0 %179  ;;  %999 = vmatmul.msk.bf16.vlgmr.msrb.gmra.mxu0 %vm156_vm2, %v270_v50  ;;  %v300_v58 = vsel %vm156_vm2, %v295_v56, 0 }
 0x122   :  { %995 = vmatmul.msk.bf16.vlgmr.msra.gmra.mxu1 %vm156_vm2, %v149_v42  ;;  %v185_v59 = vsel %vm156_vm2, %v180_v57, 0 }
 0x123   :  { %194 = vmatpush.bf16.xpose.msra.mxu2 %v185_v59  ;;  %309 = vmatpush.bf16.xpose.msrb.mxu1 %v300_v58 }
 0x128   :  { %v409_v61 = vpop.permute.xlu1 %408 }
 0x129   :  { %v414_v62 = vsel %vm156_vm2, %v409_v61, 0  ;;  %v386_v63 = vpop.permute.xlu0 %385 }
 0x12a   :  { %v391_v0 = vsel %vm156_vm2, %v386_v63, 0  ;;  %996 = vmatmul.msk.bf16.vlgmr.msra.gmra.mxu2 %vm156_vm2, %v150_v47 }
 0x12b   :  { %423 = vmatpush.bf16.xpose.msra.mxu1 %v414_v62  ;;  %400 = vmatpush.bf16.xpose.msra.mxu0 %v391_v0 }
 0x130   :  { %v500_v2 = vpop.permute.xlu1 %499 }
 0x131   :  { %v505_v3 = vsel %vm156_vm2, %v500_v2, 0  ;;  %v407_v5 = vpop.permute.xlu0 %406 }
 0x132   :  { %1000 = vmatmul.msk.bf16.vlgmr.msrb.gmra.mxu1 %vm156_vm2, %v293_v55  ;;  %1003 = vmatmul.msk.bf16.vlgmr.msra.gmra.mxu0 %vm156_vm2, %v384_v60 }
 0x133   :  { %537 = vmatpush.bf16.xpose.msrb.mxu1 %v528_v4  ;;  %514 = vmatpush.bf16.xpose.msrb.mxu0 %v505_v3 }
 0x138   :  { %v521_v7 = vpop.permute.xlu1 %520 }
 0x139   :  { %v498_v6 = vpop.permute.xlu0 %497 }
 0x142   :  { %1004 = vmatmul.msk.bf16.vlgmr.msra.gmra.mxu1 %vm156_vm2, %v407_v5  ;;  %1007 = vmatmul.msk.bf16.vlgmr.msrb.gmra.mxu0 %vm156_vm2, %v498_v6 }
 0x152   :  { %1008 = vmatmul.msk.bf16.vlgmr.msrb.gmra.mxu1 %vm156_vm2, %v521_v7 }
 0x19e   :  { %v288_v8 = vpop.f32.mrf.mxu0 }
 0x19f   :  { %v172_v9 = vpop.f32.mrf.mxu1  ;;  %v315_v10 = vsel %vm156_vm2, %v288_v8, -inf }
 0x1a0   :  { %316 = vmax.xlane.f32.xlu1 %v315_v10  ;;  %v200_v12 = vsel %vm156_vm2, %v172_v9, -inf }
 0x1a1   :  { %201 = vmax.xlane.f32.xlu2 %v200_v12 }
 0x1a6   :  { %v290_v13 = vpop.f32.mrf.mxu0 }
 0x1a7   :  { %v174_v14 = vpop.f32.mrf.mxu1 }
 0x1ad   :  { %v196_v15 = vpop.f32.mrf.mxu2 }
 0x1ae   :  { %v203_v16 = vsel %vm156_vm2, %v196_v15, -inf }
 0x1af   :  { %v311_v17 = vpop.f32.mrf.mxu1  ;;  %204 = vmax.xlane.f32.xlu0 %v203_v16  ;;  %v1378_v18 = vpop.f32.mrf.mxu0 }
 0x1b0   :  { %v318_v19 = vsel %vm156_vm2, %v311_v17, -inf  ;;  %v429_v32 = vsel %vm156_vm2, %v1378_v18, -inf }
 0x1b1   :  { %319 = vmax.xlane.f32.xlu2 %v318_v19 }
 0x1b5   :  { %v198_v20 = vpop.f32.mrf.mxu2 }
 0x1b7   :  { %v313_v21 = vpop.f32.mrf.mxu1  ;;  %v404_v22 = vpop.f32.mrf.mxu0 }
 0x1b9   :  { %246 = vrot.lane.b32.xlu1 %v1346_v49, %s1208_s13 }
 0x1bf   :  { %v1383_v23 = vpop.f32.mrf.mxu1  ;;  %v1385_v24 = vpop.f32.mrf.mxu0 }
 0x1c0   :  { %v432_v31 = vsel %vm156_vm2, %v1383_v23, -inf  ;;  %v543_v33 = vsel %vm156_vm2, %v1385_v24, -inf }
 0x1c1   :  { %360 = vrot.lane.b32.xlu1 %v1346_v49, %s1220_s18 }
 0x1c3   :  { %339 = vrot.lane.b32.xlu0 %v1341_v44, %s1220_s18 }
 0x1c7   :  { %v427_v25 = vpop.f32.mrf.mxu1  ;;  %v518_v26 = vpop.f32.mrf.mxu0 }
 0x1c9   :  { %224 = vrot.lane.b32.xlu2 %v1341_v44, %s1208_s13  ;;  %s1221_s13 = smov 48  }
 0x1cf   :  { %v539_v28 = vpop.f32.mrf.mxu1 }
 0x1d0   :  { %v546_v30 = vsel %vm156_vm2, %v539_v28, -inf }
 0x1d7   :  { %v541_v29 = vpop.f32.mrf.mxu1 }
 0x1eb   :  { %547 = vmax.xlane.f32.xlu1 %v546_v30 }
 0x1ed   :  { %433 = vmax.xlane.f32.xlu0 %v432_v31 }
 0x1f2   :  { %430 = vmax.xlane.f32.xlu2 %v429_v32 }
 0x1f5   :  { %544 = vmax.xlane.f32.xlu0 %v543_v33 }
 0x213   :  { %v317_v34 = vpop.xlane.xlu1 %316 }
 0x214   :  { %v321_v35 = vsub.f32 %v288_v8, %v317_v34  ;;  %v202_v38 = vpop.xlane.xlu2 %201 }
 0x215   :  { %v206_v39 = vsub.f32 %v172_v9, %v202_v38 }
 0x216   :  { %v323_v40 = vmul.f32 1.442695, %v321_v35 }
 0x217   :  { %v208_v41 = vmul.f32 1.442695, %v206_v39 }
 0x218   :  { %1087 = vpow2.f32 %v323_v40 }
 0x219   :  { %1089 = vpow2.f32 %v208_v41 }
 0x21e   :  { %v1398_v42 = vpop.eup %1087 }
 0x21f   :  { %v1400_v43 = vpop.eup %1089  ;;  %v327_v45 = vsel %vm156_vm2, %v1398_v42, 0.0 }
 0x220   :  { %v212_v46 = vsel %vm156_vm2, %v1400_v43, 0.0  ;;  %328 = vadd.xlane.f32.xlu0 %v327_v45 }
 0x221   :  { %213 = vadd.xlane.f32.xlu1 %v212_v46 }
 0x222   :  { %v205_v47 = vpop.xlane.xlu0 %204 }
 0x223   :  { %v207_v48 = vsub.f32 %v196_v15, %v205_v47 }
 0x224   :  { %v320_v50 = vpop.xlane.xlu2 %319 }
 0x225   :  { %v210_v51 = vmul.f32 1.442695, %v207_v48  ;;  %v322_v52 = vsub.f32 %v311_v17, %v320_v50 }
 0x227   :  { %1091 = vpow2.f32 %v210_v51  ;;  %v325_v53 = vmul.f32 1.442695, %v322_v52 }
 0x229   :  { %1093 = vpow2.f32 %v325_v53 }
 0x22b   :  { %v247_v54 = vpop.permute.xlu1 %246 }
 0x22c   :  { %v225_v55 = vpop.permute.xlu2 %224  ;;  %v252_v56 = vsel %vm229_vm3, %v247_v54, 0 }
 0x22d   :  { %v1407_v57 = vpop.eup %1091  ;;  %v231_v58 = vsel %vm229_vm3, %v225_v55, 0 }
 0x22e   :  { %240 = vmatpush.bf16.msra.mxu3 %v231_v58  ;;  %v215_v59 = vsel %vm156_vm2, %v1407_v57, 0.0 }
 0x22f   :  { %v1412_v60 = vpop.eup %1093  ;;  %216 = vadd.xlane.f32.xlu0 %v215_v59 }
 0x230   :  { %v330_v61 = vsel %vm156_vm2, %v1412_v60, 0.0 }
 0x231   :  { %331 = vadd.xlane.f32.xlu2 %v330_v61 }
 0x232   :  { %261 = vmatpush.bf16.msrb.mxu3 %v252_v56 }
 0x233   :  { %v361_v0 = vpop.permute.xlu1 %360 }
 0x234   :  { %v366_v31 = vsel %vm229_vm3, %v361_v0, 0 }
 0x235   :  { %v340_v62 = vpop.permute.xlu0 %339 }
 0x236   :  { %v345_v63 = vsel %vm229_vm3, %v340_v62, 0 }
 0x237   :  { %354 = vmatpush.bf16.msrb.mxu2 %v345_v63 }
 0x23a   :  { %474 = vrot.lane.b32.xlu1 %v1346_v49, %s1221_s13 }
 0x249   :  { %453 = vrot.lane.b32.xlu2 %v1341_v44, %s1221_s13 }
 0x25e   :  { %v548_v1 = vpop.xlane.xlu1 %547 }
 0x25f   :  { %v550_v2 = vsub.f32 %v539_v28, %v548_v1 }
 0x260   :  { %v434_v3 = vpop.xlane.xlu0 %433 }
 0x261   :  { %v436_v4 = vsub.f32 %v1383_v23, %v434_v3  ;;  %v553_v6 = vmul.f32 1.442695, %v550_v2 }
 0x263   :  { %v439_v5 = vmul.f32 1.442695, %v436_v4 }
 0x265   :  { %1095 = vpow2.f32 %v439_v5  ;;  %v431_v7 = vpop.xlane.xlu2 %430 }
 0x266   :  { %v435_v8 = vsub.f32 %v1378_v18, %v431_v7  ;;  %1097 = vpow2.f32 %v553_v6 }
 0x268   :  { %v437_v9 = vmul.f32 1.442695, %v435_v8  ;;  %v545_v10 = vpop.xlane.xlu0 %544 }
 0x269   :  { %v549_v12 = vsub.f32 %v1385_v24, %v545_v10 }
 0x26a   :  { %1099 = vpow2.f32 %v437_v9 }
 0x26b   :  { %v1096_v13 = vpop.eup %1095  ;;  %v551_v14 = vmul.f32 1.442695, %v549_v12 }
 0x26c   :  { %v444_v15 = vsel %vm156_vm2, %v1096_v13, 0.0  ;;  %v1423_v16 = vpop.eup %1097 }
 0x26d   :  { %1101 = vpow2.f32 %v551_v14  ;;  %445 = vadd.xlane.f32.xlu0 %v444_v15  ;;  %v558_v18 = vsel %vm156_vm2, %v1423_v16, 0.0 }
 0x270   :  { %v1100_v17 = vpop.eup %1099 }
 0x271   :  { %v441_v19 = vsel %vm156_vm2, %v1100_v17, 0.0 }
 0x272   :  { %442 = vadd.xlane.f32.xlu1 %v441_v19  ;;  %559 = vadd.xlane.f32.xlu2 %v558_v18 }
 0x273   :  { %v1102_v20 = vpop.eup %1101 }
 0x274   :  { %v555_v21 = vsel %vm156_vm2, %v1102_v20, 0.0 }
 0x275   :  { %556 = vadd.xlane.f32.xlu0 %v555_v21 }
 0x289   :  { %567 = vrot.lane.b32.xlu0 %v1341_v44, %s1222_s19 }
 0x28b   :  { %588 = vrot.lane.b32.xlu1 %v1346_v49, %s1222_s19 }
 0x293   :  { %v329_v22 = vpop.xlane.xlu0 %328 }
 0x294   :  { %v214_v23 = vpop.xlane.xlu1 %213  ;;  %1103 = vrcp.f32 %v329_v22 }
 0x295   :  { %1105 = vrcp.f32 %v214_v23 }
 0x29a   :  { %v1104_v24 = vpop.eup %1103 }
 0x29b   :  { %v1106_v25 = vpop.eup %1105  ;;  %v335_v26 = vmul.f32 %v1104_v24, %v1398_v42 }
 0x29c   :  { %v220_v28 = vmul.f32 %v1106_v25, %v1400_v43 }
 0x29d   :  { %v337_v29 = vpack.c.bf16 %v335_v26, %v335_v26 }
 0x29e   :  { %v222_v30 = vpack.c.bf16 %v220_v28, %v220_v28 }
 0x29f   :  { %1001 = vmatmul.msk.bf16.vlgmr.msrb.gmra.mxu2 %vm156_vm2, %v337_v29 }
 0x2a0   :  { %997 = vmatmul.msk.bf16.vlgmr.msra.gmra.mxu3 %vm156_vm2, %v222_v30 }
 0x2a1   :  { %375 = vmatpush.bf16.msra.mxu3 %v366_v31 }
 0x2a2   :  { %v217_v44 = vpop.xlane.xlu0 %216 }
 0x2a3   :  { %1107 = vrcp.f32 %v217_v44 }
 0x2a4   :  { %v332_v49 = vpop.xlane.xlu2 %331 }
 0x2a5   :  { %1109 = vrcp.f32 %v332_v49 }
 0x2a9   :  { %v1108_v32 = vpop.eup %1107 }
 0x2aa   :  { %v221_v33 = vmul.f32 %v1108_v32, %v1407_v57 }
 0x2ab   :  { %v1110_v41 = vpop.eup %1109 }
 0x2ac   :  { %v454_v34 = vpop.permute.xlu2 %453  ;;  %v475_v38 = vpop.permute.xlu1 %474  ;;  %v223_v39 = vpack.c.bf16 %v221_v33, %v221_v33  ;;  %v336_v42 = vmul.f32 %v1110_v41, %v1412_v60 }
 0x2ad   :  { %v459_v35 = vsel %vm229_vm3, %v454_v34, 0  ;;  %v480_v40 = vsel %vm229_vm3, %v475_v38, 0  ;;  %v1049_v38 = vld [vmem:[%s1526_s3 + $0x8] sm:$0xff] }
 0x2ae   :  { %468 = vmatpush.bf16.msra.mxu2 %v459_v35  ;;  %v338_v43 = vpack.c.bf16 %v336_v42, %v336_v42  ;;  %689 = vmatpush.bf16.msra.mxu0 %v1049_v38 }
 0x2b0   :  { %998 = vmatmul.msk.bf16.vlgmr.msrb.gmra.mxu3 %vm156_vm2, %v223_v39  ;;  %v1048_v39 = vld [vmem:[%s1526_s3] sm:$0xff] }
 0x2b1   :  { %489 = vmatpush.bf16.msrb.mxu3 %v480_v40 }
 0x2b2   :  { %690 = vmatpush.bf16.msra.mxu0 %v1048_v39 }
 0x2c0   :  { %1002 = vmatmul.msk.bf16.vlgmr.msra.gmra.mxu3 %vm156_vm2, %v338_v43 }
 0x2e0   :  { %v446_v45 = vpop.xlane.xlu0 %445 }
 0x2e1   :  { %1111 = vrcp.f32 %v446_v45 }
 0x2e5   :  { %v443_v46 = vpop.xlane.xlu1 %442  ;;  %v560_v53 = vpop.xlane.xlu2 %559 }
 0x2e6   :  { %1113 = vrcp.f32 %v443_v46 }
 0x2e7   :  { %v1112_v47 = vpop.eup %1111  ;;  %1115 = vrcp.f32 %v560_v53 }
 0x2e8   :  { %v450_v48 = vmul.f32 %v1112_v47, %v1096_v13  ;;  %v557_v55 = vpop.xlane.xlu0 %556 }
 0x2e9   :  { %1117 = vrcp.f32 %v557_v55 }
 0x2ea   :  { %v452_v50 = vpack.c.bf16 %v450_v48, %v450_v48 }
 0x2ec   :  { %1006 = vmatmul.msk.bf16.vlgmr.msrb.gmra.mxu3 %vm156_vm2, %v452_v50  ;;  %v1114_v51 = vpop.eup %1113 }
 0x2ed   :  { %v449_v52 = vmul.f32 %v1114_v51, %v1100_v17  ;;  %v1116_v56 = vpop.eup %1115 }
 0x2ee   :  { %v564_v59 = vmul.f32 %v1116_v56, %v1423_v16 }
 0x2ef   :  { %v451_v54 = vpack.c.bf16 %v449_v52, %v449_v52  ;;  %v1118_v57 = vpop.eup %1117 }
 0x2f0   :  { %v563_v60 = vmul.f32 %v1118_v57, %v1102_v20  ;;  %v566_v0 = vpack.c.bf16 %v564_v59, %v564_v59  ;;  %v1080_v59 = vld [vmem:[#allocation5] ss:$0 sm:$0xff] }
 0x2f1   :  { %1005 = vmatmul.msk.bf16.vlgmr.msra.gmra.mxu2 %vm156_vm2, %v451_v54 }
 0x2f2   :  { %v565_v1 = vpack.c.bf16 %v563_v60, %v563_v60 }
 0x2fb   :  { %v568_v58 = vpop.permute.xlu0 %567 }
 0x2fc   :  { %v573_v61 = vsel %vm229_vm3, %v568_v58, 0 }
 0x2fd   :  { %v589_v62 = vpop.permute.xlu1 %588  ;;  %582 = vmatpush.bf16.msrb.mxu2 %v573_v61 }
 0x2fe   :  { %v594_v63 = vsel %vm229_vm3, %v589_v62, 0 }
 0x2ff   :  { %603 = vmatpush.bf16.msra.mxu3 %v594_v63 }
 0x301   :  { %1009 = vmatmul.msk.bf16.vlgmr.msrb.gmra.mxu2 %vm156_vm2, %v565_v1 }
 0x302   :  { %1010 = vmatmul.msk.bf16.vlgmr.msra.gmra.mxu3 %vm156_vm2, %v566_v0 }
 0x322   :  { %v356_v2 = vpop.f32.mrf.mxu2 }
 0x323   :  { %v242_v3 = vpop.f32.mrf.mxu3  ;;  %v381_v4 = vpack.c.bf16 %v356_v2, %v356_v2 }
 0x324   :  { %v267_v43 = vpack.c.bf16 %v242_v3, %v242_v3 }
 0x325   :  { %v613_v5 = vunpack.c.l.b16 %v381_v4  ;;  %v1226_v4 = vmov 32.0  }
 0x326   :  { %1119 = vrcp.f32 %v1226_v4 }
 0x327   :  { %v615_v6 = vpack.c.b16 %v613_v5, %v613_v5 }
 0x329   :  { %617 = vrot.lane.b32.xlu0 %v615_v6, %s1223_s20 }
 0x32a   :  { %v358_v7 = vpop.f32.mrf.mxu2 }
 0x32b   :  { %v244_v8 = vpop.f32.mrf.mxu3 }
 0x32c   :  { %v1120_v5 = vpop.eup %1119 }
 0x32d   :  { %v708_v6 = vmul.f32 32.0, %v1120_v5  ;;  %vm712_vm6 = vweird.f32 %v1120_v5 }
 0x32f   :  { %v709_v7 = vsub.f32 1.0, %v708_v6 }
 0x331   :  { %v710_v8 = vmul.f32 %v1120_v5, %v709_v7 }
 0x333   :  { %v263_v9 = vpop.f32.mrf.mxu3 }
 0x334   :  { %v268_v47 = vpack.c.bf16 %v263_v9, %v263_v9  ;;  %v711_v9 = vadd.f32 %v1120_v5, %v710_v8 }
 0x33b   :  { %v265_v10 = vpop.f32.mrf.mxu3 }
 0x33c   :  { %v1462_v10 = vsel %vm712_vm6, %v1120_v5, %v711_v9 }
 0x343   :  { %v377_v12 = vpop.f32.mrf.mxu3 }
 0x344   :  { %v382_v13 = vpack.c.bf16 %v377_v12, %v377_v12 }
 0x346   :  { %v614_v14 = vunpack.c.l.b16 %v382_v13 }
 0x348   :  { %v616_v15 = vpack.c.b16 %v614_v14, %v614_v14 }
 0x34a   :  { %619 = vrot.lane.b32.xlu1 %v616_v15, %s1223_s20 }
 0x34b   :  { %v379_v16 = vpop.f32.mrf.mxu3 }
 0x36f   :  { %v491_v17 = vpop.f32.mrf.mxu3 }
 0x370   :  { %v496_v19 = vpack.c.bf16 %v491_v17, %v491_v17 }
 0x372   :  { %v624_v18 = vunpack.c.l.b16 %v496_v19 }
 0x374   :  { %v626_v20 = vpack.c.b16 %v624_v18, %v624_v18  ;;  %v470_v21 = vpop.f32.mrf.mxu2 }
 0x375   :  { %v495_v22 = vpack.c.bf16 %v470_v21, %v470_v21 }
 0x376   :  { %629 = vrot.lane.b32.xlu1 %v626_v20, %s1224_s21  ;;  %v1051_v20 = vld [vmem:[#allocation2 + $0x8] sm:$0xff] }
 0x377   :  { %v493_v23 = vpop.f32.mrf.mxu3  ;;  %v623_v24 = vunpack.c.l.b16 %v495_v22  ;;  %788 = vmatpush.bf16.msra.mxu1 %v1051_v20 }
 0x379   :  { %v625_v25 = vpack.c.b16 %v623_v24, %v623_v24  ;;  %v1050_v24 = vld [vmem:[#allocation2] sm:$0xff] }
 0x37b   :  { %627 = vrot.lane.b32.xlu0 %v625_v25, %s1224_s21  ;;  %789 = vmatpush.bf16.msra.mxu1 %v1050_v24 }
 0x37c   :  { %v472_v26 = vpop.f32.mrf.mxu2 }
 0x384   :  { %v584_v28 = vpop.f32.mrf.mxu2 }
 0x385   :  { %v605_v29 = vpop.f32.mrf.mxu3  ;;  %v609_v30 = vpack.c.bf16 %v584_v28, %v584_v28 }
 0x386   :  { %v610_v31 = vpack.c.bf16 %v605_v29, %v605_v29 }
 0x387   :  { %v633_v44 = vunpack.c.l.b16 %v609_v30 }
 0x388   :  { %v634_v49 = vunpack.c.l.b16 %v610_v31 }
 0x389   :  { %v635_v32 = vpack.c.b16 %v633_v44, %v633_v44 }
 0x38a   :  { %v636_v33 = vpack.c.b16 %v634_v49, %v634_v49 }
 0x38b   :  { %637 = vrot.lane.b32.xlu2 %v635_v32, %s1225_s22 }
 0x38c   :  { %639 = vrot.lane.b32.xlu0 %v636_v33, %s1225_s22  ;;  %v586_v34 = vpop.f32.mrf.mxu2 }
 0x38d   :  { %v607_v35 = vpop.f32.mrf.mxu3 }
 0x39b   :  { %v618_v40 = vpop.permute.xlu0 %617 }
 0x39c   :  { %v643_v45 = vsel %vm156_vm2, %v267_v43, %v618_v40 }
 0x3bc   :  { %v620_v41 = vpop.permute.xlu1 %619 }
 0x3bd   :  { %v646_v51 = vsel %vm156_vm2, %v268_v47, %v620_v41  ;;  %v1081_v41 = vld [vmem:[#allocation5 + $0x2] ss:$0 sm:$0xff] }
 0x3e5   :  { %v638_v50 = vpop.permute.xlu2 %637 }
 0x3e8   :  { %v630_v48 = vpop.permute.xlu1 %629 }
 0x3e9   :  { %v651_v53 = vsel %vm647_vm4, %v646_v51, %v630_v48 }
 0x3ed   :  { %v628_v42 = vpop.permute.xlu0 %627 }
 0x3ee   :  { %v649_v46 = vsel %vm647_vm4, %v643_v45, %v628_v42 }
 0x3ef   :  { %v654_v52 = vsel %vm652_vm5, %v649_v46, %v638_v50  ;;  %v1082_v46 = vld [vmem:[#allocation5 + $0x3] ss:$0 sm:$0xff] }
 0x3f0   :  { %v665_v56 = vunpack.c.l.b16 %v654_v52 }
 0x3fe   :  { %v640_v54 = vpop.permute.xlu0 %639 }
 0x3ff   :  { %v656_v55 = vsel %vm652_vm5, %v651_v53, %v640_v54  ;;  %v1055_v54 = vld [vmem:[%s1529_s6 + $0x18] sm:$0xff]  ;;  %vm957_vm5 = vcmask 254976  }
 0x400   :  { %v666_v57 = vunpack.c.l.b16 %v656_v55  ;;  %841 = vmatpush.bf16.msra.mxu2 %v1055_v54  ;;  %v1054_v55 = vld [vmem:[%s1529_s6 + $0x10] sm:$0xff] }
 0x402   :  { %v667_v58 = vpack.c.b16 %v666_v57, %v665_v56  ;;  %v1053_v56 = vld [vmem:[%s1529_s6 + $0x8] sm:$0xff]  ;;  %v1052_v57 = vld [vmem:[%s1529_s6] sm:$0xff] }
 0x404   :  { %1019 = vmatmul.msk.bf16.vlgmr.msra.gmra.mxu0 %vm131_vm1, %v667_v58  ;;  %842 = vmatpush.bf16.msra.mxu2 %v1054_v55 }
 0x408   :  { %843 = vmatpush.bf16.msra.mxu2 %v1053_v56 }
 0x40c   :  { %844 = vmatpush.bf16.msra.mxu2 %v1052_v57 }
 0x481   :  { %v692_v60 = vpop.f32.mrf.mxu0 }
 0x482   :  { %v693_v61 = vadd.f32 %v1080_v59, %v692_v60 }
 0x484   :  { %v697_v62 = vadd.f32 %v693_v61, %v1333_v37 }
 0x486   :  { %v701_v63 = vsel %vm131_vm1, %v697_v62, 0.0 }
 0x487   :  { %702 = vadd.xlane.f32.xlu1 %v701_v63 }
 0x489   :  { %v694_v0 = vpop.f32.mrf.mxu0 }
 0x48a   :  { %v695_v1 = vadd.f32 %v1080_v59, %v694_v0  ;;  %v1083_v59 = vld [vmem:[%s1528_s5] ss:$0 sm:$0xff]  ;;  %s1227_s5 = smov [#allocation7]  }
 0x48b   :  { %s970_s6 = sshll.u32 %s1227_s5, 4  ;;  %s971_s6 = int_to_ptr.vmem [resolvable:$true] %s970_s6 }
 0x48c   :  { %v698_v2 = vadd.f32 %v695_v1, %v1330_v36 }
 0x48e   :  { %v704_v3 = vsel %vm131_vm1, %v698_v2, 0.0 }
 0x48f   :  { %705 = vadd.xlane.f32.xlu0 %v704_v3 }
 0x4fa   :  { %v703_v37 = vpop.xlane.xlu1 %702 }
 0x4fb   :  { %v714_v12 = vmul.f32 %v1462_v10, %v703_v37 }
 0x4fd   :  { %v716_v13 = vsub.f32 %v697_v62, %v714_v12 }
 0x4ff   :  { %v718_v14 = vmul.f32 %v716_v13, %v716_v13 }
 0x501   :  { %v720_v36 = vsel %vm131_vm1, %v718_v14, 0.0 }
 0x502   :  { %v706_v15 = vpop.xlane.xlu0 %705  ;;  %721 = vadd.xlane.f32.xlu2 %v720_v36 }
 0x503   :  { %v715_v16 = vmul.f32 %v1462_v10, %v706_v15 }
 0x505   :  { %v717_v17 = vsub.f32 %v698_v2, %v715_v16  ;;  %v1084_v2 = vld [vmem:[#allocation5 + $0x1] ss:$0 sm:$0xff] }
 0x507   :  { %v719_v19 = vmul.f32 %v717_v17, %v717_v17 }
 0x509   :  { %v723_v18 = vsel %vm131_vm1, %v719_v19, 0.0 }
 0x50a   :  { %724 = vadd.xlane.f32.xlu1 %v723_v18 }
 0x575   :  { %v722_v21 = vpop.xlane.xlu2 %721 }
 0x576   :  { %v726_v22 = vmul.f32 %v722_v21, %v1462_v10 }
 0x578   :  { %v728_v23 = vadd.f32 1e-05, %v726_v22 }
 0x57a   :  { %1121 = vrsqrt.f32 %v728_v23  ;;  %vm736_vm8 = vweird.f32 %v728_v23 }
 0x57d   :  { %v725_v25 = vpop.xlane.xlu1 %724 }
 0x57e   :  { %v727_v26 = vmul.f32 %v725_v25, %v1462_v10 }
 0x580   :  { %v1122_v28 = vpop.eup %1121  ;;  %v729_v29 = vadd.f32 1e-05, %v727_v26 }
 0x581   :  { %v731_v30 = vmul.f32 %v1122_v28, %v728_v23  ;;  %vm737_vm7 = vweird.f32 %v1122_v28 }
 0x582   :  { %1123 = vrsqrt.f32 %v729_v29  ;;  %vm738_vm9 = vmor %vm736_vm8, %vm737_vm7  ;;  %vm746_vm11 = vweird.f32 %v729_v29 }
 0x583   :  { %v732_v31 = vmul.f32 %v1122_v28, %v731_v30 }
 0x585   :  { %v733_v44 = vmul.f32 0.5, %v732_v31 }
 0x587   :  { %v734_v49 = vsub.f32 1.5, %v733_v44 }
 0x588   :  { %v1124_v32 = vpop.eup %1123 }
 0x589   :  { %v735_v33 = vmul.f32 %v1122_v28, %v734_v49  ;;  %v741_v34 = vmul.f32 %v1124_v32, %v729_v29  ;;  %vm747_vm10 = vweird.f32 %v1124_v32 }
 0x58a   :  { %vm748_vm12 = vmor %vm746_vm11, %vm747_vm10 }
 0x58b   :  { %v742_v35 = vmul.f32 %v1124_v32, %v741_v34  ;;  %v739_v38 = vsel %vm738_vm9, %v1122_v28, %v735_v33  ;;  %v1085_v34 = vld [vmem:[#allocation5 + $0x4] ss:$0 sm:$0xff] }
 0x58c   :  { %v750_v42 = vmul.f32 %v739_v38, %v716_v13 }
 0x58d   :  { %v743_v39 = vmul.f32 0.5, %v742_v35 }
 0x58e   :  { %v753_v47 = vmul.f32 %v1081_v41, %v750_v42 }
 0x58f   :  { %v744_v40 = vsub.f32 1.5, %v743_v39  ;;  %v1086_v39 = vld [vmem:[#allocation5 + $0x5] ss:$0 sm:$0xff] }
 0x590   :  { %v756_v51 = vadd.f32 %v1082_v46, %v753_v47 }
 0x591   :  { %v745_v43 = vmul.f32 %v1124_v32, %v744_v40 }
 0x593   :  { %v749_v45 = vsel %vm748_vm12, %v1124_v32, %v745_v43 }
 0x594   :  { %v751_v48 = vmul.f32 %v749_v45, %v717_v17 }
 0x596   :  { %v754_v50 = vmul.f32 %v1081_v41, %v751_v48 }
 0x598   :  { %v757_v52 = vadd.f32 %v1082_v46, %v754_v50 }
 0x59a   :  { %v758_v53 = vpack.c.bf16 %v757_v52, %v756_v51 }
 0x59c   :  { %1028 = vmatmul.msk.bf16.vlgmr.msra.gmra.mxu1 %vm131_vm1, %v758_v53 }
 0x619   :  { %v791_v58 = vpop.f32.mrf.mxu1 }
 0x61a   :  { %v792_v60 = vadd.f32 %v1083_v59, %v791_v58 }
 0x61c   :  { %v796_v63 = vmax.f32 %v792_v60, 0.0 }
 0x621   :  { %v793_v61 = vpop.f32.mrf.mxu1 }
 0x622   :  { %v794_v62 = vadd.f32 %v1083_v59, %v793_v61 }
 0x624   :  { %v797_v0 = vmax.f32 %v794_v62, 0.0 }
 0x626   :  { %v798_v1 = vpack.c.bf16 %v797_v0, %v796_v63 }
 0x628   :  { %1045 = vmatmul.msk.bf16.vlgmr.msra.gmra.mxu2 %vm833_vm13, %v798_v1 }
 0x6ab   :  { %v846_v3 = vpop.f32.mrf.mxu2 }
 0x6ac   :  { %v847_v4 = vadd.f32 %v1084_v2, %v846_v3 }
 0x6ae   :  { %v851_v5 = vadd.f32 %v847_v4, %v756_v51 }
 0x6b0   :  { %v855_v6 = vsel %vm131_vm1, %v851_v5, 0.0 }
 0x6b1   :  { %856 = vadd.xlane.f32.xlu0 %v855_v6 }
 0x6b3   :  { %v848_v7 = vpop.f32.mrf.mxu2 }
 0x6b4   :  { %v849_v8 = vadd.f32 %v1084_v2, %v848_v7 }
 0x6b6   :  { %v852_v9 = vadd.f32 %v849_v8, %v757_v52 }
 0x6b8   :  { %v858_v37 = vsel %vm131_vm1, %v852_v9, 0.0 }
 0x6b9   :  { %859 = vadd.xlane.f32.xlu1 %v858_v37 }
 0x724   :  { %v857_v12 = vpop.xlane.xlu0 %856 }
 0x725   :  { %v861_v13 = vmul.f32 %v857_v12, %v1462_v10 }
 0x727   :  { %v863_v14 = vsub.f32 %v851_v5, %v861_v13 }
 0x729   :  { %v865_v36 = vmul.f32 %v863_v14, %v863_v14 }
 0x72b   :  { %v867_v15 = vsel %vm131_vm1, %v865_v36, 0.0 }
 0x72c   :  { %v860_v16 = vpop.xlane.xlu1 %859  ;;  %868 = vadd.xlane.f32.xlu0 %v867_v15 }
 0x72d   :  { %v862_v17 = vmul.f32 %v860_v16, %v1462_v10 }
 0x72f   :  { %v864_v19 = vsub.f32 %v852_v9, %v862_v17 }
 0x731   :  { %v866_v18 = vmul.f32 %v864_v19, %v864_v19 }
 0x733   :  { %v870_v20 = vsel %vm131_vm1, %v866_v18, 0.0 }
 0x734   :  { %871 = vadd.xlane.f32.xlu1 %v870_v20 }
 0x79f   :  { %v869_v21 = vpop.xlane.xlu0 %868 }
 0x7a0   :  { %v873_v22 = vmul.f32 %v869_v21, %v1462_v10 }
 0x7a2   :  { %v875_v23 = vadd.f32 1e-05, %v873_v22 }
 0x7a4   :  { %1125 = vrsqrt.f32 %v875_v23  ;;  %vm883_vm15 = vweird.f32 %v875_v23 }
 0x7a7   :  { %v872_v24 = vpop.xlane.xlu1 %871 }
 0x7a8   :  { %v874_v25 = vmul.f32 %v872_v24, %v1462_v10 }
 0x7aa   :  { %v1126_v26 = vpop.eup %1125  ;;  %v876_v28 = vadd.f32 1e-05, %v874_v25 }
 0x7ab   :  { %v878_v29 = vmul.f32 %v1126_v26, %v875_v23  ;;  %vm884_vm14 = vweird.f32 %v1126_v26 }
 0x7ac   :  { %1127 = vrsqrt.f32 %v876_v28  ;;  %vm885_vm1 = vmor %vm883_vm15, %vm884_vm14  ;;  %vm893_vm3 = vweird.f32 %v876_v28 }
 0x7ad   :  { %v879_v30 = vmul.f32 %v1126_v26, %v878_v29 }
 0x7af   :  { %v880_v31 = vmul.f32 0.5, %v879_v30 }
 0x7b1   :  { %v881_v44 = vsub.f32 1.5, %v880_v31 }
 0x7b2   :  { %v1128_v49 = vpop.eup %1127 }
 0x7b3   :  { %v882_v32 = vmul.f32 %v1126_v26, %v881_v44  ;;  %v888_v33 = vmul.f32 %v1128_v49, %v876_v28  ;;  %vm894_vm2 = vweird.f32 %v1128_v49 }
 0x7b4   :  { %vm895_vm4 = vmor %vm893_vm3, %vm894_vm2 }
 0x7b5   :  { %v886_v35 = vsel %vm885_vm1, %v1126_v26, %v882_v32  ;;  %v889_v38 = vmul.f32 %v1128_v49, %v888_v33 }
 0x7b6   :  { %v897_v40 = vmul.f32 %v886_v35, %v863_v14 }
 0x7b7   :  { %v890_v41 = vmul.f32 0.5, %v889_v38 }
 0x7b8   :  { %v900_v10 = vmul.f32 %v1085_v34, %v897_v40 }
 0x7b9   :  { %v891_v42 = vsub.f32 1.5, %v890_v41 }
 0x7ba   :  { %v903_v43 = vadd.f32 %v1086_v39, %v900_v10 }
 0x7bb   :  { %v892_v45 = vmul.f32 %v1128_v49, %v891_v42 }
 0x7bc   :  { %v905_v46 = vrot.slane %v903_v43, 4  ;;  %v910_v51 = vperm.slane %v903_v43, %v1310_v11 }
 0x7bd   :  { %v896_v47 = vsel %vm895_vm4, %v1128_v49, %v892_v45 }
 0x7be   :  { %v898_v48 = vmul.f32 %v896_v47, %v864_v19  ;;  %v906_v50 = vsel %vm70_vm0, 0.0, %v905_v46  ;;  %v927_v55 = vrot.slane %v910_v51, 4 }
 0x7bf   :  { %v914_v54 = vperm.slane %v906_v50, %v1310_v11 }
 0x7c0   :  { %v901_v52 = vmul.f32 %v1085_v34, %v898_v48 }
 0x7c1   :  { %v939_v61 = vrot.slane %v914_v54, 4 }
 0x7c2   :  { %v904_v53 = vadd.f32 %v1086_v39, %v901_v52 }
 0x7c4   :  { %v915_v56 = vrot.slane %v904_v53, 4  ;;  %v920_v57 = vperm.slane %v904_v53, %v1310_v11 }
 0x7c6   :  { %v916_v58 = vsel %vm70_vm0, 0.0, %v915_v56  ;;  %v925_v59 = vrot.slane %v920_v57, 4  ;;  %v928_v60 = vsel %vm70_vm0, %v920_v57, %v927_v55 }
 0x7c7   :  { %v924_v62 = vperm.slane %v916_v58, %v1310_v11  ;;  %v936_v63 = vperm.slane %v928_v60, %v1323_v27 }
 0x7c8   :  { %v926_v0 = vsel %vm70_vm0, %v925_v59, %v910_v51 }
 0x7c9   :  { %v932_v1 = vperm.slane %v926_v0, %v1323_v27  ;;  %v937_v2 = vrot.slane %v924_v62, 4  ;;  %v940_v3 = vsel %vm70_vm0, %v924_v62, %v939_v61  ;;  %v951_v4 = vrot.slane %v936_v63, 4  ;;  %960 = vst.msk [vmem:[#allocation7 + $0x4] sm:$0x3] %vm957_vm5, %v936_v63 }
 0x7ca   :  { %v948_v5 = vperm.slane %v940_v3, %v1323_v27 }
 0x7cb   :  { %v938_v6 = vsel %vm70_vm0, %v937_v2, %v914_v54  ;;  %v949_v7 = vrot.slane %v932_v1, 4  ;;  %v952_v8 = vsel %vm70_vm0, 0.0, %v951_v4  ;;  %958 = vst.msk [vmem:[#allocation7] sm:$0x3] %vm957_vm5, %v932_v1 }
 0x7cc   :  { %v944_v11 = vperm.slane %v938_v6, %v1323_v27  ;;  %v955_v9 = vrot.slane %v948_v5, 4  ;;  %961 = vst.msk [vmem:[#allocation7 + $0x6] sm:$0x3] %vm957_vm5, %v952_v8 }
 0x7cd   :  { %v950_v37 = vsel %vm70_vm0, 0.0, %v949_v7  ;;  %964 = vst.msk [vmem:[#allocation7 + $0xc] sm:$0x3] %vm957_vm5, %v948_v5 }
 0x7ce   :  { %v953_v12 = vrot.slane %v944_v11, 4  ;;  %v956_v13 = vsel %vm70_vm0, 0.0, %v955_v9  ;;  %959 = vst.msk [vmem:[#allocation7 + $0x2] sm:$0x3] %vm957_vm5, %v950_v37 }
 0x7cf   :  { %962 = vst.msk [vmem:[#allocation7 + $0x8] sm:$0x3] %vm957_vm5, %v944_v11 }
 0x7d0   :  { %v954_v14 = vsel %vm70_vm0, 0.0, %v953_v12  ;;  %965 = vst.msk [vmem:[#allocation7 + $0xe] sm:$0x3] %vm957_vm5, %v956_v13 }
 0x7d1   :  { %963 = vst.msk [vmem:[#allocation7 + $0xa] sm:$0x3] %vm957_vm5, %v954_v14 }
 0x7d2   :  { %978 = dma.vmem_to_hbm [thread:$0]  %s971_s6, 256, %s973_s15, [#allocation4], %s1228_s8, %s1228_s8, %s1229_s16  }
 0x7d3   :  { %1205 = dma.done.wait [#allocation4], 256  }
 0x7d4   :  { %1206 = vsyncadd [#allocation4], 4294967040 }
 0x7d5   :  { %983 = vsyncpa [#allocation3], 1 }
 0x7d6   :  { %984 = vsyncpa [#allocation6], 1 }
 0x7d7   :  { %985 = vsyncpa [#allocation4], 1 }

// kernel: tpu_custom_call.1
= control target key start
LH: loop header
LB: loop body
LE: loop exit
PB: predicated region body
PF: predicated region fallthrough
CT: control target
= control target key end

     0   :  { %13 = vsyncpa [#allocation3], 0  ;;  %s1354_s0 = inlined_call_operand.vmem [shape: f32[16,32], index: 0, kind: input, shape index: {}]   ;;  %s1355_s1 = inlined_call_operand.vmem [shape: bf16[32,96], index: 1, kind: input, shape index: {}]   ;;  %s1356_s2 = inlined_call_operand.vmem [shape: f32[1,96], index: 2, kind: input, shape index: {}]   ;;  %s1357_s3 = inlined_call_operand.vmem [shape: bf16[32,32], index: 3, kind: input, shape index: {}]   ;;  %s1358_s4 = inlined_call_operand.hbm [shape: bf16[32,64], index: 4, kind: input, shape index: {}]   ;;  %s1359_s5 = inlined_call_operand.vmem [shape: f32[1,64], index: 5, kind: input, shape index: {}]   ;;  %s1360_s6 = inlined_call_operand.vmem [shape: bf16[64,32], index: 6, kind: input, shape index: {}]   ;;  %s1361_s7 = inlined_call_operand.hbm [shape: f32[8,32], index: 7, kind: input, shape index: {}]   ;;  %s1362_s8 = inlined_call_operand.hbm [shape: f32[16,32], index: 8, kind: output, shape index: {}]  }
   0x1   :  { %14 = vsyncpa [#allocation6], 0 }
   0x2   :  { %15 = vsyncpa [#allocation4], 0  ;;  %s28_s29 = sshll.u32 %s1358_s4, 4  ;;  %s1098_s30 = smov [#allocation2]   ;;  %s29_s29 = int_to_ptr.hbm [resolvable:$true] %s28_s29 }
   0x3   :  { %s30_s9 = sshll.u32 %s1098_s30, 4  ;;  %s46_s12 = sshll.u32 %s1361_s7, 4  ;;  %s31_s9 = int_to_ptr.vmem [resolvable:$true] %s30_s9  ;;  %s47_s12 = int_to_ptr.hbm [resolvable:$true] %s46_s12 }
   0x4   :  { %s1099_s13 = smov 64   ;;  %s1100_s14 = smov 4  }
   0x5   :  { %36 = dma.hbm_to_vmem [thread:$0]  %s29_s29, 256, %s31_s9, [#allocation3], %s1099_s13, %s1099_s13, %s1100_s14  }
   0x6   :  { %s1101_s15 = smov [#allocation5]  }
   0x7   :  { %s48_s16 = sshll.u32 %s1101_s15, 4  ;;  %s49_s16 = int_to_ptr.vmem [resolvable:$true] %s48_s16 }
   0x8   :  { %51 = dma.hbm_to_vmem [thread:$0]  %s47_s12, 128, %s49_s16, [#allocation6]  }
   0x9   :  { %1092 = dma.done.wait [#allocation3], 256  }
   0xa   :  { %1093 = vsyncadd [#allocation3], 4294967040 }
   0xb   :  { %1094 = dma.done.wait [#allocation6], 128  }
   0xc   :  { %1095 = vsyncadd [#allocation6], 4294967168  ;;  %v941_v0 = vld [vmem:[%s1355_s1 + $0x8] sm:$0xff]  ;;  %v940_v1 = vld [vmem:[%s1355_s1] sm:$0xff]  ;;  %vm84_vm0 = vcmask 261120   ;;  %s1103_s24 = smov 88  }
   0xd   :  { %v1180_v2 = vld [vmem:[%s1354_s0] sm:$0xff]  ;;  %v1185_v3 = vld [vmem:[%s1354_s0 + $0x8] sm:$0xff]  ;;  %94 = vmatpush.bf16.msra.mxu0 %v941_v0  ;;  %s1102_s0 = smov 120   ;;  %s1104_s25 = smov 96   ;;  %vm109_vm1 = vcmask 64512   ;;  %vm182_vm2 = vcmask 1043456  }
   0xe   :  { %v63_v4 = vpack.c.bf16 %v1185_v3, %v1180_v2  ;;  %v970_v5 = vld [vmem:[%s1356_s2] ss:$0 sm:$0xff]  ;;  %s1105_s2 = smov 112   ;;  %s1106_s26 = smov 80   ;;  %vm600_vm3 = vcmask 130048   ;;  %vm605_vm4 = vcmask 195584  }
   0xf   :  { %s1107_s27 = smov 72   ;;  %s1108_s28 = smov 104   ;;  %vm786_vm12 = vcmask 523264  }
  0x10   :  { %s1109_s29 = smov 56   ;;  %s1110_s30 = smov 48  }
  0x11   :  { %95 = vmatpush.bf16.msra.mxu0 %v940_v1  ;;  %s1111_s9 = smov 40   ;;  %s1112_s10 = smov 8  }
  0x12   :  { %s1113_s11 = smov 16   ;;  %s1114_s12 = smov 24  }
  0x14   :  { %888 = vmatmul.msk.bf16.vlgmr.msra.gmra.mxu0 %vm84_vm0, %v63_v4 }
  0x91   :  { %v97_v6 = vpop.f32.mrf.mxu0 }
  0x92   :  { %v98_v7 = vadd.f32 %v970_v5, %v97_v6 }
  0x94   :  { %v102_v8 = vpack.c.bf16 %v98_v7, %v98_v7 }
  0x96   :  { %v105_v9 = vunpack.c.l.b16 %v102_v8 }
  0x98   :  { %v1193_v10 = vpack.c.b16 %v105_v9, %v105_v9 }
  0x99   :  { %v99_v11 = vpop.f32.mrf.mxu0 }
  0x9a   :  { %v100_v12 = vadd.f32 %v970_v5, %v99_v11  ;;  %222 = vrot.lane.b32.xlu2 %v1193_v10, %s1102_s0  ;;  %224 = vrot.lane.b32.xlu1 %v1193_v10, %s1103_s24 }
  0x9b   :  { %107 = vrot.lane.b32.xlu0 %v1193_v10, %s1104_s25 }
  0x9c   :  { %v103_v13 = vpack.c.bf16 %v100_v12, %v100_v12 }
  0x9e   :  { %v130_v14 = vunpack.c.l.b16 %v103_v13 }
  0xa0   :  { %v1198_v15 = vpack.c.b16 %v130_v14, %v130_v14 }
  0xa2   :  { %245 = vrot.lane.b32.xlu2 %v1198_v15, %s1102_s0  ;;  %247 = vrot.lane.b32.xlu1 %v1198_v15, %s1103_s24  ;;  %s866_s24 = sshll.u32 %s1362_s8, 4  ;;  %s867_s24 = int_to_ptr.hbm [resolvable:$true] %s866_s24 }
  0xa3   :  { %132 = vrot.lane.b32.xlu0 %v1198_v15, %s1104_s25  ;;  %s1117_s25 = smov 128  }
  0xaa   :  { %336 = vrot.lane.b32.xlu2 %v1193_v10, %s1105_s2  ;;  %361 = vrot.lane.b32.xlu1 %v1198_v15, %s1106_s26 }
  0xab   :  { %338 = vrot.lane.b32.xlu0 %v1193_v10, %s1106_s26 }
  0xb2   :  { %475 = vrot.lane.b32.xlu2 %v1198_v15, %s1107_s27  ;;  %452 = vrot.lane.b32.xlu1 %v1193_v10, %s1107_s27 }
  0xb3   :  { %359 = vrot.lane.b32.xlu0 %v1198_v15, %s1105_s2 }
  0xba   :  { %473 = vrot.lane.b32.xlu1 %v1198_v15, %s1108_s28 }
  0xbb   :  { %450 = vrot.lane.b32.xlu0 %v1193_v10, %s1108_s28 }
  0xf4   :  { %v223_v16 = vpop.permute.xlu2 %222 }
  0xfc   :  { %v246_v21 = vpop.permute.xlu2 %245 }
 0x104   :  { %v337_v26 = vpop.permute.xlu2 %336 }
 0x10c   :  { %v225_v17 = vpop.permute.xlu1 %224  ;;  %v476_v31 = vpop.permute.xlu2 %475 }
 0x10d   :  { %v108_v18 = vpop.permute.xlu0 %107  ;;  %v230_v19 = vsel %vm109_vm1, %v225_v17, 0  ;;  %v481_v34 = vsel %vm109_vm1, %v476_v31, 0 }
 0x10e   :  { %v114_v20 = vsel %vm109_vm1, %v108_v18, 0  ;;  %239 = vmatpush.bf16.xpose.msrb.mxu0 %v230_v19 }
 0x10f   :  { %123 = vmatpush.bf16.xpose.msra.mxu1 %v114_v20 }
 0x114   :  { %v248_v22 = vpop.permute.xlu1 %247 }
 0x115   :  { %v133_v23 = vpop.permute.xlu0 %132  ;;  %893 = vmatmul.msk.bf16.vlgmr.msrb.gmra.mxu0 %vm109_vm1, %v223_v16  ;;  %v253_v24 = vsel %vm109_vm1, %v248_v22, 0 }
 0x116   :  { %889 = vmatmul.msk.bf16.vlgmr.msra.gmra.mxu1 %vm109_vm1, %v102_v8  ;;  %v138_v25 = vsel %vm109_vm1, %v133_v23, 0 }
 0x117   :  { %147 = vmatpush.bf16.xpose.msra.mxu2 %v138_v25  ;;  %262 = vmatpush.bf16.xpose.msrb.mxu1 %v253_v24 }
 0x11c   :  { %v362_v27 = vpop.permute.xlu1 %361 }
 0x11d   :  { %v367_v28 = vsel %vm109_vm1, %v362_v27, 0  ;;  %v339_v29 = vpop.permute.xlu0 %338 }
 0x11e   :  { %v344_v30 = vsel %vm109_vm1, %v339_v29, 0  ;;  %890 = vmatmul.msk.bf16.vlgmr.msra.gmra.mxu2 %vm109_vm1, %v103_v13 }
 0x11f   :  { %376 = vmatpush.bf16.xpose.msra.mxu1 %v367_v28  ;;  %353 = vmatpush.bf16.xpose.msra.mxu0 %v344_v30 }
 0x124   :  { %v453_v32 = vpop.permute.xlu1 %452 }
 0x125   :  { %v458_v33 = vsel %vm109_vm1, %v453_v32, 0  ;;  %v360_v35 = vpop.permute.xlu0 %359 }
 0x126   :  { %894 = vmatmul.msk.bf16.vlgmr.msrb.gmra.mxu1 %vm109_vm1, %v246_v21  ;;  %897 = vmatmul.msk.bf16.vlgmr.msra.gmra.mxu0 %vm109_vm1, %v337_v26 }
 0x127   :  { %490 = vmatpush.bf16.xpose.msrb.mxu1 %v481_v34  ;;  %467 = vmatpush.bf16.xpose.msrb.mxu0 %v458_v33 }
 0x12c   :  { %v474_v37 = vpop.permute.xlu1 %473 }
 0x12d   :  { %v451_v36 = vpop.permute.xlu0 %450 }
 0x136   :  { %898 = vmatmul.msk.bf16.vlgmr.msra.gmra.mxu1 %vm109_vm1, %v360_v35  ;;  %901 = vmatmul.msk.bf16.vlgmr.msrb.gmra.mxu0 %vm109_vm1, %v451_v36 }
 0x146   :  { %902 = vmatmul.msk.bf16.vlgmr.msrb.gmra.mxu1 %vm109_vm1, %v474_v37 }
 0x192   :  { %v241_v38 = vpop.f32.mrf.mxu0 }
 0x193   :  { %v125_v39 = vpop.f32.mrf.mxu1  ;;  %v268_v40 = vsel %vm109_vm1, %v241_v38, -inf }
 0x194   :  { %269 = vmax.xlane.f32.xlu1 %v268_v40  ;;  %v153_v41 = vsel %vm109_vm1, %v125_v39, -inf }
 0x195   :  { %154 = vmax.xlane.f32.xlu2 %v153_v41 }
 0x19a   :  { %v243_v42 = vpop.f32.mrf.mxu0 }
 0x19b   :  { %v127_v43 = vpop.f32.mrf.mxu1 }
 0x1a1   :  { %v149_v44 = vpop.f32.mrf.mxu2 }
 0x1a2   :  { %v156_v45 = vsel %vm109_vm1, %v149_v44, -inf }
 0x1a3   :  { %v264_v46 = vpop.f32.mrf.mxu1  ;;  %157 = vmax.xlane.f32.xlu0 %v156_v45  ;;  %v1230_v47 = vpop.f32.mrf.mxu0 }
 0x1a4   :  { %v271_v48 = vsel %vm109_vm1, %v264_v46, -inf  ;;  %v382_v60 = vsel %vm109_vm1, %v1230_v47, -inf }
 0x1a5   :  { %272 = vmax.xlane.f32.xlu2 %v271_v48 }
 0x1a9   :  { %v151_v49 = vpop.f32.mrf.mxu2 }
 0x1ab   :  { %v266_v50 = vpop.f32.mrf.mxu1  ;;  %v357_v51 = vpop.f32.mrf.mxu0 }
 0x1ad   :  { %199 = vrot.lane.b32.xlu1 %v1198_v15, %s1099_s13 }
 0x1b3   :  { %v1235_v52 = vpop.f32.mrf.mxu1  ;;  %v1237_v53 = vpop.f32.mrf.mxu0 }
 0x1b4   :  { %v385_v59 = vsel %vm109_vm1, %v1235_v52, -inf  ;;  %v496_v61 = vsel %vm109_vm1, %v1237_v53, -inf }
 0x1b5   :  { %313 = vrot.lane.b32.xlu1 %v1198_v15, %s1109_s29 }
 0x1b7   :  { %292 = vrot.lane.b32.xlu0 %v1193_v10, %s1109_s29 }
 0x1bb   :  { %v380_v54 = vpop.f32.mrf.mxu1  ;;  %v471_v55 = vpop.f32.mrf.mxu0 }
 0x1bd   :  { %177 = vrot.lane.b32.xlu2 %v1193_v10, %s1099_s13 }
 0x1c3   :  { %v492_v56 = vpop.f32.mrf.mxu1 }
 0x1c4   :  { %v499_v58 = vsel %vm109_vm1, %v492_v56, -inf }
 0x1cb   :  { %v494_v57 = vpop.f32.mrf.mxu1 }
 0x1df   :  { %500 = vmax.xlane.f32.xlu1 %v499_v58 }
 0x1e1   :  { %386 = vmax.xlane.f32.xlu0 %v385_v59 }
 0x1e6   :  { %383 = vmax.xlane.f32.xlu2 %v382_v60 }
 0x1e9   :  { %497 = vmax.xlane.f32.xlu0 %v496_v61 }
 0x207   :  { %v270_v62 = vpop.xlane.xlu1 %269 }
 0x208   :  { %v274_v63 = vsub.f32 %v241_v38, %v270_v62  ;;  %v155_v0 = vpop.xlane.xlu2 %154 }
 0x209   :  { %v159_v1 = vsub.f32 %v125_v39, %v155_v0 }
 0x20a   :  { %v276_v4 = vmul.f32 1.442695, %v274_v63 }
 0x20b   :  { %v161_v5 = vmul.f32 1.442695, %v159_v1 }
 0x20c   :  { %978 = vpow2.f32 %v276_v4 }
 0x20d   :  { %980 = vpow2.f32 %v161_v5 }
 0x212   :  { %v1250_v6 = vpop.eup %978 }
 0x213   :  { %v1252_v7 = vpop.eup %980  ;;  %v280_v8 = vsel %vm109_vm1, %v1250_v6, 0.0 }
 0x214   :  { %v165_v9 = vsel %vm109_vm1, %v1252_v7, 0.0  ;;  %281 = vadd.xlane.f32.xlu0 %v280_v8 }
 0x215   :  { %166 = vadd.xlane.f32.xlu1 %v165_v9 }
 0x216   :  { %v158_v11 = vpop.xlane.xlu0 %157 }
 0x217   :  { %v160_v12 = vsub.f32 %v149_v44, %v158_v11 }
 0x218   :  { %v273_v13 = vpop.xlane.xlu2 %272 }
 0x219   :  { %v163_v14 = vmul.f32 1.442695, %v160_v12  ;;  %v275_v16 = vsub.f32 %v264_v46, %v273_v13 }
 0x21b   :  { %982 = vpow2.f32 %v163_v14  ;;  %v278_v17 = vmul.f32 1.442695, %v275_v16 }
 0x21d   :  { %984 = vpow2.f32 %v278_v17 }
 0x21f   :  { %v200_v18 = vpop.permute.xlu1 %199 }
 0x220   :  { %v178_v19 = vpop.permute.xlu2 %177  ;;  %v205_v20 = vsel %vm182_vm2, %v200_v18, 0 }
 0x221   :  { %v1259_v21 = vpop.eup %982  ;;  %v184_v22 = vsel %vm182_vm2, %v178_v19, 0 }
 0x222   :  { %193 = vmatpush.bf16.msra.mxu3 %v184_v22  ;;  %v168_v23 = vsel %vm109_vm1, %v1259_v21, 0.0 }
 0x223   :  { %v1264_v24 = vpop.eup %984  ;;  %169 = vadd.xlane.f32.xlu0 %v168_v23 }
 0x224   :  { %v283_v25 = vsel %vm109_vm1, %v1264_v24, 0.0 }
 0x225   :  { %284 = vadd.xlane.f32.xlu2 %v283_v25 }
 0x226   :  { %214 = vmatpush.bf16.msrb.mxu3 %v205_v20 }
 0x227   :  { %v314_v28 = vpop.permute.xlu1 %313 }
 0x228   :  { %v319_v57 = vsel %vm182_vm2, %v314_v28, 0 }
 0x229   :  { %v293_v26 = vpop.permute.xlu0 %292 }
 0x22a   :  { %v298_v27 = vsel %vm182_vm2, %v293_v26, 0 }
 0x22b   :  { %307 = vmatpush.bf16.msrb.mxu2 %v298_v27 }
 0x22e   :  { %427 = vrot.lane.b32.xlu1 %v1198_v15, %s1110_s30 }
 0x23d   :  { %406 = vrot.lane.b32.xlu2 %v1193_v10, %s1110_s30 }
 0x252   :  { %v501_v29 = vpop.xlane.xlu1 %500 }
 0x253   :  { %v503_v30 = vsub.f32 %v492_v56, %v501_v29 }
 0x254   :  { %v387_v31 = vpop.xlane.xlu0 %386 }
 0x255   :  { %v389_v32 = vsub.f32 %v1235_v52, %v387_v31  ;;  %v506_v34 = vmul.f32 1.442695, %v503_v30 }
 0x257   :  { %v392_v33 = vmul.f32 1.442695, %v389_v32 }
 0x259   :  { %986 = vpow2.f32 %v392_v33  ;;  %v384_v35 = vpop.xlane.xlu2 %383 }
 0x25a   :  { %v388_v36 = vsub.f32 %v1230_v47, %v384_v35  ;;  %988 = vpow2.f32 %v506_v34 }
 0x25c   :  { %v390_v37 = vmul.f32 1.442695, %v388_v36  ;;  %v498_v38 = vpop.xlane.xlu0 %497 }
 0x25d   :  { %v502_v39 = vsub.f32 %v1237_v53, %v498_v38 }
 0x25e   :  { %990 = vpow2.f32 %v390_v37 }
 0x25f   :  { %v987_v40 = vpop.eup %986  ;;  %v504_v41 = vmul.f32 1.442695, %v502_v39 }
 0x260   :  { %v397_v42 = vsel %vm109_vm1, %v987_v40, 0.0  ;;  %v1275_v43 = vpop.eup %988 }
 0x261   :  { %992 = vpow2.f32 %v504_v41  ;;  %398 = vadd.xlane.f32.xlu0 %v397_v42  ;;  %v511_v46 = vsel %vm109_vm1, %v1275_v43, 0.0 }
 0x264   :  { %v991_v44 = vpop.eup %990 }
 0x265   :  { %v394_v45 = vsel %vm109_vm1, %v991_v44, 0.0 }
 0x266   :  { %395 = vadd.xlane.f32.xlu1 %v394_v45  ;;  %512 = vadd.xlane.f32.xlu2 %v511_v46 }
 0x267   :  { %v993_v47 = vpop.eup %992 }
 0x268   :  { %v508_v48 = vsel %vm109_vm1, %v993_v47, 0.0 }
 0x269   :  { %509 = vadd.xlane.f32.xlu0 %v508_v48 }
 0x27d   :  { %520 = vrot.lane.b32.xlu0 %v1193_v10, %s1111_s9 }
 0x27f   :  { %541 = vrot.lane.b32.xlu1 %v1198_v15, %s1111_s9 }
 0x287   :  { %v282_v49 = vpop.xlane.xlu0 %281 }
 0x288   :  { %v167_v50 = vpop.xlane.xlu1 %166  ;;  %994 = vrcp.f32 %v282_v49 }
 0x289   :  { %996 = vrcp.f32 %v167_v50 }
 0x28e   :  { %v995_v51 = vpop.eup %994 }
 0x28f   :  { %v997_v52 = vpop.eup %996  ;;  %v288_v53 = vmul.f32 %v995_v51, %v1250_v6 }
 0x290   :  { %v173_v54 = vmul.f32 %v997_v52, %v1252_v7 }
 0x291   :  { %v290_v55 = vpack.c.bf16 %v288_v53, %v288_v53 }
 0x292   :  { %v175_v56 = vpack.c.bf16 %v173_v54, %v173_v54 }
 0x293   :  { %895 = vmatmul.msk.bf16.vlgmr.msrb.gmra.mxu2 %vm109_vm1, %v290_v55 }
 0x294   :  { %891 = vmatmul.msk.bf16.vlgmr.msra.gmra.mxu3 %vm109_vm1, %v175_v56 }
 0x295   :  { %328 = vmatpush.bf16.msra.mxu3 %v319_v57 }
 0x296   :  { %v170_v10 = vpop.xlane.xlu0 %169 }
 0x297   :  { %998 = vrcp.f32 %v170_v10 }
 0x298   :  { %v285_v15 = vpop.xlane.xlu2 %284 }
 0x299   :  { %1000 = vrcp.f32 %v285_v15 }
 0x29d   :  { %v999_v58 = vpop.eup %998 }
 0x29e   :  { %v174_v59 = vmul.f32 %v999_v58, %v1259_v21 }
 0x29f   :  { %v1001_v1 = vpop.eup %1000 }
 0x2a0   :  { %v407_v60 = vpop.permute.xlu2 %406  ;;  %v428_v62 = vpop.permute.xlu1 %427  ;;  %v176_v63 = vpack.c.bf16 %v174_v59, %v174_v59  ;;  %v289_v4 = vmul.f32 %v1001_v1, %v1264_v24 }
 0x2a1   :  { %v412_v61 = vsel %vm182_vm2, %v407_v60, 0  ;;  %v433_v0 = vsel %vm182_vm2, %v428_v62, 0  ;;  %v943_v60 = vld [vmem:[%s1357_s3 + $0x8] sm:$0xff] }
 0x2a2   :  { %421 = vmatpush.bf16.msra.mxu2 %v412_v61  ;;  %v291_v5 = vpack.c.bf16 %v289_v4, %v289_v4  ;;  %642 = vmatpush.bf16.msra.mxu0 %v943_v60  ;;  %v942_v61 = vld [vmem:[%s1357_s3] sm:$0xff] }
 0x2a4   :  { %892 = vmatmul.msk.bf16.vlgmr.msrb.gmra.mxu3 %vm109_vm1, %v176_v63 }
 0x2a5   :  { %442 = vmatpush.bf16.msrb.mxu3 %v433_v0 }
 0x2a6   :  { %643 = vmatpush.bf16.msra.mxu0 %v942_v61  ;;  %v972_v61 = vld [vmem:[#allocation5 + $0x2] ss:$0 sm:$0xff] }
 0x2b4   :  { %896 = vmatmul.msk.bf16.vlgmr.msra.gmra.mxu3 %vm109_vm1, %v291_v5 }
 0x2d4   :  { %v399_v6 = vpop.xlane.xlu0 %398 }
 0x2d5   :  { %1002 = vrcp.f32 %v399_v6 }
 0x2d9   :  { %v396_v7 = vpop.xlane.xlu1 %395  ;;  %v513_v14 = vpop.xlane.xlu2 %512 }
 0x2da   :  { %1004 = vrcp.f32 %v396_v7 }
 0x2db   :  { %v1003_v8 = vpop.eup %1002  ;;  %1006 = vrcp.f32 %v513_v14 }
 0x2dc   :  { %v403_v9 = vmul.f32 %v1003_v8, %v987_v40  ;;  %v510_v17 = vpop.xlane.xlu0 %509 }
 0x2dd   :  { %1008 = vrcp.f32 %v510_v17 }
 0x2de   :  { %v405_v11 = vpack.c.bf16 %v403_v9, %v403_v9 }
 0x2e0   :  { %900 = vmatmul.msk.bf16.vlgmr.msrb.gmra.mxu3 %vm109_vm1, %v405_v11  ;;  %v1005_v12 = vpop.eup %1004 }
 0x2e1   :  { %v402_v13 = vmul.f32 %v1005_v12, %v991_v44  ;;  %v1007_v18 = vpop.eup %1006 }
 0x2e2   :  { %v517_v21 = vmul.f32 %v1007_v18, %v1275_v43 }
 0x2e3   :  { %v404_v16 = vpack.c.bf16 %v402_v13, %v402_v13  ;;  %v1009_v19 = vpop.eup %1008 }
 0x2e4   :  { %v516_v22 = vmul.f32 %v1009_v19, %v993_v47  ;;  %v519_v26 = vpack.c.bf16 %v517_v21, %v517_v21  ;;  %v971_v19 = vld [vmem:[#allocation5] ss:$0 sm:$0xff] }
 0x2e5   :  { %899 = vmatmul.msk.bf16.vlgmr.msra.gmra.mxu2 %vm109_vm1, %v404_v16 }
 0x2e6   :  { %v518_v27 = vpack.c.bf16 %v516_v22, %v516_v22 }
 0x2ef   :  { %v521_v20 = vpop.permute.xlu0 %520 }
 0x2f0   :  { %v526_v23 = vsel %vm182_vm2, %v521_v20, 0 }
 0x2f1   :  { %v542_v24 = vpop.permute.xlu1 %541  ;;  %535 = vmatpush.bf16.msrb.mxu2 %v526_v23 }
 0x2f2   :  { %v547_v25 = vsel %vm182_vm2, %v542_v24, 0 }
 0x2f3   :  { %556 = vmatpush.bf16.msra.mxu3 %v547_v25 }
 0x2f5   :  { %903 = vmatmul.msk.bf16.vlgmr.msrb.gmra.mxu2 %vm109_vm1, %v518_v27 }
 0x2f6   :  { %904 = vmatmul.msk.bf16.vlgmr.msra.gmra.mxu3 %vm109_vm1, %v519_v26 }
 0x316   :  { %v309_v28 = vpop.f32.mrf.mxu2 }
 0x317   :  { %v195_v29 = vpop.f32.mrf.mxu3  ;;  %v334_v30 = vpack.c.bf16 %v309_v28, %v309_v28  ;;  %v1115_v28 = vmov 32.0  }
 0x318   :  { %v220_v1 = vpack.c.bf16 %v195_v29, %v195_v29  ;;  %1010 = vrcp.f32 %v1115_v28 }
 0x319   :  { %v566_v31 = vunpack.c.l.b16 %v334_v30 }
 0x31b   :  { %v568_v32 = vpack.c.b16 %v566_v31, %v566_v31 }
 0x31d   :  { %570 = vrot.lane.b32.xlu0 %v568_v32, %s1112_s10 }
 0x31e   :  { %v311_v33 = vpop.f32.mrf.mxu2  ;;  %v1011_v29 = vpop.eup %1010 }
 0x31f   :  { %v197_v34 = vpop.f32.mrf.mxu3  ;;  %v661_v30 = vmul.f32 32.0, %v1011_v29  ;;  %vm665_vm5 = vweird.f32 %v1011_v29 }
 0x321   :  { %v662_v31 = vsub.f32 1.0, %v661_v30 }
 0x323   :  { %v663_v32 = vmul.f32 %v1011_v29, %v662_v31 }
 0x325   :  { %v664_v33 = vadd.f32 %v1011_v29, %v663_v32 }
 0x327   :  { %v216_v35 = vpop.f32.mrf.mxu3  ;;  %v1316_v34 = vsel %vm665_vm5, %v1011_v29, %v664_v33 }
 0x328   :  { %v221_v6 = vpack.c.bf16 %v216_v35, %v216_v35 }
 0x32f   :  { %v218_v36 = vpop.f32.mrf.mxu3 }
 0x337   :  { %v330_v37 = vpop.f32.mrf.mxu3 }
 0x338   :  { %v335_v38 = vpack.c.bf16 %v330_v37, %v330_v37 }
 0x33a   :  { %v567_v39 = vunpack.c.l.b16 %v335_v38 }
 0x33c   :  { %v569_v40 = vpack.c.b16 %v567_v39, %v567_v39 }
 0x33e   :  { %572 = vrot.lane.b32.xlu1 %v569_v40, %s1112_s10 }
 0x33f   :  { %v332_v41 = vpop.f32.mrf.mxu3 }
 0x363   :  { %v444_v42 = vpop.f32.mrf.mxu3 }
 0x364   :  { %v449_v43 = vpack.c.bf16 %v444_v42, %v444_v42 }
 0x366   :  { %v577_v44 = vunpack.c.l.b16 %v449_v43  ;;  %v945_v43 = vld [vmem:[#allocation2 + $0x8] sm:$0xff] }
 0x367   :  { %741 = vmatpush.bf16.msra.mxu1 %v945_v43 }
 0x368   :  { %v579_v45 = vpack.c.b16 %v577_v44, %v577_v44  ;;  %v423_v46 = vpop.f32.mrf.mxu2 }
 0x369   :  { %v448_v47 = vpack.c.bf16 %v423_v46, %v423_v46 }
 0x36a   :  { %582 = vrot.lane.b32.xlu1 %v579_v45, %s1113_s11 }
 0x36b   :  { %v446_v48 = vpop.f32.mrf.mxu3  ;;  %v576_v49 = vunpack.c.l.b16 %v448_v47  ;;  %v944_v47 = vld [vmem:[#allocation2] sm:$0xff] }
 0x36c   :  { %742 = vmatpush.bf16.msra.mxu1 %v944_v47 }
 0x36d   :  { %v578_v50 = vpack.c.b16 %v576_v49, %v576_v49 }
 0x36f   :  { %580 = vrot.lane.b32.xlu0 %v578_v50, %s1113_s11 }
 0x370   :  { %v425_v51 = vpop.f32.mrf.mxu2 }
 0x378   :  { %v537_v52 = vpop.f32.mrf.mxu2 }
 0x379   :  { %v558_v53 = vpop.f32.mrf.mxu3  ;;  %v562_v54 = vpack.c.bf16 %v537_v52, %v537_v52 }
 0x37a   :  { %v563_v55 = vpack.c.bf16 %v558_v53, %v558_v53 }
 0x37b   :  { %v586_v56 = vunpack.c.l.b16 %v562_v54 }
 0x37c   :  { %v587_v57 = vunpack.c.l.b16 %v563_v55 }
 0x37d   :  { %v588_v10 = vpack.c.b16 %v586_v56, %v586_v56 }
 0x37e   :  { %v589_v15 = vpack.c.b16 %v587_v57, %v587_v57 }
 0x37f   :  { %590 = vrot.lane.b32.xlu2 %v588_v10, %s1114_s12 }
 0x380   :  { %592 = vrot.lane.b32.xlu0 %v589_v15, %s1114_s12  ;;  %v539_v58 = vpop.f32.mrf.mxu2 }
 0x381   :  { %v560_v59 = vpop.f32.mrf.mxu3 }
 0x38f   :  { %v571_v62 = vpop.permute.xlu0 %570 }
 0x390   :  { %v596_v4 = vsel %vm109_vm1, %v220_v1, %v571_v62  ;;  %v973_v1 = vld [vmem:[#allocation5 + $0x3] ss:$0 sm:$0xff] }
 0x3b0   :  { %v573_v63 = vpop.permute.xlu1 %572 }
 0x3b1   :  { %v599_v9 = vsel %vm109_vm1, %v221_v6, %v573_v63 }
 0x3d9   :  { %v591_v8 = vpop.permute.xlu2 %590 }
 0x3dc   :  { %v583_v7 = vpop.permute.xlu1 %582 }
 0x3dd   :  { %v604_v12 = vsel %vm600_vm3, %v599_v9, %v583_v7 }
 0x3e1   :  { %v581_v0 = vpop.permute.xlu0 %580 }
 0x3e2   :  { %v602_v5 = vsel %vm600_vm3, %v596_v4, %v581_v0 }
 0x3e3   :  { %v607_v11 = vsel %vm605_vm4, %v602_v5, %v591_v8 }
 0x3e4   :  { %v618_v16 = vunpack.c.l.b16 %v607_v11  ;;  %v949_v11 = vld [vmem:[%s1360_s6 + $0x18] sm:$0xff] }
 0x3e5   :  { %794 = vmatpush.bf16.msra.mxu2 %v949_v11 }
 0x3f2   :  { %v593_v13 = vpop.permute.xlu0 %592 }
 0x3f3   :  { %v609_v14 = vsel %vm605_vm4, %v604_v12, %v593_v13  ;;  %v948_v12 = vld [vmem:[%s1360_s6 + $0x10] sm:$0xff]  ;;  %v947_v13 = vld [vmem:[%s1360_s6 + $0x8] sm:$0xff] }
 0x3f4   :  { %v619_v17 = vunpack.c.l.b16 %v609_v14  ;;  %795 = vmatpush.bf16.msra.mxu2 %v948_v12  ;;  %v946_v14 = vld [vmem:[%s1360_s6] sm:$0xff] }
 0x3f6   :  { %v620_v18 = vpack.c.b16 %v619_v17, %v618_v16  ;;  %v974_v17 = vld [vmem:[%s1359_s5] ss:$0 sm:$0xff]  ;;  %s1116_s5 = smov [#allocation7]  }
 0x3f7   :  { %s864_s6 = sshll.u32 %s1116_s5, 4  ;;  %s865_s6 = int_to_ptr.vmem [resolvable:$true] %s864_s6 }
 0x3f8   :  { %913 = vmatmul.msk.bf16.vlgmr.msra.gmra.mxu0 %vm84_vm0, %v620_v18  ;;  %796 = vmatpush.bf16.msra.mxu2 %v947_v13 }
 0x3fc   :  { %797 = vmatpush.bf16.msra.mxu2 %v946_v14 }
 0x475   :  { %v645_v20 = vpop.f32.mrf.mxu0 }
 0x476   :  { %v646_v21 = vadd.f32 %v971_v19, %v645_v20 }
 0x478   :  { %v650_v22 = vadd.f32 %v646_v21, %v1180_v2 }
 0x47a   :  { %v654_v23 = vsel %vm84_vm0, %v650_v22, 0.0 }
 0x47b   :  { %655 = vadd.xlane.f32.xlu1 %v654_v23 }
 0x47d   :  { %v647_v24 = vpop.f32.mrf.mxu0 }
 0x47e   :  { %v648_v25 = vadd.f32 %v971_v19, %v647_v24  ;;  %v975_v24 = vld [vmem:[#allocation5 + $0x1] ss:$0 sm:$0xff] }
 0x480   :  { %v651_v26 = vadd.f32 %v648_v25, %v1185_v3 }
 0x482   :  { %v657_v27 = vsel %vm84_vm0, %v651_v26, 0.0 }
 0x483   :  { %658 = vadd.xlane.f32.xlu0 %v657_v27 }
 0x4ee   :  { %v656_v2 = vpop.xlane.xlu1 %655 }
 0x4ef   :  { %v667_v35 = vmul.f32 %v1316_v34, %v656_v2 }
 0x4f1   :  { %v669_v36 = vsub.f32 %v650_v22, %v667_v35 }
 0x4f3   :  { %v671_v37 = vmul.f32 %v669_v36, %v669_v36 }
 0x4f5   :  { %v673_v3 = vsel %vm84_vm0, %v671_v37, 0.0 }
 0x4f6   :  { %v659_v38 = vpop.xlane.xlu0 %658  ;;  %674 = vadd.xlane.f32.xlu2 %v673_v3 }
 0x4f7   :  { %v668_v39 = vmul.f32 %v1316_v34, %v659_v38 }
 0x4f9   :  { %v670_v40 = vsub.f32 %v651_v26, %v668_v39 }
 0x4fb   :  { %v672_v41 = vmul.f32 %v670_v40, %v670_v40 }
 0x4fd   :  { %v676_v42 = vsel %vm84_vm0, %v672_v41, 0.0 }
 0x4fe   :  { %677 = vadd.xlane.f32.xlu1 %v676_v42 }
 0x569   :  { %v675_v44 = vpop.xlane.xlu2 %674 }
 0x56a   :  { %v679_v45 = vmul.f32 %v675_v44, %v1316_v34 }
 0x56c   :  { %v681_v46 = vadd.f32 1e-05, %v679_v45 }
 0x56e   :  { %1012 = vrsqrt.f32 %v681_v46  ;;  %vm689_vm7 = vweird.f32 %v681_v46 }
 0x571   :  { %v678_v48 = vpop.xlane.xlu1 %677 }
 0x572   :  { %v680_v49 = vmul.f32 %v678_v48, %v1316_v34 }
 0x574   :  { %v1013_v50 = vpop.eup %1012  ;;  %v682_v51 = vadd.f32 1e-05, %v680_v49 }
 0x575   :  { %v684_v52 = vmul.f32 %v1013_v50, %v681_v46  ;;  %vm690_vm6 = vweird.f32 %v1013_v50 }
 0x576   :  { %1014 = vrsqrt.f32 %v682_v51  ;;  %vm691_vm8 = vmor %vm689_vm7, %vm690_vm6  ;;  %vm699_vm10 = vweird.f32 %v682_v51 }
 0x577   :  { %v685_v53 = vmul.f32 %v1013_v50, %v684_v52 }
 0x579   :  { %v686_v54 = vmul.f32 0.5, %v685_v53 }
 0x57b   :  { %v687_v55 = vsub.f32 1.5, %v686_v54 }
 0x57c   :  { %v1015_v56 = vpop.eup %1014 }
 0x57d   :  { %v688_v57 = vmul.f32 %v1013_v50, %v687_v55  ;;  %v694_v10 = vmul.f32 %v1015_v56, %v682_v51  ;;  %vm700_vm9 = vweird.f32 %v1015_v56 }
 0x57e   :  { %vm701_vm11 = vmor %vm699_vm10, %vm700_vm9 }
 0x57f   :  { %v695_v15 = vmul.f32 %v1015_v56, %v694_v10  ;;  %v692_v58 = vsel %vm691_vm8, %v1013_v50, %v688_v57 }
 0x580   :  { %v703_v62 = vmul.f32 %v692_v58, %v669_v36 }
 0x581   :  { %v696_v59 = vmul.f32 0.5, %v695_v15  ;;  %v977_v15 = vld [vmem:[#allocation5 + $0x5] ss:$0 sm:$0xff] }
 0x582   :  { %v706_v4 = vmul.f32 %v972_v61, %v703_v62 }
 0x583   :  { %v697_v60 = vsub.f32 1.5, %v696_v59 }
 0x584   :  { %v709_v7 = vadd.f32 %v973_v1, %v706_v4 }
 0x585   :  { %v698_v63 = vmul.f32 %v1015_v56, %v697_v60 }
 0x587   :  { %v702_v0 = vsel %vm701_vm11, %v1015_v56, %v698_v63  ;;  %v976_v56 = vld [vmem:[#allocation5 + $0x4] ss:$0 sm:$0xff] }
 0x588   :  { %v704_v5 = vmul.f32 %v702_v0, %v670_v40 }
 0x58a   :  { %v707_v6 = vmul.f32 %v972_v61, %v704_v5 }
 0x58c   :  { %v710_v8 = vadd.f32 %v973_v1, %v707_v6 }
 0x58e   :  { %v711_v9 = vpack.c.bf16 %v710_v8, %v709_v7 }
 0x590   :  { %922 = vmatmul.msk.bf16.vlgmr.msra.gmra.mxu1 %vm84_vm0, %v711_v9 }
 0x60d   :  { %v744_v16 = vpop.f32.mrf.mxu1 }
 0x60e   :  { %v745_v18 = vadd.f32 %v974_v17, %v744_v16 }
 0x610   :  { %v749_v21 = vmax.f32 %v745_v18, 0.0 }
 0x615   :  { %v746_v19 = vpop.f32.mrf.mxu1 }
 0x616   :  { %v747_v20 = vadd.f32 %v974_v17, %v746_v19 }
 0x618   :  { %v750_v22 = vmax.f32 %v747_v20, 0.0 }
 0x61a   :  { %v751_v23 = vpack.c.bf16 %v750_v22, %v749_v21 }
 0x61c   :  { %939 = vmatmul.msk.bf16.vlgmr.msra.gmra.mxu2 %vm786_vm12, %v751_v23 }
 0x69f   :  { %v799_v25 = vpop.f32.mrf.mxu2 }
 0x6a0   :  { %v800_v26 = vadd.f32 %v975_v24, %v799_v25 }
 0x6a2   :  { %v804_v27 = vadd.f32 %v800_v26, %v709_v7 }
 0x6a4   :  { %v808_v28 = vsel %vm84_vm0, %v804_v27, 0.0 }
 0x6a5   :  { %809 = vadd.xlane.f32.xlu0 %v808_v28 }
 0x6a7   :  { %v801_v29 = vpop.f32.mrf.mxu2 }
 0x6a8   :  { %v802_v30 = vadd.f32 %v975_v24, %v801_v29 }
 0x6aa   :  { %v805_v31 = vadd.f32 %v802_v30, %v710_v8 }
 0x6ac   :  { %v811_v32 = vsel %vm84_vm0, %v805_v31, 0.0 }
 0x6ad   :  { %812 = vadd.xlane.f32.xlu1 %v811_v32 }
 0x718   :  { %v810_v33 = vpop.xlane.xlu0 %809 }
 0x719   :  { %v814_v2 = vmul.f32 %v810_v33, %v1316_v34 }
 0x71b   :  { %v816_v35 = vsub.f32 %v804_v27, %v814_v2 }
 0x71d   :  { %v818_v36 = vmul.f32 %v816_v35, %v816_v35 }
 0x71f   :  { %v820_v37 = vsel %vm84_vm0, %v818_v36, 0.0 }
 0x720   :  { %v813_v3 = vpop.xlane.xlu1 %812  ;;  %821 = vadd.xlane.f32.xlu0 %v820_v37 }
 0x721   :  { %v815_v38 = vmul.f32 %v813_v3, %v1316_v34 }
 0x723   :  { %v817_v39 = vsub.f32 %v805_v31, %v815_v38 }
 0x725   :  { %v819_v40 = vmul.f32 %v817_v39, %v817_v39 }
 0x727   :  { %v823_v41 = vsel %vm84_vm0, %v819_v40, 0.0 }
 0x728   :  { %824 = vadd.xlane.f32.xlu1 %v823_v41 }
 0x793   :  { %v822_v42 = vpop.xlane.xlu0 %821 }
 0x794   :  { %v826_v43 = vmul.f32 %v822_v42, %v1316_v34 }
 0x796   :  { %v828_v44 = vadd.f32 1e-05, %v826_v43 }
 0x798   :  { %1016 = vrsqrt.f32 %v828_v44  ;;  %vm836_vm14 = vweird.f32 %v828_v44 }
 0x79b   :  { %v825_v45 = vpop.xlane.xlu1 %824 }
 0x79c   :  { %v827_v46 = vmul.f32 %v825_v45, %v1316_v34 }
 0x79e   :  { %v1017_v47 = vpop.eup %1016  ;;  %v829_v48 = vadd.f32 1e-05, %v827_v46 }
 0x79f   :  { %v831_v49 = vmul.f32 %v1017_v47, %v828_v44  ;;  %vm837_vm13 = vweird.f32 %v1017_v47 }
 0x7a0   :  { %1018 = vrsqrt.f32 %v829_v48  ;;  %vm838_vm15 = vmor %vm836_vm14, %vm837_vm13  ;;  %vm846_vm2 = vweird.f32 %v829_v48 }
 0x7a1   :  { %v832_v50 = vmul.f32 %v1017_v47, %v831_v49 }
 0x7a3   :  { %v833_v51 = vmul.f32 0.5, %v832_v50 }
 0x7a5   :  { %v834_v52 = vsub.f32 1.5, %v833_v51 }
 0x7a6   :  { %v1019_v53 = vpop.eup %1018 }
 0x7a7   :  { %v835_v54 = vmul.f32 %v1017_v47, %v834_v52  ;;  %v841_v55 = vmul.f32 %v1019_v53, %v829_v48  ;;  %vm847_vm1 = vweird.f32 %v1019_v53 }
 0x7a8   :  { %vm848_vm3 = vmor %vm846_vm2, %vm847_vm1 }
 0x7a9   :  { %v839_v57 = vsel %vm838_vm15, %v1017_v47, %v835_v54  ;;  %v842_v10 = vmul.f32 %v1019_v53, %v841_v55 }
 0x7aa   :  { %v850_v58 = vmul.f32 %v839_v57, %v816_v35 }
 0x7ab   :  { %v843_v59 = vmul.f32 0.5, %v842_v10 }
 0x7ac   :  { %v853_v34 = vmul.f32 %v976_v56, %v850_v58 }
 0x7ad   :  { %v844_v60 = vsub.f32 1.5, %v843_v59 }
 0x7ae   :  { %v856_v61 = vadd.f32 %v977_v15, %v853_v34 }
 0x7af   :  { %v845_v62 = vmul.f32 %v1019_v53, %v844_v60 }
 0x7b0   :  { %858 = vst.msk [vmem:[#allocation7] sm:$0xff] %vm84_vm0, %v856_v61 }
 0x7b1   :  { %v849_v63 = vsel %vm848_vm3, %v1019_v53, %v845_v62 }
 0x7b2   :  { %v851_v0 = vmul.f32 %v849_v63, %v817_v39 }
 0x7b4   :  { %v854_v1 = vmul.f32 %v976_v56, %v851_v0 }
 0x7b6   :  { %v857_v4 = vadd.f32 %v977_v15, %v854_v1 }
 0x7b8   :  { %859 = vst.msk [vmem:[#allocation7 + $0x8] sm:$0xff] %vm84_vm0, %v857_v4 }
 0x7b9   :  { %872 = dma.vmem_to_hbm [thread:$0]  %s865_s6, 256, %s867_s24, [#allocation4], %s1117_s25, %s1117_s25, %s1112_s10  }
 0x7ba   :  { %1096 = dma.done.wait [#allocation4], 256  }
 0x7bb   :  { %1097 = vsyncadd [#allocation4], 4294967040 }
 0x7bc   :  { %877 = vsyncpa [#allocation3], 1 }
 0x7bd   :  { %878 = vsyncpa [#allocation6], 1 }
 0x7be   :  { %879 = vsyncpa [#allocation4], 1 }

</bundles_post_ra>
